<compile_context>
chip_gen: v6e
topology: v6e:2x2x1
jax: 0.10.0
libtpu: 0.0.40
codegen_flags: <defaults>
</compile_context>

<pallas_src>
import jax
import jax.numpy as jnp
from jax.experimental import pallas as pl
from jax.experimental.pallas import tpu as pltpu


def _round_up(x, m):
    return -(-x // m) * m


def _folded_matvec_kernel(wf_ref, x_ref, y_ref):
    # wf_ref: VMEM (kf, fold) f32, resident (constant block index -> DMA'd once)
    # x_ref:  VMEM (tmf, kf) f32 tile of the lane-folded X (streamed, pipelined)
    # y_ref:  VMEM (tmf, fold) f32 output tile
    y_ref[...] = jax.lax.dot_general(
        x_ref[...], wf_ref[...],
        dimension_numbers=(((1,), (0,)), ((), ())),   # MXU-natural (M,K)x(K,N)
        preferred_element_type=jnp.float32,
        precision=jax.lax.Precision.HIGHEST,          # full f32, not 1-pass bf16
    )


def _pick_block_rows(nf, kf):
    """Folded-X rows per grid step, with lane-padding-aware VMEM accounting."""
    kpad = _round_up(max(kf, 1), 128)       # X block lane width as stored in VMEM
    opad = 128                              # narrow (tmf, fold) out block pads to 128 lanes
    bytes_per_row = 2 * (kpad + opad) * 4   # double-buffered X + out blocks, f32
    budget = 32 << 20                       # pipeline buffers; < 48 MiB scoped limit (v7x: 64 MiB phys)
    tmf = max(8, budget // bytes_per_row)   # ~8 MiB of X per step when kf == 128
    # Keep >= 4 grid steps for large n (v7x megacore + pipelining), but never
    # shrink a step below ~1 MiB of X (fixed per-step overhead ~0.35 us).
    min_rows = max(8, (1 << 20) // (kpad * 4))
    tmf = min(tmf, max(min_rows, pl.cdiv(nf, 4)))
    tmf = min(tmf, nf)
    if tmf < nf:
        tmf = max(8, (tmf // 8) * 8)        # sublane-aligned unless full extent
    return tmf


def _forward(X, q_mu_h, q_sigma_h, epsilon, *, block_rows=None):
    n, d = X.shape
    X = X.astype(jnp.float32)
    mu = q_mu_h.astype(jnp.float32).reshape(d)
    eps = epsilon.astype(jnp.float32).reshape(d)
    sigma = jnp.asarray(q_sigma_h, jnp.float32).reshape(())

    # Reparameterized sample + reciprocal: O(d) work, fused by XLA around the
    # pallas_call.  The O(n*d) streamed matvec below is the Pallas kernel.
    q_h = mu + jax.nn.softplus(sigma) * eps
    w = 1.0 / q_h                                     # (d,)

    # Lane-fold X so a folded row fills (up to) the 128-lane vreg width, and
    # scatter w block-diagonally so X_folded @ W_fold == y.reshape(nf, fold).
    fold = max(1, 128 // d)
    while fold > 1 and n % fold:                      # largest fold dividing n
        fold -= 1
    nf, kf = n // fold, d * fold
    x_folded = X.reshape(nf, kf)                      # free: row-major reshape
    eye = jnp.eye(fold, dtype=jnp.float32)
    w_fold = (eye[:, None, :] * w[None, :, None]).reshape(kf, fold)

    if block_rows is None:
        tmf = _pick_block_rows(nf, kf)
    else:
        tmf = min(int(block_rows), nf)
        if tmf < nf:
            tmf = max(8, (tmf // 8) * 8)
    steps = pl.cdiv(nf, tmf)

    y2d = pl.pallas_call(
        _folded_matvec_kernel,
        out_shape=jax.ShapeDtypeStruct((nf, fold), jnp.float32),
        grid_spec=pltpu.PrefetchScalarGridSpec(
            num_scalar_prefetch=0,
            grid=(steps,),
            in_specs=[
                pl.BlockSpec((kf, fold), lambda i: (0, 0)),   # W_fold: resident
                pl.BlockSpec((tmf, kf), lambda i: (i, 0)),    # X: streamed tiles
            ],
            out_specs=pl.BlockSpec((tmf, fold), lambda i: (i, 0)),
        ),
        compiler_params=pltpu.CompilerParams(
            dimension_semantics=("parallel",),
            vmem_limit_bytes=48 << 20,
        ),
    )(w_fold, x_folded)
    return y2d.reshape(n)


bayesian_normal_forward = jax.jit(_forward, static_argnames=("block_rows",))


if __name__ == "__main__":
    init_h = 1.0
    p_sigma_h = 0.5
    key = jax.random.PRNGKey(0)
    k1, k2, k3, k4 = jax.random.split(key, 4)

    def reference(Xr, mur, sigmar, epsr):
        q_h = mur + jax.nn.softplus(sigmar) * epsr
        return jnp.dot(Xr, 1.0 / q_h, precision=jax.lax.Precision.HIGHEST)

    def check(y, y_ref):
        assert y.shape == y_ref.shape
        err = float(jnp.max(jnp.abs(y - y_ref)))
        scale = float(jnp.max(jnp.abs(y_ref))) + 1e-6
        # 2e-3*scale also covers a default single-pass-bf16 MXU contraction;
        # with Precision.HIGHEST the observed error is ~1e-6 * scale.
        assert err <= 2e-3 * scale, f"max abs err {err} vs scale {scale}"

    # Case 1: d divides 128 (fold=4 lane-fold path), auto tile size.
    n, d = 4096, 32
    q_mu_h = jnp.ones((d,), jnp.float32) * init_h          # __init__: ones(d) * init_h
    q_sigma_h = jnp.asarray(p_sigma_h, jnp.float32)
    X = jax.random.normal(k1, (n, d), jnp.float32)
    epsilon = jax.random.normal(k2, (d,), jnp.float32)     # torch.randn(mu.shape)
    y_ref = reference(X, q_mu_h, q_sigma_h, epsilon)

    y1 = jax.block_until_ready(bayesian_normal_forward(X, q_mu_h, q_sigma_h, epsilon))
    check(y1, y_ref)

    # Case 2: same problem with small forced tiles -> multi-step pipelined grid
    # with a ragged final block (exercises partial-block clipping).
    y2 = jax.block_until_ready(
        bayesian_normal_forward(X, q_mu_h, q_sigma_h, epsilon, block_rows=96))
    check(y2, y_ref)

    # Case 3: d does not divide 128 (fold=2 fallback) and n not a multiple of 8.
    n3, d3 = 1000, 40
    mu3 = jnp.ones((d3,), jnp.float32) * init_h
    X3 = jax.random.normal(k3, (n3, d3), jnp.float32)
    eps3 = jax.random.normal(k4, (d3,), jnp.float32)
    y3 = jax.block_until_ready(
        bayesian_normal_forward(X3, mu3, q_sigma_h, eps3, block_rows=256))
    check(y3, reference(X3, mu3, q_sigma_h, eps3))

    print("KERNEL_OK")
</pallas_src>

<mosaic_0001>
module attributes {stable_mosaic.version = 11 : i64} {
  func.func @_folded_matvec_kernel(%arg0: i32, %arg1: memref<128x4xf32, #tpu.memory_space<vmem>>, %arg2: memref<1024x128xf32, #tpu.memory_space<vmem>>, %arg3: memref<1024x4xf32, #tpu.memory_space<vmem>>) attributes {dimension_semantics = [#tpu.dimension_semantics<parallel>], iteration_bounds = array<i64: 1>, scalar_prefetch = 0 : i64, scratch_operands = 0 : i64, tpu.core_type = #tpu.core_type<tc>, window_params = [{pipeline_mode = #tpu.pipeline_mode<synchronous>, transform_indices = @transform_0, window_bounds = array<i64: 128, 4>}, {transform_indices = @transform_1, window_bounds = array<i64: 1024, 128>}, {transform_indices = @transform_2, window_bounds = array<i64: 1024, 4>}]} {
    %c0 = arith.constant 0 : index
    %c0_0 = arith.constant 0 : index
    %0 = vector.load %arg2[%c0, %c0_0] : memref<1024x128xf32, #tpu.memory_space<vmem>>, vector<1024x128xf32>
    %c0_1 = arith.constant 0 : index
    %c0_2 = arith.constant 0 : index
    %1 = vector.load %arg1[%c0_1, %c0_2] : memref<128x4xf32, #tpu.memory_space<vmem>>, vector<128x4xf32>
    %cst = arith.constant dense<0.000000e+00> : vector<1024x4xf32>
    %2 = tpu.matmul %0, %1, %cst {dimension_numbers = #tpu.dot_dimension_numbers<[1], [0], [0], [1], [0, 0, 1, 1], [], []>, precision = #tpu.contract_precision<fp32>} : vector<1024x128xf32>, vector<128x4xf32>, vector<1024x4xf32> -> vector<1024x4xf32>
    %c0_3 = arith.constant 0 : index
    %c0_4 = arith.constant 0 : index
    %3 = vector.load %arg3[%c0_3, %c0_4] : memref<1024x4xf32, #tpu.memory_space<vmem>>, vector<1024x4xf32>
    tpu.vector_store %arg3[%c0_3, %c0_4], %2 {strides = array<i32>} : memref<1024x4xf32, #tpu.memory_space<vmem>>, vector<1024x4xf32>,
    return
  }
  func.func @transform_0(%arg0: i32) -> (i32, i32) {
    %c0_i32 = arith.constant 0 : i32
    %c0_i32_0 = arith.constant 0 : i32
    %c0_i32_1 = arith.constant 0 : i32
    return %c0_i32, %c0_i32_0 : i32, i32
  }
  func.func @transform_1(%arg0: i32) -> (i32, i32) {
    %c0_i32 = arith.constant 0 : i32
    %c0_i32_0 = arith.constant 0 : i32
    return %arg0, %c0_i32 : i32, i32
  }
  func.func @transform_2(%arg0: i32) -> (i32, i32) {
    %c0_i32 = arith.constant 0 : i32
    %c0_i32_0 = arith.constant 0 : i32
    return %arg0, %c0_i32 : i32, i32
  }
}

</mosaic_0001>

<bundles_post_ra>
// kernel: _forward.1
= control target key start
LH: loop header
LB: loop body
LE: loop exit
PB: predicated region body
PF: predicated region fallthrough
CT: control target
= control target key end

     0   :  { %vm6257_vm0 = vcmask 31744   ;;  %s12565_s0 = inlined_call_operand.vmem [shape: f32[128,4], index: 0, kind: input, shape index: {}]   ;;  %s12566_s1 = inlined_call_operand.vmem [shape: f32[1024,128], index: 1, kind: input, shape index: {}]   ;;  %s12567_s2 = inlined_call_operand.vmem [shape: f32[1024,4], index: 2, kind: output, shape index: {}]  }
   0x1   :  { %v154_v0 = vld [vmem:[%s12565_s0 + $0x78] sm:$0xff]  ;;  %v153_v1 = vld [vmem:[%s12565_s0 + $0x70] sm:$0xff]  ;;  %v152_v2 = vld [vmem:[%s12565_s0 + $0x68] sm:$0xff] }
   0x2   :  { %v8622_v3 = vand.u32 4294901760, %v154_v0  ;;  %v8624_v4 = vand.u32 4294901760, %v153_v1  ;;  %v8626_v5 = vand.u32 4294901760, %v152_v2  ;;  %v151_v6 = vld [vmem:[%s12565_s0 + $0x60] sm:$0xff]  ;;  %v150_v7 = vld [vmem:[%s12565_s0 + $0x58] sm:$0xff]  ;;  %v149_v8 = vld [vmem:[%s12565_s0 + $0x50] sm:$0xff] }
   0x3   :  { %v8637_v9 = vand.u32 4294901760, %v151_v6  ;;  %v8639_v10 = vand.u32 4294901760, %v150_v7  ;;  %v8641_v11 = vand.u32 4294901760, %v149_v8  ;;  %v148_v12 = vld [vmem:[%s12565_s0 + $0x48] sm:$0xff]  ;;  %v147_v13 = vld [vmem:[%s12565_s0 + $0x40] sm:$0xff]  ;;  %v146_v18 = vld [vmem:[%s12565_s0 + $0x38] sm:$0xff] }
   0x4   :  { %7254 = vmatprep.subr.mxu0 %v8622_v3  ;;  %v8651_v14 = vsub.f32 %v154_v0, %v8622_v3  ;;  %v8654_v15 = vsub.f32 %v153_v1, %v8624_v4  ;;  %v8656_v16 = vand.u32 4294901760, %v148_v12  ;;  %v8659_v17 = vsub.f32 %v152_v2, %v8626_v5  ;;  %v145_v25 = vld [vmem:[%s12565_s0 + $0x30] sm:$0xff]  ;;  %v144_v35 = vld [vmem:[%s12565_s0 + $0x28] sm:$0xff]  ;;  %v143_v40 = vld [vmem:[%s12565_s0 + $0x20] sm:$0xff] }
   0x5   :  { %7255 = vmatpush3.msra.mxu0 %v8622_v3  ;;  %v8666_v19 = vsub.f32 %v151_v6, %v8637_v9  ;;  %v8669_v20 = vsub.f32 %v150_v7, %v8639_v10  ;;  %v8681_v24 = vand.u32 4294901760, %v147_v13  ;;  %v8690_v27 = vand.u32 4294901760, %v146_v18  ;;  %v142_v43 = vld [vmem:[%s12565_s0 + $0x18] sm:$0xff]  ;;  %v11_v48 = vld [vmem:[%s12566_s1] sm:$0xff]  ;;  %v12_v51 = vld [vmem:[%s12566_s1 + $0x8] sm:$0xff] }
   0x6   :  { %7256 = vmatprep.subr.mxu0 %v8624_v4  ;;  %v8673_v21 = vand.u32 4294901760, %v8651_v14  ;;  %v8676_v22 = vand.u32 4294901760, %v8654_v15  ;;  %v8679_v23 = vand.u32 4294901760, %v8659_v17  ;;  %v8696_v29 = vsub.f32 %v149_v8, %v8641_v11  ;;  %v141_v60 = vld [vmem:[%s12565_s0 + $0x10] sm:$0xff]  ;;  %v140_v7 = vld [vmem:[%s12565_s0 + $0x8] sm:$0xff] }
   0x7   :  { %7257 = vmatpush3.msra.mxu0 %v8624_v4  ;;  %v8688_v26 = vand.u32 4294901760, %v8666_v19  ;;  %v8693_v28 = vand.u32 4294901760, %v8669_v20  ;;  %v8706_v33 = vsub.f32 %v148_v12, %v8656_v16  ;;  %v8709_v34 = vand.u32 4294901760, %v145_v25  ;;  %v13_v1 = vld [vmem:[%s12566_s1 + $0x10] sm:$0xff] }
   0x8   :  { %13121 = vst [vmem:[#allocation2_spill] sm:$0xff] %v8673_v21  ;;  %13122 = vst [vmem:[#allocation3_spill] sm:$0xff] %v8676_v22  ;;  %7258 = vmatprep.subr.mxu0 %v8626_v5  ;;  %v1520_v30 = vsub.f32 %v8651_v14, %v8673_v21  ;;  %v1527_v31 = vsub.f32 %v8654_v15, %v8676_v22  ;;  %v1534_v32 = vsub.f32 %v8659_v17, %v8679_v23 }
   0x9   :  { %13123 = vst [vmem:[#allocation4_spill] sm:$0xff] %v8679_v23  ;;  %13124 = vst [vmem:[#allocation5_spill] sm:$0xff] %v8688_v26  ;;  %7259 = vmatpush3.msra.mxu0 %v8626_v5  ;;  %v1541_v38 = vsub.f32 %v8666_v19, %v8688_v26  ;;  %v8718_v39 = vand.u32 4294901760, %v8696_v29  ;;  %v1548_v41 = vsub.f32 %v8669_v20, %v8693_v28  ;;  %v8733_v45 = vand.u32 4294901760, %v144_v35 }
   0xa   :  { %13125 = vst [vmem:[#allocation6_spill] sm:$0xff] %v8693_v28  ;;  %7260 = vmatprep.subr.mxu0 %v8637_v9  ;;  %v1521_v36 = vand.u32 4294901760, %v1520_v30  ;;  %v1528_v37 = vand.u32 4294901760, %v1527_v31  ;;  %v8727_v42 = vsub.f32 %v147_v13, %v8681_v24  ;;  %v1535_v44 = vand.u32 4294901760, %v1534_v32  ;;  %v14_v13 = vld [vmem:[%s12566_s1 + $0x18] sm:$0xff] }
   0xb   :  { %13126 = vst [vmem:[#allocation7_spill] sm:$0xff] %v8718_v39  ;;  %7261 = vmatpush3.msra.mxu0 %v8637_v9  ;;  %13127 = vst [vmem:[#allocation8_spill] sm:$0xff] %v8733_v45  ;;  %v8736_v46 = vand.u32 4294901760, %v8706_v33  ;;  %v8739_v47 = vsub.f32 %v146_v18, %v8690_v27  ;;  %v8745_v49 = vand.u32 4294901760, %v143_v40  ;;  %v8748_v50 = vsub.f32 %v145_v25, %v8709_v34 }
   0xc   :  { %7262 = vmatprep.subr.mxu0 %v8639_v10  ;;  %7478 = vmatprep.subr.mxu1 %v1521_v36  ;;  %v1542_v52 = vand.u32 4294901760, %v1541_v38  ;;  %v1555_v53 = vsub.f32 %v8696_v29, %v8718_v39  ;;  %v8757_v54 = vand.u32 4294901760, %v8727_v42  ;;  %v8759_v55 = vand.u32 4294901760, %v142_v43 }
   0xd   :  { %13128 = vst [vmem:[#allocation9_spill] sm:$0xff] %v8736_v46  ;;  %7263 = vmatpush3.msra.mxu0 %v8639_v10  ;;  %7479 = vmatpush3.msra.mxu1 %v1521_v36  ;;  %13129 = vst [vmem:[#allocation10_spill] sm:$0xff] %v8745_v49  ;;  %v1549_v56 = vand.u32 4294901760, %v1548_v41  ;;  %v8763_v57 = vand.u32 4294901760, %v8739_v47  ;;  %v8765_v58 = vand.u32 4294901760, %v11_v48  ;;  %v1562_v59 = vsub.f32 %v8706_v33, %v8736_v46  ;;  %v139_v36 = vld [vmem:[%s12565_s0] sm:$0xff] }
   0xe   :  { %7264 = vmatprep.subr.mxu0 %v8641_v11  ;;  %7480 = vmatprep.subr.mxu1 %v1528_v37  ;;  %13130 = vst [vmem:[#allocation11_spill] sm:$0xff] %v8757_v54  ;;  %13131 = vst [vmem:[#allocation12_spill] sm:$0xff] %v8759_v55  ;;  %v8774_v61 = vand.u32 4294901760, %v8748_v50  ;;  %v8777_v62 = vsub.f32 %v144_v35, %v8733_v45  ;;  %v8779_v63 = vand.u32 4294901760, %v12_v51  ;;  %v1556_v2 = vand.u32 4294901760, %v1555_v53  ;;  %v16_v53 = vld [vmem:[%s12566_s1 + $0x28] sm:$0xff] }
   0xf   :  { %7265 = vmatpush3.msra.mxu0 %v8641_v11  ;;  %7481 = vmatpush3.msra.mxu1 %v1528_v37  ;;  %13132 = vst [vmem:[#allocation13_spill] sm:$0xff] %v8763_v57  ;;  %13133 = vst [vmem:[#allocation14_spill] sm:$0xff] %v8765_v58  ;;  %v8783_v0 = vsub.f32 %v143_v40, %v8745_v49  ;;  %v1569_v6 = vsub.f32 %v8727_v42, %v8757_v54  ;;  %v8806_v25 = vand.u32 4294901760, %v141_v60 }
  0x10   :  { %7266 = vmatprep.subr.mxu0 %v8656_v16  ;;  %7482 = vmatprep.subr.mxu1 %v1535_v44  ;;  %13134 = vst [vmem:[#allocation15_spill] sm:$0xff] %v8774_v61  ;;  %13135 = vst [vmem:[#allocation16_spill] sm:$0xff] %v8779_v63  ;;  %v8795_v8 = vsub.f32 %v11_v48, %v8765_v58  ;;  %v8798_v12 = vsub.f32 %v142_v43, %v8759_v55  ;;  %v1563_v31 = vand.u32 4294901760, %v1562_v59  ;;  %v15_v43 = vld [vmem:[%s12566_s1 + $0x20] sm:$0xff] }
  0x11   :  { %7267 = vmatpush3.msra.mxu0 %v8656_v16  ;;  %7483 = vmatpush3.msra.mxu1 %v1535_v44  ;;  %v1576_v18 = vsub.f32 %v8739_v47, %v8763_v57  ;;  %13137 = vst [vmem:[#allocation18_spill] sm:$0xff] %v8806_v25  ;;  %v8809_v30 = vsub.f32 %v12_v51, %v8779_v63  ;;  %v8815_v35 = vand.u32 4294901760, %v8777_v62  ;;  %v8820_v37 = vand.u32 4294901760, %v13_v1 }
  0x12   :  { %7268 = vmatprep.subr.mxu0 %v8681_v24  ;;  %7484 = vmatprep.subr.mxu1 %v1542_v52  ;;  %13136 = vst [vmem:[#allocation17_spill] sm:$0xff] %v8795_v8  ;;  %v1583_v32 = vsub.f32 %v8748_v50, %v8774_v61  ;;  %v8823_v38 = vand.u32 4294901760, %v140_v7  ;;  %v8826_v40 = vand.u32 4294901760, %v8783_v0  ;;  %v8828_v41 = vand.u32 4294901760, %v14_v13 }
  0x13   :  { %7269 = vmatpush3.msra.mxu0 %v8681_v24  ;;  %7485 = vmatpush3.msra.mxu1 %v1542_v52  ;;  %13138 = vst [vmem:[#allocation19_spill] sm:$0xff] %v8809_v30  ;;  %13139 = vst [vmem:[#allocation20_spill] sm:$0xff] %v8815_v35  ;;  %v1570_v44 = vand.u32 4294901760, %v1569_v6  ;;  %v8836_v51 = vand.u32 4294901760, %v8798_v12  ;;  %v8839_v52 = vsub.f32 %v13_v1, %v8820_v37  ;;  %v8845_v59 = vand.u32 4294901760, %v139_v36  ;;  %v17_v1 = vld [vmem:[%s12566_s1 + $0x30] sm:$0xff] }
  0x14   :  { %7270 = vmatprep.subr.mxu0 %v8690_v27  ;;  %7486 = vmatprep.subr.mxu1 %v1549_v56  ;;  %13140 = vst [vmem:[#allocation21_spill] sm:$0xff] %v8820_v37  ;;  %13141 = vst [vmem:[#allocation22_spill] sm:$0xff] %v8823_v38  ;;  %v8849_v48 = vsub.f32 %v141_v60, %v8806_v25  ;;  %v1584_v61 = vand.u32 4294901760, %v1583_v32  ;;  %v1590_v57 = vsub.f32 %v8777_v62, %v8815_v35 }
  0x15   :  { %7271 = vmatpush3.msra.mxu0 %v8690_v27  ;;  %7487 = vmatpush3.msra.mxu1 %v1549_v56  ;;  %13142 = vst [vmem:[#allocation23_spill] sm:$0xff] %v8826_v40  ;;  %13143 = vst [vmem:[#allocation24_spill] sm:$0xff] %v8828_v41  ;;  %v1577_v56 = vand.u32 4294901760, %v1576_v18  ;;  %v8860_v18 = vand.u32 4294901760, %v15_v43  ;;  %v1597_v60 = vsub.f32 %v8783_v0, %v8826_v40  ;;  %v8869_v32 = vand.u32 4294901760, %v16_v53 }
  0x16   :  { %7272 = vmatprep.subr.mxu0 %v8709_v34  ;;  %7488 = vmatprep.subr.mxu1 %v1556_v2  ;;  %13144 = vst [vmem:[#allocation25_spill] sm:$0xff] %v8836_v51  ;;  %13145 = vst [vmem:[#allocation26_spill] sm:$0xff] %v8839_v52  ;;  %v8867_v54 = vsub.f32 %v140_v7, %v8823_v38  ;;  %v13152_v35 = vand.u32 4294901760, %v8795_v8  ;;  %v1604_v40 = vsub.f32 %v8798_v12, %v8836_v51 }
  0x17   :  { %7273 = vmatpush3.msra.mxu0 %v8709_v34  ;;  %7489 = vmatpush3.msra.mxu1 %v1556_v2  ;;  %13146 = vst [vmem:[#allocation27_spill] sm:$0xff] %v8845_v59  ;;  %13147 = vst [vmem:[#allocation28_spill] sm:$0xff] %v8849_v48  ;;  %v8858_v2 = vsub.f32 %v14_v13, %v8828_v41  ;;  %v18_v13 = vld [vmem:[%s12566_s1 + $0x38] sm:$0xff]  ;;  %v8881_v6 = vsub.f32 %v15_v43, %v8860_v18  ;;  %v8883_v7 = vand.u32 4294901760, %v17_v1  ;;  %v19_v43 = vld [vmem:[%s12566_s1 + $0x40] sm:$0xff] }
  0x18   :  { %7274 = vmatprep.subr.mxu0 %v8733_v45  ;;  %7490 = vmatprep.subr.mxu1 %v1563_v31  ;;  %13149 = vst [vmem:[#allocation30_spill] sm:$0xff] %v8860_v18  ;;  %13150 = vst [vmem:[#allocation31_spill] sm:$0xff] %v8867_v54  ;;  %v13155_v46 = vand.u32 4294901760, %v8809_v30  ;;  %v8890_v28 = vand.u32 4294901760, %v8849_v48  ;;  %v1591_v51 = vand.u32 4294901760, %v1590_v57  ;;  %v8901_v26 = vsub.f32 %v16_v53, %v8869_v32 }
  0x19   :  { %13148 = vst [vmem:[#allocation29_spill] sm:$0xff] %v8858_v2  ;;  %7275 = vmatpush3.msra.mxu0 %v8733_v45  ;;  %7491 = vmatpush3.msra.mxu1 %v1563_v31  ;;  %13151 = vst [vmem:[#allocation32_spill] sm:$0xff] %v8869_v32  ;;  %v239_v31 = vsub.f32 %v8795_v8, %v13152_v35  ;;  %v8893_v35 = vsub.f32 %v139_v36, %v8845_v59  ;;  %v20_v36 = vld [vmem:[%s12566_s1 + $0x48] sm:$0xff]  ;;  %v1598_v23 = vand.u32 4294901760, %v1597_v60 }
  0x1a   :  { %7276 = vmatprep.subr.mxu0 %v8745_v49  ;;  %7492 = vmatprep.subr.mxu1 %v1570_v44  ;;  %13153 = vst [vmem:[#allocation33_spill] sm:$0xff] %v8881_v6  ;;  %13154 = vst [vmem:[#allocation34_spill] sm:$0xff] %v8883_v7  ;;  %v249_v39 = vsub.f32 %v8809_v30, %v13155_v46  ;;  %v8903_v46 = vand.u32 4294901760, %v18_v13  ;;  %v13158_v22 = vand.u32 4294901760, %v8839_v52  ;;  %v8913_v57 = vand.u32 4294901760, %v8867_v54 }
  0x1b   :  { %7277 = vmatpush3.msra.mxu0 %v8745_v49  ;;  %7493 = vmatpush3.msra.mxu1 %v1570_v44  ;;  %13156 = vst [vmem:[#allocation35_spill] sm:$0xff] %v8890_v28  ;;  %v21_v44 = vld [vmem:[%s12566_s1 + $0x50] sm:$0xff]  ;;  %v240_v8 = vand.u32 4294901760, %v239_v31  ;;  %v1605_v21 = vand.u32 4294901760, %v1604_v40  ;;  %v8923_v60 = vand.u32 4294901760, %v19_v43  ;;  %v1611_v53 = vsub.f32 %v8849_v48, %v8890_v28  ;;  %v22_v28 = vld [vmem:[%s12566_s1 + $0x58] sm:$0xff] }
  0x1c   :  { %7278 = vmatprep.subr.mxu0 %v8759_v55  ;;  %7494 = vmatprep.subr.mxu1 %v1577_v56  ;;  %13157 = vst [vmem:[#allocation36_spill] sm:$0xff] %v8903_v46  ;;  %v259_v30 = vsub.f32 %v8839_v52, %v13158_v22  ;;  %13159 = vst [vmem:[#allocation37_spill] sm:$0xff] %v8913_v57  ;;  %v250_v22 = vand.u32 4294901760, %v249_v39  ;;  %v8929_v52 = vand.u32 4294901760, %v8893_v35  ;;  %v13163_v40 = vand.u32 4294901760, %v8858_v2 }
  0x1d   :  { %7279 = vmatpush3.msra.mxu0 %v8759_v55  ;;  %7495 = vmatpush3.msra.mxu1 %v1577_v56  ;;  %v8921_v56 = vsub.f32 %v17_v1, %v8883_v7  ;;  %13160 = vst [vmem:[#allocation38_spill] sm:$0xff] %v8923_v60  ;;  %v8931_v55 = vand.u32 4294901760, %v20_v36  ;;  %v8941_v39 = vand.u32 4294901760, %v21_v44  ;;  %v1618_v48 = vsub.f32 %v8867_v54, %v8913_v57 }
  0x1e   :  { %7280 = vmatprep.subr.mxu0 %v8806_v25  ;;  %7496 = vmatprep.subr.mxu1 %v1584_v61  ;;  %13161 = vst [vmem:[#allocation39_spill] sm:$0xff] %v8929_v52  ;;  %v269_v1 = vsub.f32 %v8858_v2, %v13163_v40  ;;  %v13165_v40 = vand.u32 4294901760, %v8881_v6  ;;  %v1625_v57 = vsub.f32 %v8893_v35, %v8929_v52  ;;  %v13167_v2 = vand.u32 4294901760, %v8901_v26 }
  0x1f   :  { %7281 = vmatpush3.msra.mxu0 %v8806_v25  ;;  %7497 = vmatpush3.msra.mxu1 %v1584_v61  ;;  %13162 = vst [vmem:[#allocation40_spill] sm:$0xff] %v8931_v55  ;;  %v8939_v61 = vsub.f32 %v18_v13, %v8903_v46  ;;  %13164 = vst [vmem:[#allocation41_spill] sm:$0xff] %v8941_v39  ;;  %v260_v25 = vand.u32 4294901760, %v259_v30  ;;  %v8953_v13 = vsub.f32 %v19_v43, %v8923_v60 }
  0x20   :  { %7282 = vmatprep.subr.mxu0 %v8823_v38  ;;  %7498 = vmatprep.subr.mxu1 %v1591_v51  ;;  %v279_v31 = vsub.f32 %v8881_v6, %v13165_v40  ;;  %v1612_v30 = vand.u32 4294901760, %v1611_v53  ;;  %v8964_v40 = vsub.f32 %v20_v36, %v8931_v55  ;;  %v8966_v43 = vand.u32 4294901760, %v22_v28 }
  0x21   :  { %7283 = vmatpush3.msra.mxu0 %v8823_v38  ;;  %7499 = vmatpush3.msra.mxu1 %v1591_v51  ;;  %v23_v51 = vld [vmem:[%s12566_s1 + $0x60] sm:$0xff]  ;;  %v270_v6 = vand.u32 4294901760, %v269_v1  ;;  %v289_v38 = vsub.f32 %v8901_v26, %v13167_v2  ;;  %v12622_v54 = vand.u32 4294901760, %v8939_v61  ;;  %v1619_v53 = vand.u32 4294901760, %v1618_v48 }
  0x22   :  { %7284 = vmatprep.subr.mxu0 %v8845_v59  ;;  %7500 = vmatprep.subr.mxu1 %v1598_v23  ;;  %13166 = vst [vmem:[#allocation42_spill] sm:$0xff] %v8966_v43  ;;  %v280_v52 = vand.u32 4294901760, %v279_v31  ;;  %v13170_v2 = vand.u32 4294901760, %v8921_v56  ;;  %v1626_v48 = vand.u32 4294901760, %v1625_v57  ;;  %v8991_v1 = vsub.f32 %v22_v28, %v8966_v43 }
  0x23   :  { %7285 = vmatpush3.msra.mxu0 %v8845_v59  ;;  %7286 = vmatprep.mubr.f32.mxu0 %v240_v8  ;;  %v8973_v8 = vsub.f32 %v21_v44, %v8941_v39  ;;  %v8976_v59 = vand.u32 4294901760, %v23_v51  ;;  %v309_v31 = vsub.f32 %v8939_v61, %v12622_v54  ;;  %v13172_v57 = vand.u32 4294901760, %v8953_v13 }
  0x24   :  { %7501 = vmatpush3.msra.mxu1 %v1598_v23  ;;  %7287 = vmatmul.mubr.f32.vlgmr.msra.gmra.mxu0 %v250_v22  ;;  %v24_v23 = vld [vmem:[%s12566_s1 + $0x68] sm:$0xff]  ;;  %v299_v44 = vsub.f32 %v8921_v56, %v13170_v2 }
  0x25   :  { %13168 = vst [vmem:[#allocation43_spill] sm:$0xff] %v8973_v8  ;;  %7502 = vmatprep.subr.mxu1 %v1605_v21  ;;  %7289 = vmatprep.mubr.f32.mxu0 %v260_v25  ;;  %13169 = vst [vmem:[#allocation44_spill] sm:$0xff] %v8976_v59  ;;  %v25_v25 = vld [vmem:[%s12566_s1 + $0x70] sm:$0xff]  ;;  %v8997_v36 = vand.u32 4294901760, %v24_v23  ;;  %v319_v22 = vsub.f32 %v8953_v13, %v13172_v57  ;;  %v9003_v28 = vsub.f32 %v23_v51, %v8976_v59 }
  0x26   :  { %7503 = vmatpush3.msra.mxu1 %v1605_v21  ;;  %7702 = vmatprep.subr.mxu0 %v8651_v14  ;;  %v290_v21 = vand.u32 4294901760, %v289_v38  ;;  %v26_v38 = vld [vmem:[%s12566_s1 + $0x78] sm:$0xff]  ;;  %v13175_v57 = vand.u32 4294901760, %v8964_v40  ;;  %v310_v2 = vand.u32 4294901760, %v309_v31  ;;  %v28_v31 = vld [vmem:[%s12566_s1 + $0x88] sm:$0xff] }
  0x27   :  { %7504 = vmatprep.subr.mxu1 %v1612_v30  ;;  %7510 = vmatprep.mubr.f32.mxu1 %v8765_v58  ;;  %13171 = vst [vmem:[#allocation45_spill] sm:$0xff] %v8997_v36  ;;  %13173 = vst [vmem:[#allocation46_spill] sm:$0xff] %v9003_v28  ;;  %v9025_v58 = vand.u32 4294901760, %v26_v38 }
  0x28   :  { %7505 = vmatpush3.msra.mxu1 %v1612_v30  ;;  %7290 = vmatmul.mubr.f32.gmra.mxu0 %v270_v6  ;;  %v9005_v30 = vand.u32 4294901760, %v25_v25  ;;  %v300_v6 = vand.u32 4294901760, %v299_v44  ;;  %v329_v51 = vsub.f32 %v8964_v40, %v13175_v57  ;;  %v9023_v44 = vsub.f32 %v24_v23, %v8997_v36  ;;  %v29_v23 = vld [vmem:[%s12566_s1 + $0x90] sm:$0xff] }
  0x29   :  { %7506 = vmatprep.subr.mxu1 %v1619_v53  ;;  %7292 = vmatprep.mubr.f32.mxu0 %v280_v52  ;;  %v27_v52 = vld [vmem:[%s12566_s1 + $0x80] sm:$0xff]  ;;  %13178 = vst [vmem:[#allocation49_spill] sm:$0xff] %v9025_v58  ;;  %v320_v57 = vand.u32 4294901760, %v319_v22 }
  0x2a   :  { %13174 = vst [vmem:[#allocation47_spill] sm:$0xff] %v9005_v30  ;;  %7507 = vmatpush3.msra.mxu1 %v1619_v53  ;;  %7703 = vmatpush3.msra.mxu0 %v8651_v14  ;;  %v13176_v53 = vand.u32 4294901760, %v8973_v8  ;;  %13177 = vst [vmem:[#allocation48_spill] sm:$0xff] %v9023_v44  ;;  %v330_v22 = vand.u32 4294901760, %v329_v51  ;;  %v30_v51 = vld [vmem:[%s12566_s1 + $0x98] sm:$0xff] }
  0x2b   :  { %7508 = vmatprep.subr.mxu1 %v1626_v48  ;;  %7704 = vmatprep.subr.mxu0 %v8654_v15 }
  0x2c   :  { %7509 = vmatpush3.msra.mxu1 %v1626_v48  ;;  %7293 = vmatmul.mubr.f32.gmra.mxu0 %v290_v21  ;;  %v339_v14 = vsub.f32 %v8973_v8, %v13176_v53  ;;  %v9031_v48 = vsub.f32 %v25_v25, %v9005_v30  ;;  %v9033_v21 = vand.u32 4294901760, %v27_v52  ;;  %v13181_v53 = vand.u32 4294901760, %v8991_v1 }
  0x2d   :  { %7511 = vmatmul.mubr.f32.vlgmr.msra.gmra.mxu1 %v8779_v63  ;;  %7926 = vmatprep.subr.mxu1 %v8622_v3  ;;  %v9050_v63 = vsub.f32 %v26_v38, %v9025_v58  ;;  %v9052_v8 = vand.u32 4294901760, %v28_v31 }
  0x2e   :  { %13179 = vst [vmem:[#allocation50_spill] sm:$0xff] %v9031_v48  ;;  %13180 = vst [vmem:[#allocation51_spill] sm:$0xff] %v9033_v21  ;;  %7927 = vmatpush3.msra.mxu1 %v8622_v3  ;;  %7295 = vmatprep.mubr.f32.mxu0 %v300_v6  ;;  %v349_v25 = vsub.f32 %v8991_v1, %v13181_v53  ;;  %v9054_v6 = vand.u32 4294901760, %v29_v23  ;;  %v9065_v38 = vsub.f32 %v27_v52, %v9033_v21 }
  0x2f   :  { %7513 = vmatprep.mubr.f32.mxu1 %v8820_v37  ;;  %7705 = vmatpush3.msra.mxu0 %v8654_v15  ;;  %13182 = vst [vmem:[#allocation52_spill] sm:$0xff] %v9052_v8  ;;  %v340_v15 = vand.u32 4294901760, %v339_v14  ;;  %v31_v37 = vld [vmem:[%s12566_s1 + $0xa0] sm:$0xff]  ;;  %v13186_v14 = vand.u32 4294901760, %v9023_v44  ;;  %v9081_v54 = vsub.f32 %v28_v31, %v9052_v8 }
  0x30   :  { %7296 = vmatmul.mubr.f32.gmra.mxu0 %v310_v2  ;;  %7928 = vmatprep.subr.mxu1 %v8624_v4  ;;  %13183 = vst [vmem:[#allocation53_spill] sm:$0xff] %v9054_v6  ;;  %v13184_v2 = vand.u32 4294901760, %v9003_v28 }
  0x31   :  { %7514 = vmatmul.mubr.f32.gmra.mxu1 %v8828_v41  ;;  %7298 = vmatprep.mubr.f32.mxu0 %v320_v57  ;;  %v350_v41 = vand.u32 4294901760, %v349_v25  ;;  %v9072_v57 = vand.u32 4294901760, %v30_v51  ;;  %v369_v52 = vsub.f32 %v9023_v44, %v13186_v14  ;;  %v32_v25 = vld [vmem:[%s12566_s1 + $0xa8] sm:$0xff]  ;;  %v13188_v14 = vand.u32 4294901760, %v9031_v48 }
  0x32   :  { %v359_v53 = vsub.f32 %v9003_v28, %v13184_v2  ;;  %7516 = vmatprep.mubr.f32.mxu1 %v8860_v18  ;;  %7929 = vmatpush3.msra.mxu1 %v8624_v4  ;;  %v9084_v18 = vsub.f32 %v29_v23, %v9054_v6  ;;  %v9095_v44 = vand.u32 4294901760, %v31_v37  ;;  %v33_v23 = vld [vmem:[%s12566_s1 + $0xb0] sm:$0xff] }
  0x33   :  { %13185 = vst [vmem:[#allocation54_spill] sm:$0xff] %v9072_v57  ;;  %7706 = vmatprep.subr.mxu0 %v8659_v17  ;;  %7930 = vmatprep.subr.mxu1 %v8626_v5  ;;  %v379_v2 = vsub.f32 %v9031_v48, %v13188_v14  ;;  %v13192_v14 = vand.u32 4294901760, %v9050_v63  ;;  %v13193_v48 = vand.u32 4294901760, %v9065_v38 }
  0x34   :  { %7299 = vmatmul.mubr.f32.gmra.mxu0 %v330_v22  ;;  %13187 = vst [vmem:[#allocation55_spill] sm:$0xff] %v9084_v18  ;;  %7931 = vmatpush3.msra.mxu1 %v8626_v5  ;;  %v360_v22 = vand.u32 4294901760, %v359_v53  ;;  %13189 = vst [vmem:[#allocation56_spill] sm:$0xff] %v9095_v44  ;;  %v370_v53 = vand.u32 4294901760, %v369_v52  ;;  %v9122_v52 = vand.u32 4294901760, %v33_v23 }
  0x35   :  { %7517 = vmatmul.mubr.f32.gmra.mxu1 %v8869_v32  ;;  %7301 = vmatprep.mubr.f32.mxu0 %v340_v15  ;;  %v9103_v32 = vsub.f32 %v30_v51, %v9072_v57  ;;  %v9105_v15 = vand.u32 4294901760, %v32_v25  ;;  %v389_v31 = vsub.f32 %v9050_v63, %v13192_v14  ;;  %v380_v51 = vand.u32 4294901760, %v379_v2  ;;  %v34_v14 = vld [vmem:[%s12566_s1 + $0xb8] sm:$0xff] }
  0x36   :  { %7519 = vmatprep.mubr.f32.mxu1 %v8883_v7  ;;  %7707 = vmatpush3.msra.mxu0 %v8659_v17  ;;  %v12649_v17 = vand.u32 4294901760, %v9081_v54  ;;  %v399_v28 = vsub.f32 %v9065_v38, %v13193_v48  ;;  %13194 = vst [vmem:[#allocation59_spill] sm:$0xff] %v9122_v52 }
  0x37   :  { %13190 = vst [vmem:[#allocation57_spill] sm:$0xff] %v9103_v32  ;;  %13191 = vst [vmem:[#allocation58_spill] sm:$0xff] %v9105_v15  ;;  %7708 = vmatprep.subr.mxu0 %v8666_v19  ;;  %7932 = vmatprep.subr.mxu1 %v8637_v9  ;;  %v9134_v48 = vsub.f32 %v32_v25, %v9105_v15 }
  0x38   :  { %7302 = vmatmul.mubr.f32.gmra.mxu0 %v350_v41  ;;  %7933 = vmatpush3.msra.mxu1 %v8637_v9  ;;  %v9120_v41 = vsub.f32 %v31_v37, %v9095_v44  ;;  %v390_v37 = vand.u32 4294901760, %v389_v31  ;;  %v409_v7 = vsub.f32 %v9081_v54, %v12649_v17  ;;  %v400_v25 = vand.u32 4294901760, %v399_v28  ;;  %v36_v17 = vld [vmem:[%s12566_s1 + $0xc8] sm:$0xff] }
  0x39   :  { %7520 = vmatmul.mubr.f32.gmra.mxu1 %v8903_v46  ;;  %7304 = vmatprep.mubr.f32.mxu0 %v360_v22  ;;  %v35_v22 = vld [vmem:[%s12566_s1 + $0xc0] sm:$0xff]  ;;  %13195 = vst [vmem:[#allocation60_spill] sm:$0xff] %v9134_v48  ;;  %v9150_v31 = vsub.f32 %v33_v23, %v9122_v52  ;;  %v13200_v28 = vand.u32 4294901760, %v9103_v32 }
  0x3a   :  { %7522 = vmatprep.mubr.f32.mxu1 %v8923_v60  ;;  %7709 = vmatpush3.msra.mxu0 %v8666_v19  ;;  %v13196_v60 = vand.u32 4294901760, %v9084_v18  ;;  %v9144_v19 = vand.u32 4294901760, %v34_v14  ;;  %v410_v2 = vand.u32 4294901760, %v409_v7 }
  0x3b   :  { %7710 = vmatprep.subr.mxu0 %v8669_v20  ;;  %7934 = vmatprep.subr.mxu1 %v8639_v10  ;;  %13198 = vst [vmem:[#allocation62_spill] sm:$0xff] %v9150_v31 }
  0x3c   :  { %7305 = vmatmul.mubr.f32.gmra.mxu0 %v370_v53  ;;  %v419_v46 = vsub.f32 %v9084_v18, %v13196_v60  ;;  %13197 = vst [vmem:[#allocation61_spill] sm:$0xff] %v9144_v19  ;;  %7935 = vmatpush3.msra.mxu1 %v8639_v10  ;;  %v9152_v53 = vand.u32 4294901760, %v35_v22  ;;  %v37_v60 = vld [vmem:[%s12566_s1 + $0xd0] sm:$0xff]  ;;  %v9171_v18 = vand.u32 4294901760, %v36_v17 }
  0x3d   :  { %7523 = vmatmul.mubr.f32.gmra.mxu1 %v8931_v55  ;;  %7307 = vmatprep.mubr.f32.mxu0 %v380_v51  ;;  %v429_v51 = vsub.f32 %v9103_v32, %v13200_v28  ;;  %v9169_v55 = vsub.f32 %v34_v14, %v9144_v19  ;;  %v39_v32 = vld [vmem:[%s12566_s1 + $0xe0] sm:$0xff] }
  0x3e   :  { %13199 = vst [vmem:[#allocation63_spill] sm:$0xff] %v9152_v53  ;;  %7525 = vmatprep.mubr.f32.mxu1 %v8941_v39  ;;  %7711 = vmatpush3.msra.mxu0 %v8669_v20  ;;  %13202 = vst [vmem:[#allocation65_spill] sm:$0xff] %v9171_v18  ;;  %v9173_v39 = vand.u32 4294901760, %v37_v60  ;;  %v38_v20 = vld [vmem:[%s12566_s1 + $0xd8] sm:$0xff]  ;;  %v420_v28 = vand.u32 4294901760, %v419_v46  ;;  %v9185_v23 = vsub.f32 %v35_v22, %v9152_v53 }
  0x3f   :  { %7712 = vmatprep.subr.mxu0 %v8696_v29  ;;  %7936 = vmatprep.subr.mxu1 %v8641_v11  ;;  %13201 = vst [vmem:[#allocation64_spill] sm:$0xff] %v9169_v55  ;;  %v430_v22 = vand.u32 4294901760, %v429_v51  ;;  %v9201_v14 = vsub.f32 %v36_v17, %v9171_v18  ;;  %v9212_v51 = vand.u32 4294901760, %v39_v32  ;;  %v40_v17 = vld [vmem:[%s12566_s1 + $0xe8] sm:$0xff] }
  0x40   :  { %7308 = vmatmul.mubr.f32.gmra.mxu0 %v390_v37  ;;  %13203 = vst [vmem:[#allocation66_spill] sm:$0xff] %v9173_v39  ;;  %7937 = vmatpush3.msra.mxu1 %v8641_v11  ;;  %v13204_v37 = vand.u32 4294901760, %v9120_v41  ;;  %13205 = vst [vmem:[#allocation67_spill] sm:$0xff] %v9185_v23 }
  0x41   :  { %7526 = vmatmul.mubr.f32.gmra.mxu1 %v8966_v43  ;;  %7310 = vmatprep.mubr.f32.mxu0 %v400_v25  ;;  %v13206_v25 = vand.u32 4294901760, %v9134_v48  ;;  %v9195_v43 = vand.u32 4294901760, %v38_v20  ;;  %13208 = vst [vmem:[#allocation69_spill] sm:$0xff] %v9201_v14  ;;  %13211 = vst [vmem:[#allocation71_spill] sm:$0xff] %v9212_v51 }
  0x42   :  { %v439_v7 = vsub.f32 %v9120_v41, %v13204_v37  ;;  %7528 = vmatprep.mubr.f32.mxu1 %v8976_v59  ;;  %7713 = vmatpush3.msra.mxu0 %v8696_v29  ;;  %v12668_v37 = vand.u32 4294901760, %v9169_v55  ;;  %v9204_v59 = vsub.f32 %v37_v60, %v9173_v39  ;;  %v41_v60 = vld [vmem:[%s12566_s1 + $0xf0] sm:$0xff] }
  0x43   :  { %v449_v46 = vsub.f32 %v9134_v48, %v13206_v25  ;;  %13207 = vst [vmem:[#allocation68_spill] sm:$0xff] %v9195_v43  ;;  %7714 = vmatprep.subr.mxu0 %v8706_v33  ;;  %7938 = vmatprep.subr.mxu1 %v8656_v16  ;;  %v13210_v25 = vand.u32 4294901760, %v9150_v31 }
  0x44   :  { %7311 = vmatmul.mubr.f32.gmra.mxu0 %v410_v2  ;;  %13209 = vst [vmem:[#allocation70_spill] sm:$0xff] %v9204_v59  ;;  %7939 = vmatpush3.msra.mxu1 %v8656_v16  ;;  %v440_v29 = vand.u32 4294901760, %v439_v7  ;;  %v9223_v7 = vsub.f32 %v38_v20, %v9195_v43  ;;  %v43_v2 = vld [vmem:[%s12566_s1 + $0x100] sm:$0xff] }
  0x45   :  { %7529 = vmatmul.mubr.f32.gmra.mxu1 %v8997_v36  ;;  %7313 = vmatprep.mubr.f32.mxu0 %v420_v28  ;;  %v459_v48 = vsub.f32 %v9150_v31, %v13210_v25  ;;  %v450_v28 = vand.u32 4294901760, %v449_v46  ;;  %v469_v25 = vsub.f32 %v9169_v55, %v12668_v37  ;;  %v9232_v36 = vand.u32 4294901760, %v40_v17 }
  0x46   :  { %7531 = vmatprep.mubr.f32.mxu1 %v9005_v30  ;;  %7715 = vmatpush3.msra.mxu0 %v8706_v33  ;;  %13212 = vst [vmem:[#allocation72_spill] sm:$0xff] %v9223_v7  ;;  %v42_v33 = vld [vmem:[%s12566_s1 + $0xf8] sm:$0xff]  ;;  %v13214_v46 = vand.u32 4294901760, %v9185_v23  ;;  %v9243_v37 = vsub.f32 %v39_v32, %v9212_v51  ;;  %v9245_v30 = vand.u32 4294901760, %v41_v60  ;;  %v9272_v55 = vand.u32 4294901760, %v43_v2 }
  0x47   :  { %7716 = vmatprep.subr.mxu0 %v8727_v42  ;;  %7940 = vmatprep.subr.mxu1 %v8681_v24  ;;  %13213 = vst [vmem:[#allocation73_spill] sm:$0xff] %v9232_v36  ;;  %v460_v20 = vand.u32 4294901760, %v459_v48  ;;  %v9253_v48 = vand.u32 4294901760, %v42_v33  ;;  %v470_v32 = vand.u32 4294901760, %v469_v25 }
  0x48   :  { %7314 = vmatmul.mubr.f32.gmra.mxu0 %v430_v22  ;;  %7941 = vmatpush3.msra.mxu1 %v8681_v24  ;;  %v479_v22 = vsub.f32 %v9185_v23, %v13214_v46  ;;  %13215 = vst [vmem:[#allocation74_spill] sm:$0xff] %v9243_v37  ;;  %13216 = vst [vmem:[#allocation75_spill] sm:$0xff] %v9245_v30  ;;  %v13218_v46 = vand.u32 4294901760, %v9201_v14  ;;  %v9270_v25 = vsub.f32 %v41_v60, %v9245_v30 }
  0x49   :  { %7532 = vmatmul.mubr.f32.gmra.mxu1 %v9025_v58  ;;  %7316 = vmatprep.mubr.f32.mxu0 %v440_v29  ;;  %13217 = vst [vmem:[#allocation76_spill] sm:$0xff] %v9253_v48  ;;  %v13219_v58 = vand.u32 4294901760, %v9204_v59  ;;  %13222 = vst [vmem:[#allocation79_spill] sm:$0xff] %v9272_v55  ;;  %v9286_v60 = vsub.f32 %v42_v33, %v9253_v48 }
  0x4a   :  { %7534 = vmatprep.mubr.f32.mxu1 %v9033_v21  ;;  %7717 = vmatpush3.msra.mxu0 %v8727_v42  ;;  %v489_v21 = vsub.f32 %v9201_v14, %v13218_v46  ;;  %v9264_v42 = vsub.f32 %v40_v17, %v9232_v36  ;;  %v480_v29 = vand.u32 4294901760, %v479_v22  ;;  %13221 = vst [vmem:[#allocation78_spill] sm:$0xff] %v9270_v25  ;;  %v45_v17 = vld [vmem:[%s12566_s1 + $0x110] sm:$0xff] }
  0x4b   :  { %7718 = vmatprep.subr.mxu0 %v8739_v47  ;;  %7942 = vmatprep.subr.mxu1 %v8690_v27  ;;  %v499_v23 = vsub.f32 %v9204_v59, %v13219_v58  ;;  %v44_v58 = vld [vmem:[%s12566_s1 + $0x108] sm:$0xff]  ;;  %13224 = vst [vmem:[#allocation80_spill] sm:$0xff] %v9286_v60 }
  0x4c   :  { %7317 = vmatmul.mubr.f32.gmra.mxu0 %v450_v28  ;;  %13220 = vst [vmem:[#allocation77_spill] sm:$0xff] %v9264_v42  ;;  %7943 = vmatpush3.msra.mxu1 %v8690_v27  ;;  %v490_v46 = vand.u32 4294901760, %v489_v21  ;;  %v9305_v28 = vsub.f32 %v43_v2, %v9272_v55  ;;  %v13230_v2 = vand.u32 4294901760, %v9264_v42 }
  0x4d   :  { %7535 = vmatmul.mubr.f32.gmra.mxu1 %v9052_v8  ;;  %7319 = vmatprep.mubr.f32.mxu0 %v460_v20  ;;  %v13223_v20 = vand.u32 4294901760, %v9223_v7  ;;  %v9291_v8 = vand.u32 4294901760, %v44_v58  ;;  %v500_v33 = vand.u32 4294901760, %v499_v23 }
  0x4e   :  { %7537 = vmatprep.mubr.f32.mxu1 %v9054_v6  ;;  %7719 = vmatpush3.msra.mxu0 %v8739_v47  ;;  %v9293_v6 = vand.u32 4294901760, %v45_v17  ;;  %v46_v47 = vld [vmem:[%s12566_s1 + $0x118] sm:$0xff]  ;;  %13228 = vst [vmem:[#allocation83_spill] sm:$0xff] %v9305_v28 }
  0x4f   :  { %v509_v22 = vsub.f32 %v9223_v7, %v13223_v20  ;;  %7720 = vmatprep.subr.mxu0 %v8748_v50  ;;  %7944 = vmatprep.subr.mxu1 %v8709_v34  ;;  %13225 = vst [vmem:[#allocation81_spill] sm:$0xff] %v9291_v8  ;;  %v13227_v20 = vand.u32 4294901760, %v9243_v37  ;;  %v47_v7 = vld [vmem:[%s12566_s1 + $0x120] sm:$0xff]  ;;  %v9313_v23 = vand.u32 4294901760, %v46_v47 }
  0x50   :  { %7320 = vmatmul.mubr.f32.gmra.mxu0 %v470_v32  ;;  %13226 = vst [vmem:[#allocation82_spill] sm:$0xff] %v9293_v6  ;;  %7945 = vmatpush3.msra.mxu1 %v8709_v34  ;;  %v529_v32 = vsub.f32 %v9264_v42, %v13230_v2 }
  0x51   :  { %7538 = vmatmul.mubr.f32.gmra.mxu1 %v9072_v57  ;;  %7322 = vmatprep.mubr.f32.mxu0 %v480_v29  ;;  %v519_v21 = vsub.f32 %v9243_v37, %v13227_v20  ;;  %13229 = vst [vmem:[#allocation84_spill] sm:$0xff] %v9313_v23  ;;  %v510_v20 = vand.u32 4294901760, %v509_v22  ;;  %v9324_v57 = vsub.f32 %v45_v17, %v9293_v6  ;;  %v13233_v29 = vand.u32 4294901760, %v9270_v25  ;;  %v49_v17 = vld [vmem:[%s12566_s1 + $0x130] sm:$0xff] }
  0x52   :  { %7540 = vmatprep.mubr.f32.mxu1 %v9095_v44  ;;  %7721 = vmatpush3.msra.mxu0 %v8748_v50  ;;  %v9321_v44 = vsub.f32 %v44_v58, %v9291_v8  ;;  %v9332_v37 = vand.u32 4294901760, %v47_v7  ;;  %v48_v58 = vld [vmem:[%s12566_s1 + $0x128] sm:$0xff]  ;;  %v530_v2 = vand.u32 4294901760, %v529_v32  ;;  %v9362_v32 = vand.u32 4294901760, %v49_v17 }
  0x53   :  { %7722 = vmatprep.subr.mxu0 %v8777_v62  ;;  %7946 = vmatprep.subr.mxu1 %v8733_v45  ;;  %13232 = vst [vmem:[#allocation86_spill] sm:$0xff] %v9324_v57  ;;  %v520_v50 = vand.u32 4294901760, %v519_v21  ;;  %v539_v22 = vsub.f32 %v9270_v25, %v13233_v29  ;;  %v9346_v29 = vsub.f32 %v46_v47, %v9313_v23  ;;  %v13238_v47 = vand.u32 4294901760, %v9305_v28 }
  0x54   :  { %7323 = vmatmul.mubr.f32.gmra.mxu0 %v490_v46  ;;  %13231 = vst [vmem:[#allocation85_spill] sm:$0xff] %v9321_v44  ;;  %7947 = vmatpush3.msra.mxu1 %v8733_v45  ;;  %13234 = vst [vmem:[#allocation87_spill] sm:$0xff] %v9332_v37  ;;  %v12701_v46 = vand.u32 4294901760, %v9321_v44 }
  0x55   :  { %7541 = vmatmul.mubr.f32.gmra.mxu1 %v9105_v15  ;;  %7325 = vmatprep.mubr.f32.mxu0 %v500_v33  ;;  %v13235_v33 = vand.u32 4294901760, %v9286_v60  ;;  %13236 = vst [vmem:[#allocation88_spill] sm:$0xff] %v9346_v29  ;;  %v9352_v15 = vand.u32 4294901760, %v48_v58  ;;  %13240 = vst [vmem:[#allocation91_spill] sm:$0xff] %v9362_v32 }
  0x56   :  { %7543 = vmatprep.mubr.f32.mxu1 %v9122_v52  ;;  %7723 = vmatpush3.msra.mxu0 %v8777_v62  ;;  %v540_v62 = vand.u32 4294901760, %v539_v22  ;;  %v569_v52 = vsub.f32 %v9321_v44, %v12701_v46  ;;  %v13249_v46 = vld [vmem:[#allocation28_spill] sm:$0xff] }
  0x57   :  { %v549_v21 = vsub.f32 %v9286_v60, %v13235_v33  ;;  %7724 = vmatprep.subr.mxu0 %v8783_v0  ;;  %7948 = vmatprep.subr.mxu1 %v8745_v49  ;;  %13237 = vst [vmem:[#allocation89_spill] sm:$0xff] %v9352_v15  ;;  %v559_v33 = vsub.f32 %v9305_v28, %v13238_v47 }
  0x58   :  { %7326 = vmatmul.mubr.f32.gmra.mxu0 %v510_v20  ;;  %7949 = vmatpush3.msra.mxu1 %v8745_v49  ;;  %v9360_v60 = vsub.f32 %v47_v7, %v9332_v37  ;;  %v50_v20 = vld [vmem:[%s12566_s1 + $0x138] sm:$0xff]  ;;  %v13241_v7 = vld [vmem:[#allocation12_spill] sm:$0xff]  ;;  %v9382_v28 = vsub.f32 %v48_v58, %v9352_v15  ;;  %v9393_v47 = vsub.f32 %v49_v17, %v9362_v32  ;;  %v13250_v17 = vld [vmem:[#allocation18_spill] sm:$0xff] }
  0x59   :  { %7544 = vmatmul.mubr.f32.gmra.mxu1 %v9144_v19  ;;  %7328 = vmatprep.mubr.f32.mxu0 %v520_v50  ;;  %v51_v50 = vld [vmem:[%s12566_s1 + $0x140] sm:$0xff]  ;;  %v550_v22 = vand.u32 4294901760, %v549_v21  ;;  %v52_v21 = vld [vmem:[%s12566_s1 + $0x148] sm:$0xff]  ;;  %v53_v58 = vld [vmem:[%s12566_s1 + $0x150] sm:$0xff] }
  0x5a   :  { %13239 = vst [vmem:[#allocation90_spill] sm:$0xff] %v9360_v60  ;;  %7546 = vmatprep.mubr.f32.mxu1 %v9152_v53  ;;  %7725 = vmatpush3.msra.mxu0 %v8783_v0  ;;  %v13242_v53 = vand.u32 4294901760, %v9324_v57  ;;  %13243 = vst [vmem:[#allocation92_spill] sm:$0xff] %v9382_v28  ;;  %v9384_v0 = vand.u32 4294901760, %v50_v20  ;;  %v13259_v44 = vand.u32 4294901760, %v9382_v28 }
  0x5b   :  { %7726 = vmatprep.subr.mxu0 %v8798_v12  ;;  %7950 = vmatprep.subr.mxu1 %v13241_v7  ;;  %13245 = vst [vmem:[#allocation94_spill] sm:$0xff] %v9393_v47 }
  0x5c   :  { %7329 = vmatmul.mubr.f32.gmra.mxu0 %v530_v2  ;;  %v579_v19 = vsub.f32 %v9324_v57, %v13242_v53  ;;  %13244 = vst [vmem:[#allocation93_spill] sm:$0xff] %v9384_v0  ;;  %7951 = vmatpush3.msra.mxu1 %v13241_v7  ;;  %v560_v2 = vand.u32 4294901760, %v559_v33  ;;  %v9395_v53 = vand.u32 4294901760, %v51_v50  ;;  %v13247_v57 = vand.u32 4294901760, %v9346_v29 }
  0x5d   :  { %7547 = vmatmul.mubr.f32.gmra.mxu1 %v9171_v18  ;;  %7331 = vmatprep.mubr.f32.mxu0 %v540_v62  ;;  %v9405_v33 = vand.u32 4294901760, %v52_v21  ;;  %v570_v18 = vand.u32 4294901760, %v569_v52  ;;  %v9411_v25 = vsub.f32 %v50_v20, %v9384_v0 }
  0x5e   :  { %13246 = vst [vmem:[#allocation95_spill] sm:$0xff] %v9395_v53  ;;  %7549 = vmatprep.mubr.f32.mxu1 %v9173_v39  ;;  %7727 = vmatpush3.msra.mxu0 %v8798_v12  ;;  %v589_v62 = vsub.f32 %v9346_v29, %v13247_v57  ;;  %v9413_v39 = vand.u32 4294901760, %v53_v58  ;;  %v54_v12 = vld [vmem:[%s12566_s1 + $0x158] sm:$0xff]  ;;  %v580_v57 = vand.u32 4294901760, %v579_v19  ;;  %v9425_v20 = vsub.f32 %v51_v50, %v9395_v53  ;;  %v55_v29 = vld [vmem:[%s12566_s1 + $0x160] sm:$0xff] }
  0x5f   :  { %13248 = vst [vmem:[#allocation96_spill] sm:$0xff] %v9405_v33  ;;  %7728 = vmatprep.subr.mxu0 %v13249_v46  ;;  %7952 = vmatprep.subr.mxu1 %v13250_v17  ;;  %13251 = vst [vmem:[#allocation28_spill] sm:$0xff] %v9411_v25  ;;  %v9435_v19 = vand.u32 4294901760, %v54_v12  ;;  %v9452_v42 = vand.u32 4294901760, %v55_v29 }
  0x60   :  { %7332 = vmatmul.mubr.f32.gmra.mxu0 %v550_v22  ;;  %13252 = vst [vmem:[#allocation97_spill] sm:$0xff] %v9413_v39  ;;  %7953 = vmatpush3.msra.mxu1 %v13250_v17  ;;  %v13253_v22 = vand.u32 4294901760, %v9360_v60  ;;  %13254 = vst [vmem:[#allocation98_spill] sm:$0xff] %v9425_v20  ;;  %v590_v50 = vand.u32 4294901760, %v589_v62  ;;  %v9444_v17 = vsub.f32 %v53_v58, %v9413_v39  ;;  %v57_v58 = vld [vmem:[%s12566_s1 + $0x170] sm:$0xff] }
  0x61   :  { %7550 = vmatmul.mubr.f32.gmra.mxu1 %v9195_v43  ;;  %7334 = vmatprep.mubr.f32.mxu0 %v560_v2  ;;  %v9433_v2 = vsub.f32 %v52_v21, %v9405_v33  ;;  %13256 = vst [vmem:[#allocation100_spill] sm:$0xff] %v9435_v19  ;;  %v13257_v43 = vld [vmem:[#allocation31_spill] sm:$0xff]  ;;  %v13261_v21 = vand.u32 4294901760, %v9393_v47  ;;  %13262 = vst [vmem:[#allocation101_spill] sm:$0xff] %v9452_v42 }
  0x62   :  { %v599_v52 = vsub.f32 %v9360_v60, %v13253_v22  ;;  %7552 = vmatprep.mubr.f32.mxu1 %v9212_v51  ;;  %7729 = vmatpush3.msra.mxu0 %v13249_v46  ;;  %v13258_v22 = vld [vmem:[#allocation22_spill] sm:$0xff]  ;;  %v609_v51 = vsub.f32 %v9382_v28, %v13259_v44  ;;  %v12729_v60 = vand.u32 4294901760, %v9411_v25  ;;  %13260 = vst [vmem:[#allocation31_spill] sm:$0xff] %v9444_v17  ;;  %v56_v44 = vld [vmem:[%s12566_s1 + $0x168] sm:$0xff]  ;;  %v62_v28 = vld [vmem:[%s12566_s1 + $0x198] sm:$0xff] }
  0x63   :  { %13255 = vst [vmem:[#allocation99_spill] sm:$0xff] %v9433_v2  ;;  %7730 = vmatprep.subr.mxu0 %v13257_v43  ;;  %7954 = vmatprep.subr.mxu1 %v13258_v22 }
  0x64   :  { %7335 = vmatmul.mubr.f32.gmra.mxu0 %v570_v18  ;;  %7955 = vmatpush3.msra.mxu1 %v13258_v22  ;;  %v600_v46 = vand.u32 4294901760, %v599_v52  ;;  %v619_v18 = vsub.f32 %v9393_v47, %v13261_v21  ;;  %v9464_v52 = vsub.f32 %v54_v12, %v9435_v19  ;;  %v13264_v21 = vld [vmem:[#allocation27_spill] sm:$0xff]  ;;  %v610_v62 = vand.u32 4294901760, %v609_v51 }
  0x65   :  { %7553 = vmatmul.mubr.f32.gmra.mxu1 %v9232_v36  ;;  %7337 = vmatprep.mubr.f32.mxu0 %v580_v57  ;;  %v9472_v47 = vand.u32 4294901760, %v56_v44  ;;  %v13266_v12 = vand.u32 4294901760, %v9425_v20  ;;  %v9480_v51 = vsub.f32 %v55_v29, %v9452_v42  ;;  %v13270_v36 = vld [vmem:[#allocation2_spill] sm:$0xff] }
  0x66   :  { %7555 = vmatprep.mubr.f32.mxu1 %v9245_v30  ;;  %7731 = vmatpush3.msra.mxu0 %v13257_v43  ;;  %13263 = vst [vmem:[#allocation102_spill] sm:$0xff] %v9464_v52  ;;  %v629_v30 = vsub.f32 %v9411_v25, %v12729_v60  ;;  %v620_v43 = vand.u32 4294901760, %v619_v18  ;;  %v58_v60 = vld [vmem:[%s12566_s1 + $0x178] sm:$0xff]  ;;  %v13269_v18 = vand.u32 4294901760, %v9433_v2 }
  0x67   :  { %7732 = vmatprep.subr.mxu0 %v8893_v35  ;;  %7956 = vmatprep.subr.mxu1 %v13264_v21  ;;  %13265 = vst [vmem:[#allocation103_spill] sm:$0xff] %v9472_v47  ;;  %v639_v57 = vsub.f32 %v9425_v20, %v13266_v12  ;;  %13267 = vst [vmem:[#allocation104_spill] sm:$0xff] %v9480_v51  ;;  %v9502_v25 = vsub.f32 %v56_v44, %v9472_v47 }
  0x68   :  { %7338 = vmatmul.mubr.f32.gmra.mxu0 %v590_v50  ;;  %7957 = vmatpush3.msra.mxu1 %v13264_v21  ;;  %v9482_v50 = vand.u32 4294901760, %v57_v58  ;;  %v649_v12 = vsub.f32 %v9433_v2, %v13269_v18  ;;  %v9546_v21 = vand.u32 4294901760, %v62_v28 }
  0x69   :  { %7556 = vmatmul.mubr.f32.gmra.mxu1 %v9253_v48  ;;  %7340 = vmatprep.mubr.f32.mxu0 %v600_v46  ;;  %v59_v46 = vld [vmem:[%s12566_s1 + $0x180] sm:$0xff]  ;;  %v630_v48 = vand.u32 4294901760, %v629_v30  ;;  %13272 = vst [vmem:[#allocation2_spill] sm:$0xff] %v9502_v25  ;;  %v640_v18 = vand.u32 4294901760, %v639_v57  ;;  %v61_v30 = vld [vmem:[%s12566_s1 + $0x190] sm:$0xff]  ;;  %v13276_v57 = vand.u32 4294901760, %v9464_v52 }
  0x6a   :  { %13268 = vst [vmem:[#allocation105_spill] sm:$0xff] %v9482_v50  ;;  %7558 = vmatprep.mubr.f32.mxu1 %v9272_v55  ;;  %7733 = vmatpush3.msra.mxu0 %v8893_v35  ;;  %v13271_v55 = vand.u32 4294901760, %v9444_v17  ;;  %v9504_v35 = vand.u32 4294901760, %v58_v60  ;;  %v9509_v2 = vsub.f32 %v57_v58, %v9482_v50  ;;  %v650_v44 = vand.u32 4294901760, %v649_v12  ;;  %13282 = vst [vmem:[#allocation113_spill] sm:$0xff] %v9546_v21 }
  0x6b   :  { %8150 = vmatprep.subr.mxu0 %v13270_v36  ;;  %8374 = vmatprep.subr.mxu1 %v8622_v3 }
  0x6c   :  { %7341 = vmatmul.mubr.f32.gmra.mxu0 %v610_v62  ;;  %v659_v20 = vsub.f32 %v9444_v17, %v13271_v55  ;;  %13273 = vst [vmem:[#allocation106_spill] sm:$0xff] %v9504_v35  ;;  %13274 = vst [vmem:[#allocation107_spill] sm:$0xff] %v9509_v2  ;;  %v9511_v62 = vand.u32 4294901760, %v59_v46  ;;  %v60_v55 = vld [vmem:[%s12566_s1 + $0x188] sm:$0xff]  ;;  %v9525_v29 = vsub.f32 %v58_v60, %v9504_v35  ;;  %v9529_v17 = vand.u32 4294901760, %v61_v30 }
  0x6d   :  { %7559 = vmatmul.mubr.f32.gmra.mxu1 %v9291_v8  ;;  %7343 = vmatprep.mubr.f32.mxu0 %v620_v43  ;;  %v669_v43 = vsub.f32 %v9464_v52, %v13276_v57  ;;  %v9527_v8 = vand.u32 4294901760, %v60_v55  ;;  %v13280_v57 = vand.u32 4294901760, %v9480_v51 }
  0x6e   :  { %13275 = vst [vmem:[#allocation108_spill] sm:$0xff] %v9511_v62  ;;  %7561 = vmatprep.mubr.f32.mxu1 %v9293_v6  ;;  %13277 = vst [vmem:[#allocation109_spill] sm:$0xff] %v9525_v29  ;;  %v660_v12 = vand.u32 4294901760, %v659_v20  ;;  %v9540_v60 = vsub.f32 %v59_v46, %v9511_v62  ;;  %v63_v6 = vld [vmem:[%s12566_s1 + $0x1a0] sm:$0xff]  ;;  %v13283_v20 = vand.u32 4294901760, %v9502_v25  ;;  %v9556_v46 = vsub.f32 %v61_v30, %v9529_v17 }
  0x6f   :  { %13278 = vst [vmem:[#allocation110_spill] sm:$0xff] %v9527_v8  ;;  %13279 = vst [vmem:[#allocation111_spill] sm:$0xff] %v9529_v17  ;;  %v670_v52 = vand.u32 4294901760, %v669_v43  ;;  %v9553_v58 = vsub.f32 %v60_v55, %v9527_v8  ;;  %v13286_v43 = vand.u32 4294901760, %v9509_v2  ;;  %v65_v55 = vld [vmem:[%s12566_s1 + $0x1b0] sm:$0xff]  ;;  %v9573_v30 = vsub.f32 %v62_v28, %v9546_v21 }
  0x70   :  { %7344 = vmatmul.mubr.f32.gmra.mxu0 %v630_v48  ;;  %v679_v48 = vsub.f32 %v9480_v51, %v13280_v57  ;;  %13281 = vst [vmem:[#allocation112_spill] sm:$0xff] %v9540_v60  ;;  %13285 = vst [vmem:[#allocation115_spill] sm:$0xff] %v9556_v46 }
  0x71   :  { %7562 = vmatmul.mubr.f32.gmra.mxu1 %v9313_v23  ;;  %7346 = vmatprep.mubr.f32.mxu0 %v640_v18  ;;  %v689_v18 = vsub.f32 %v9502_v25, %v13283_v20  ;;  %13284 = vst [vmem:[#allocation114_spill] sm:$0xff] %v9553_v58  ;;  %v699_v20 = vsub.f32 %v9509_v2, %v13286_v43  ;;  %v9566_v23 = vand.u32 4294901760, %v63_v6  ;;  %13288 = vst [vmem:[#allocation117_spill] sm:$0xff] %v9573_v30 }
  0x72   :  { %7564 = vmatprep.mubr.f32.mxu1 %v9332_v37  ;;  %v64_v37 = vld [vmem:[%s12566_s1 + $0x1a8] sm:$0xff]  ;;  %v12772_v57 = vand.u32 4294901760, %v9553_v58  ;;  %v12771_v2 = vand.u32 4294901760, %v9556_v46  ;;  %v13291_v25 = vand.u32 4294901760, %v9540_v60 }
  0x73   :  { %13287 = vst [vmem:[#allocation116_spill] sm:$0xff] %v9566_v23  ;;  %v9587_v51 = vsub.f32 %v63_v6, %v9566_v23 }
  0x74   :  { %7347 = vmatmul.mubr.f32.gmra.mxu0 %v650_v44  ;;  %v680_v44 = vand.u32 4294901760, %v679_v48  ;;  %v13290_v48 = vand.u32 4294901760, %v9525_v29  ;;  %v719_v28 = vsub.f32 %v9540_v60, %v13291_v25  ;;  %v729_v25 = vsub.f32 %v9553_v58, %v12772_v57  ;;  %v70_v58 = vld [vmem:[%s12566_s1 + $0x1d8] sm:$0xff]  ;;  %v71_v57 = vld [vmem:[%s12566_s1 + $0x1e0] sm:$0xff] }
  0x75   :  { %7565 = vmatmul.mubr.f32.gmra.mxu1 %v9352_v15  ;;  %7349 = vmatprep.mubr.f32.mxu0 %v660_v12  ;;  %v9575_v15 = vand.u32 4294901760, %v64_v37  ;;  %v690_v12 = vand.u32 4294901760, %v689_v18  ;;  %13292 = vst [vmem:[#allocation119_spill] sm:$0xff] %v9587_v51  ;;  %v66_v18 = vld [vmem:[%s12566_s1 + $0x1b8] sm:$0xff] }
  0x76   :  { %7567 = vmatprep.mubr.f32.mxu1 %v9362_v32  ;;  %v709_v43 = vsub.f32 %v9525_v29, %v13290_v48  ;;  %v700_v32 = vand.u32 4294901760, %v699_v20  ;;  %v720_v60 = vand.u32 4294901760, %v719_v28 }
  0x77   :  { %13289 = vst [vmem:[#allocation118_spill] sm:$0xff] %v9575_v15  ;;  %v9600_v48 = vsub.f32 %v64_v37, %v9575_v15 }
  0x78   :  { %7350 = vmatmul.mubr.f32.gmra.mxu0 %v670_v52  ;;  %v9589_v52 = vand.u32 4294901760, %v65_v55  ;;  %v710_v6 = vand.u32 4294901760, %v709_v43  ;;  %v68_v43 = vld [vmem:[%s12566_s1 + $0x1c8] sm:$0xff] }
  0x79   :  { %7568 = vmatmul.mubr.f32.gmra.mxu1 %v9384_v0  ;;  %7352 = vmatprep.mubr.f32.mxu0 %v680_v44  ;;  %v67_v44 = vld [vmem:[%s12566_s1 + $0x1c0] sm:$0xff]  ;;  %13294 = vst [vmem:[#allocation121_spill] sm:$0xff] %v9600_v48  ;;  %v739_v0 = vsub.f32 %v9556_v46, %v12771_v2  ;;  %v69_v2 = vld [vmem:[%s12566_s1 + $0x1d0] sm:$0xff] }
  0x7a   :  { %13293 = vst [vmem:[#allocation120_spill] sm:$0xff] %v9589_v52  ;;  %7570 = vmatprep.mubr.f32.mxu1 %v9395_v53  ;;  %v9608_v53 = vand.u32 4294901760, %v66_v18  ;;  %v9613_v37 = vsub.f32 %v65_v55, %v9589_v52  ;;  %v730_v55 = vand.u32 4294901760, %v729_v25  ;;  %v9633_v46 = vand.u32 4294901760, %v69_v2 }
  0x7c   :  { %7353 = vmatmul.mubr.f32.gmra.mxu0 %v690_v12  ;;  %13295 = vst [vmem:[#allocation122_spill] sm:$0xff] %v9608_v53  ;;  %13296 = vst [vmem:[#allocation123_spill] sm:$0xff] %v9613_v37  ;;  %v9615_v12 = vand.u32 4294901760, %v67_v44  ;;  %v9629_v20 = vsub.f32 %v66_v18, %v9608_v53 }
  0x7d   :  { %7571 = vmatmul.mubr.f32.gmra.mxu1 %v9405_v33  ;;  %7355 = vmatprep.mubr.f32.mxu0 %v700_v32  ;;  %v13298_v32 = vand.u32 4294901760, %v9573_v30  ;;  %v9631_v33 = vand.u32 4294901760, %v68_v43  ;;  %13301 = vst [vmem:[#allocation127_spill] sm:$0xff] %v9633_v46 }
  0x7e   :  { %13297 = vst [vmem:[#allocation124_spill] sm:$0xff] %v9615_v12  ;;  %7573 = vmatprep.mubr.f32.mxu1 %v9413_v39  ;;  %13299 = vst [vmem:[#allocation125_spill] sm:$0xff] %v9629_v20  ;;  %v740_v39 = vand.u32 4294901760, %v739_v0  ;;  %v9644_v18 = vsub.f32 %v67_v44, %v9615_v12  ;;  %v9653_v0 = vand.u32 4294901760, %v70_v58  ;;  %v9660_v44 = vsub.f32 %v69_v2, %v9633_v46  ;;  %v73_v2 = vld [vmem:[%s12566_s1 + $0x1f0] sm:$0xff] }
  0x7f   :  { %v749_v28 = vsub.f32 %v9573_v30, %v13298_v32  ;;  %13300 = vst [vmem:[#allocation126_spill] sm:$0xff] %v9631_v33  ;;  %v13302_v32 = vand.u32 4294901760, %v9587_v51  ;;  %v13304_v30 = vand.u32 4294901760, %v9600_v48  ;;  %v9657_v25 = vsub.f32 %v68_v43, %v9631_v33  ;;  %v72_v43 = vld [vmem:[%s12566_s1 + $0x1e8] sm:$0xff] }
  0x80   :  { %7356 = vmatmul.mubr.f32.gmra.mxu0 %v710_v6  ;;  %13303 = vst [vmem:[#allocation128_spill] sm:$0xff] %v9644_v18  ;;  %13305 = vst [vmem:[#allocation129_spill] sm:$0xff] %v9653_v0 }
  0x81   :  { %7574 = vmatmul.mubr.f32.gmra.mxu1 %v9435_v19  ;;  %7358 = vmatprep.mubr.f32.mxu0 %v720_v60  ;;  %v759_v6 = vsub.f32 %v9587_v51, %v13302_v32  ;;  %v769_v60 = vsub.f32 %v9600_v48, %v13304_v30  ;;  %v750_v19 = vand.u32 4294901760, %v749_v28  ;;  %v12795_v32 = vand.u32 4294901760, %v9629_v20  ;;  %13306 = vst [vmem:[#allocation130_spill] sm:$0xff] %v9657_v25  ;;  %v75_v48 = vld [vmem:[%s12566_s1 + $0x200] sm:$0xff] }
  0x82   :  { %7576 = vmatprep.mubr.f32.mxu1 %v9452_v42  ;;  %13307 = vst [vmem:[#allocation131_spill] sm:$0xff] %v9660_v44  ;;  %v13308_v51 = vand.u32 4294901760, %v9613_v37  ;;  %v9677_v28 = vsub.f32 %v70_v58, %v9653_v0 }
  0x83   :  { %v760_v42 = vand.u32 4294901760, %v759_v6  ;;  %v9696_v6 = vand.u32 4294901760, %v73_v2 }
  0x84   :  { %7359 = vmatmul.mubr.f32.gmra.mxu0 %v730_v55  ;;  %v779_v30 = vsub.f32 %v9613_v37, %v13308_v51  ;;  %v9667_v55 = vand.u32 4294901760, %v71_v57  ;;  %13310 = vst [vmem:[#allocation133_spill] sm:$0xff] %v9677_v28  ;;  %v789_v51 = vsub.f32 %v9629_v20, %v12795_v32  ;;  %v79_v20 = vld [vmem:[%s12566_s1 + $0x220] sm:$0xff] }
  0x85   :  { %7577 = vmatmul.mubr.f32.gmra.mxu1 %v9472_v47  ;;  %7361 = vmatprep.mubr.f32.mxu0 %v740_v39  ;;  %v770_v39 = vand.u32 4294901760, %v769_v60  ;;  %v9684_v47 = vand.u32 4294901760, %v72_v43  ;;  %13314 = vst [vmem:[#allocation136_spill] sm:$0xff] %v9696_v6 }
  0x86   :  { %13309 = vst [vmem:[#allocation132_spill] sm:$0xff] %v9667_v55  ;;  %7579 = vmatprep.mubr.f32.mxu1 %v9482_v50  ;;  %v74_v50 = vld [vmem:[%s12566_s1 + $0x1f8] sm:$0xff]  ;;  %v780_v58 = vand.u32 4294901760, %v779_v30  ;;  %v9694_v32 = vsub.f32 %v71_v57, %v9667_v55  ;;  %v13316_v30 = vand.u32 4294901760, %v9657_v25  ;;  %v13317_v57 = vand.u32 4294901760, %v9660_v44 }
  0x87   :  { %13311 = vst [vmem:[#allocation134_spill] sm:$0xff] %v9684_v47 }
  0x88   :  { %7362 = vmatmul.mubr.f32.gmra.mxu0 %v750_v19  ;;  %v13312_v19 = vand.u32 4294901760, %v9644_v18  ;;  %13313 = vst [vmem:[#allocation135_spill] sm:$0xff] %v9694_v32 }
  0x89   :  { %7580 = vmatmul.mubr.f32.gmra.mxu1 %v9504_v35  ;;  %7364 = vmatprep.mubr.f32.mxu0 %v760_v42  ;;  %v9703_v35 = vand.u32 4294901760, %v74_v50  ;;  %v790_v42 = vand.u32 4294901760, %v789_v51  ;;  %v9719_v51 = vand.u32 4294901760, %v75_v48 }
  0x8a   :  { %v799_v60 = vsub.f32 %v9644_v18, %v13312_v19  ;;  %7582 = vmatprep.mubr.f32.mxu1 %v9511_v62  ;;  %v809_v19 = vsub.f32 %v9657_v25, %v13316_v30  ;;  %v819_v18 = vsub.f32 %v9660_v44, %v13317_v57  ;;  %v9712_v62 = vsub.f32 %v72_v43, %v9684_v47  ;;  %v76_v30 = vld [vmem:[%s12566_s1 + $0x208] sm:$0xff]  ;;  %v77_v43 = vld [vmem:[%s12566_s1 + $0x210] sm:$0xff]  ;;  %v78_v25 = vld [vmem:[%s12566_s1 + $0x218] sm:$0xff] }
  0x8b   :  { %13315 = vst [vmem:[#allocation137_spill] sm:$0xff] %v9703_v35  ;;  %13320 = vst [vmem:[#allocation140_spill] sm:$0xff] %v9719_v51  ;;  %v9732_v57 = vsub.f32 %v74_v50, %v9703_v35  ;;  %v9737_v44 = vand.u32 4294901760, %v77_v43 }
  0x8c   :  { %7365 = vmatmul.mubr.f32.gmra.mxu0 %v770_v39  ;;  %13318 = vst [vmem:[#allocation138_spill] sm:$0xff] %v9712_v62  ;;  %v800_v37 = vand.u32 4294901760, %v799_v60  ;;  %v9717_v39 = vsub.f32 %v73_v2, %v9696_v6  ;;  %v810_v2 = vand.u32 4294901760, %v809_v19  ;;  %v9748_v19 = vsub.f32 %v75_v48, %v9719_v51 }
  0x8d   :  { %7583 = vmatmul.mubr.f32.gmra.mxu1 %v9527_v8  ;;  %7367 = vmatprep.mubr.f32.mxu0 %v780_v58  ;;  %v13321_v58 = vand.u32 4294901760, %v9677_v28  ;;  %13322 = vst [vmem:[#allocation141_spill] sm:$0xff] %v9732_v57  ;;  %v9735_v8 = vand.u32 4294901760, %v76_v30  ;;  %13324 = vst [vmem:[#allocation143_spill] sm:$0xff] %v9737_v44  ;;  %v9764_v48 = vsub.f32 %v77_v43, %v9737_v44  ;;  %v81_v43 = vld [vmem:[%s12566_s1 + $0x230] sm:$0xff] }
  0x8e   :  { %13319 = vst [vmem:[#allocation139_spill] sm:$0xff] %v9717_v39  ;;  %7585 = vmatprep.mubr.f32.mxu1 %v9529_v17  ;;  %v820_v17 = vand.u32 4294901760, %v819_v18  ;;  %13326 = vst [vmem:[#allocation144_spill] sm:$0xff] %v9748_v19  ;;  %v13328_v18 = vand.u32 4294901760, %v9712_v62 }
  0x8f   :  { %v829_v60 = vsub.f32 %v9677_v28, %v13321_v58  ;;  %13323 = vst [vmem:[#allocation142_spill] sm:$0xff] %v9735_v8  ;;  %v13325_v58 = vand.u32 4294901760, %v9694_v32  ;;  %13330 = vst [vmem:[#allocation147_spill] sm:$0xff] %v9764_v48  ;;  %v13331_v28 = vand.u32 4294901760, %v9717_v39 }
  0x90   :  { %7368 = vmatmul.mubr.f32.gmra.mxu0 %v790_v42  ;;  %v9761_v42 = vsub.f32 %v76_v30, %v9735_v8  ;;  %v80_v30 = vld [vmem:[%s12566_s1 + $0x228] sm:$0xff] }
  0x91   :  { %7586 = vmatmul.mubr.f32.gmra.mxu1 %v9546_v21  ;;  %7370 = vmatprep.mubr.f32.mxu0 %v800_v37  ;;  %v839_v50 = vsub.f32 %v9694_v32, %v13325_v58  ;;  %v9755_v21 = vand.u32 4294901760, %v78_v25  ;;  %v830_v37 = vand.u32 4294901760, %v829_v60  ;;  %v849_v58 = vsub.f32 %v9712_v62, %v13328_v18 }
  0x92   :  { %7588 = vmatprep.mubr.f32.mxu1 %v9566_v23  ;;  %13329 = vst [vmem:[#allocation146_spill] sm:$0xff] %v9761_v42  ;;  %v859_v32 = vsub.f32 %v9717_v39, %v13331_v28  ;;  %v12836_v60 = vand.u32 4294901760, %v9761_v42  ;;  %v9788_v39 = vand.u32 4294901760, %v80_v30  ;;  %v13336_v62 = vand.u32 4294901760, %v9748_v19 }
  0x93   :  { %13327 = vst [vmem:[#allocation145_spill] sm:$0xff] %v9755_v21  ;;  %v840_v23 = vand.u32 4294901760, %v839_v50  ;;  %v9784_v28 = vsub.f32 %v78_v25, %v9755_v21  ;;  %v850_v18 = vand.u32 4294901760, %v849_v58  ;;  %v9797_v25 = vand.u32 4294901760, %v81_v43 }
  0x94   :  { %7371 = vmatmul.mubr.f32.gmra.mxu0 %v810_v2  ;;  %v9771_v2 = vand.u32 4294901760, %v79_v20  ;;  %13335 = vst [vmem:[#allocation150_spill] sm:$0xff] %v9788_v39  ;;  %v879_v29 = vsub.f32 %v9748_v19, %v13336_v62  ;;  %v889_v62 = vsub.f32 %v9761_v42, %v12836_v60  ;;  %v86_v19 = vld [vmem:[%s12566_s1 + $0x258] sm:$0xff] }
  0x95   :  { %7589 = vmatmul.mubr.f32.gmra.mxu1 %v9575_v15  ;;  %7373 = vmatprep.mubr.f32.mxu0 %v820_v17  ;;  %v13333_v17 = vand.u32 4294901760, %v9732_v57  ;;  %13334 = vst [vmem:[#allocation149_spill] sm:$0xff] %v9784_v28  ;;  %v12839_v15 = vand.u32 4294901760, %v9764_v48  ;;  %13338 = vst [vmem:[#allocation152_spill] sm:$0xff] %v9797_v25  ;;  %v9824_v60 = vsub.f32 %v81_v43, %v9797_v25 }
  0x96   :  { %13332 = vst [vmem:[#allocation148_spill] sm:$0xff] %v9771_v2  ;;  %7591 = vmatprep.mubr.f32.mxu1 %v9589_v52  ;;  %v860_v52 = vand.u32 4294901760, %v859_v32 }
  0x97   :  { %v869_v50 = vsub.f32 %v9732_v57, %v13333_v17  ;;  %v9795_v17 = vsub.f32 %v79_v20, %v9771_v2  ;;  %v899_v20 = vsub.f32 %v9764_v48, %v12839_v15  ;;  %13341 = vst [vmem:[#allocation155_spill] sm:$0xff] %v9824_v60  ;;  %v13343_v15 = vand.u32 4294901760, %v9784_v28 }
  0x98   :  { %7374 = vmatmul.mubr.f32.gmra.mxu0 %v830_v37  ;;  %v82_v37 = vld [vmem:[%s12566_s1 + $0x238] sm:$0xff] }
  0x99   :  { %7592 = vmatmul.mubr.f32.gmra.mxu1 %v9608_v53  ;;  %7376 = vmatprep.mubr.f32.mxu0 %v840_v23  ;;  %13337 = vst [vmem:[#allocation151_spill] sm:$0xff] %v9795_v17  ;;  %v83_v23 = vld [vmem:[%s12566_s1 + $0x240] sm:$0xff]  ;;  %v870_v32 = vand.u32 4294901760, %v869_v50  ;;  %v9814_v53 = vsub.f32 %v80_v30, %v9788_v39  ;;  %v84_v50 = vld [vmem:[%s12566_s1 + $0x248] sm:$0xff]  ;;  %v85_v30 = vld [vmem:[%s12566_s1 + $0x250] sm:$0xff]  ;;  %v909_v48 = vsub.f32 %v9784_v28, %v13343_v15  ;;  %v13347_v15 = vand.u32 4294901760, %v9795_v17 }
  0x9a   :  { %7594 = vmatprep.mubr.f32.mxu1 %v9615_v12  ;;  %v9816_v12 = vand.u32 4294901760, %v82_v37  ;;  %v9826_v42 = vand.u32 4294901760, %v83_v23  ;;  %v9841_v58 = vand.u32 4294901760, %v85_v30 }
  0x9b   :  { %13339 = vst [vmem:[#allocation153_spill] sm:$0xff] %v9814_v53 }
  0x9c   :  { %7377 = vmatmul.mubr.f32.gmra.mxu0 %v850_v18  ;;  %13340 = vst [vmem:[#allocation154_spill] sm:$0xff] %v9816_v12  ;;  %v880_v18 = vand.u32 4294901760, %v879_v29  ;;  %13342 = vst [vmem:[#allocation156_spill] sm:$0xff] %v9826_v42  ;;  %v890_v29 = vand.u32 4294901760, %v889_v62  ;;  %v9839_v43 = vsub.f32 %v82_v37, %v9816_v12  ;;  %v87_v37 = vld [vmem:[%s12566_s1 + $0x260] sm:$0xff] }
  0x9d   :  { %7595 = vmatmul.mubr.f32.gmra.mxu1 %v9631_v33  ;;  %7379 = vmatprep.mubr.f32.mxu0 %v860_v52  ;;  %v9835_v33 = vand.u32 4294901760, %v84_v50  ;;  %13346 = vst [vmem:[#allocation159_spill] sm:$0xff] %v9841_v58  ;;  %v9852_v52 = vsub.f32 %v83_v23, %v9826_v42 }
  0x9e   :  { %7597 = vmatprep.mubr.f32.mxu1 %v9633_v46  ;;  %13345 = vst [vmem:[#allocation158_spill] sm:$0xff] %v9839_v43  ;;  %v900_v46 = vand.u32 4294901760, %v899_v20  ;;  %v910_v20 = vand.u32 4294901760, %v909_v48  ;;  %v12864_v23 = vand.u32 4294901760, %v9839_v43  ;;  %v9875_v48 = vand.u32 4294901760, %v87_v37 }
  0x9f   :  { %13344 = vst [vmem:[#allocation157_spill] sm:$0xff] %v9835_v33  ;;  %13348 = vst [vmem:[#allocation160_spill] sm:$0xff] %v9852_v52  ;;  %v9859_v28 = vsub.f32 %v84_v50, %v9835_v33  ;;  %v13353_v50 = vand.u32 4294901760, %v9824_v60 }
  0xa0   :  { %7380 = vmatmul.mubr.f32.gmra.mxu0 %v870_v32  ;;  %v919_v32 = vsub.f32 %v9795_v17, %v13347_v15  ;;  %v13351_v15 = vand.u32 4294901760, %v9814_v53  ;;  %13354 = vst [vmem:[#allocation164_spill] sm:$0xff] %v9875_v48 }
  0xa1   :  { %7598 = vmatmul.mubr.f32.gmra.mxu1 %v9653_v0  ;;  %7382 = vmatprep.mubr.f32.mxu0 %v880_v18  ;;  %13349 = vst [vmem:[#allocation161_spill] sm:$0xff] %v9859_v28  ;;  %v9861_v18 = vand.u32 4294901760, %v86_v19  ;;  %v9868_v0 = vsub.f32 %v85_v30, %v9841_v58  ;;  %v939_v17 = vsub.f32 %v9824_v60, %v13353_v50  ;;  %v89_v30 = vld [vmem:[%s12566_s1 + $0x270] sm:$0xff] }
  0xa2   :  { %7600 = vmatprep.mubr.f32.mxu1 %v9667_v55  ;;  %v929_v62 = vsub.f32 %v9814_v53, %v13351_v15  ;;  %v920_v55 = vand.u32 4294901760, %v919_v32  ;;  %v88_v15 = vld [vmem:[%s12566_s1 + $0x268] sm:$0xff]  ;;  %v13357_v53 = vand.u32 4294901760, %v9852_v52 }
  0xa3   :  { %13350 = vst [vmem:[#allocation162_spill] sm:$0xff] %v9861_v18  ;;  %13352 = vst [vmem:[#allocation163_spill] sm:$0xff] %v9868_v0  ;;  %v9886_v32 = vsub.f32 %v86_v19, %v9861_v18  ;;  %v9892_v60 = vand.u32 4294901760, %v88_v15  ;;  %v9899_v19 = vsub.f32 %v87_v37, %v9875_v48 }
  0xa4   :  { %7383 = vmatmul.mubr.f32.gmra.mxu0 %v890_v29  ;;  %v930_v50 = vand.u32 4294901760, %v929_v62  ;;  %v949_v29 = vsub.f32 %v9839_v43, %v12864_v23  ;;  %v9901_v62 = vand.u32 4294901760, %v89_v30 }
  0xa5   :  { %7601 = vmatmul.mubr.f32.gmra.mxu1 %v9684_v47  ;;  %7385 = vmatprep.mubr.f32.mxu0 %v900_v46  ;;  %13355 = vst [vmem:[#allocation165_spill] sm:$0xff] %v9886_v32  ;;  %v12875_v47 = vand.u32 4294901760, %v9868_v0  ;;  %13356 = vst [vmem:[#allocation166_spill] sm:$0xff] %v9892_v60  ;;  %v959_v46 = vsub.f32 %v9852_v52, %v13357_v53  ;;  %v12880_v53 = vand.u32 4294901760, %v9886_v32 }
  0xa6   :  { %7603 = vmatprep.mubr.f32.mxu1 %v9696_v6  ;;  %v940_v6 = vand.u32 4294901760, %v939_v17  ;;  %13358 = vst [vmem:[#allocation167_spill] sm:$0xff] %v9899_v19  ;;  %13359 = vst [vmem:[#allocation168_spill] sm:$0xff] %v9901_v62  ;;  %v13360_v17 = vand.u32 4294901760, %v9859_v28  ;;  %v950_v37 = vand.u32 4294901760, %v949_v29  ;;  %v9918_v52 = vsub.f32 %v88_v15, %v9892_v60  ;;  %v92_v29 = vld [vmem:[%s12566_s1 + $0x288] sm:$0xff] }
  0xa7   :  { %v960_v43 = vand.u32 4294901760, %v959_v46  ;;  %v93_v15 = vld [vmem:[%s12566_s1 + $0x290] sm:$0xff]  ;;  %v9943_v57 = vand.u32 4294901760, %v92_v29 }
  0xa8   :  { %7386 = vmatmul.mubr.f32.gmra.mxu0 %v910_v20  ;;  %v90_v20 = vld [vmem:[%s12566_s1 + $0x278] sm:$0xff]  ;;  %v969_v23 = vsub.f32 %v9859_v28, %v13360_v17  ;;  %13361 = vst [vmem:[#allocation169_spill] sm:$0xff] %v9918_v52  ;;  %v9925_v17 = vsub.f32 %v89_v30, %v9901_v62 }
  0xa9   :  { %7604 = vmatmul.mubr.f32.gmra.mxu1 %v9703_v35  ;;  %7388 = vmatprep.mubr.f32.mxu0 %v920_v55  ;;  %v91_v55 = vld [vmem:[%s12566_s1 + $0x280] sm:$0xff]  ;;  %v979_v35 = vsub.f32 %v9868_v0, %v12875_v47  ;;  %13366 = vst [vmem:[#allocation174_spill] sm:$0xff] %v9943_v57  ;;  %v94_v0 = vld [vmem:[%s12566_s1 + $0x298] sm:$0xff]  ;;  %v9969_v30 = vsub.f32 %v92_v29, %v9943_v57  ;;  %v97_v29 = vld [vmem:[%s12566_s1 + $0x2b0] sm:$0xff] }
  0xaa   :  { %7606 = vmatprep.mubr.f32.mxu1 %v9719_v51  ;;  %v9920_v51 = vand.u32 4294901760, %v90_v20  ;;  %13363 = vst [vmem:[#allocation171_spill] sm:$0xff] %v9925_v17  ;;  %v970_v47 = vand.u32 4294901760, %v969_v23  ;;  %v9962_v28 = vand.u32 4294901760, %v94_v0 }
  0xab   :  { %v980_v23 = vand.u32 4294901760, %v979_v35  ;;  %v13371_v35 = vand.u32 4294901760, %v9918_v52  ;;  %13372 = vst [vmem:[#allocation178_spill] sm:$0xff] %v9969_v30 }
  0xac   :  { %7389 = vmatmul.mubr.f32.gmra.mxu0 %v930_v50  ;;  %13362 = vst [vmem:[#allocation170_spill] sm:$0xff] %v9920_v51  ;;  %v9927_v50 = vand.u32 4294901760, %v91_v55  ;;  %v9941_v46 = vsub.f32 %v90_v20, %v9920_v51  ;;  %13370 = vst [vmem:[#allocation177_spill] sm:$0xff] %v9962_v28 }
  0xad   :  { %7607 = vmatmul.mubr.f32.gmra.mxu1 %v9735_v8  ;;  %7391 = vmatprep.mubr.f32.mxu0 %v940_v6  ;;  %v989_v6 = vsub.f32 %v9886_v32, %v12880_v53  ;;  %v9945_v8 = vand.u32 4294901760, %v93_v15  ;;  %v13368_v53 = vand.u32 4294901760, %v9899_v19 }
  0xae   :  { %13364 = vst [vmem:[#allocation172_spill] sm:$0xff] %v9927_v50  ;;  %7609 = vmatprep.mubr.f32.mxu1 %v9737_v44  ;;  %13365 = vst [vmem:[#allocation173_spill] sm:$0xff] %v9941_v46  ;;  %v9956_v20 = vsub.f32 %v91_v55, %v9927_v50  ;;  %v95_v44 = vld [vmem:[%s12566_s1 + $0x2a0] sm:$0xff] }
  0xaf   :  { %13367 = vst [vmem:[#allocation175_spill] sm:$0xff] %v9945_v8  ;;  %v990_v32 = vand.u32 4294901760, %v989_v6  ;;  %v9972_v55 = vsub.f32 %v93_v15, %v9945_v8  ;;  %v13374_v6 = vand.u32 4294901760, %v9925_v17  ;;  %v9989_v15 = vsub.f32 %v94_v0, %v9962_v28 }
  0xb0   :  { %7392 = vmatmul.mubr.f32.gmra.mxu0 %v950_v37  ;;  %v999_v37 = vsub.f32 %v9899_v19, %v13368_v53  ;;  %13369 = vst [vmem:[#allocation176_spill] sm:$0xff] %v9956_v20  ;;  %v12908_v53 = vand.u32 4294901760, %v9969_v30 }
  0xb1   :  { %7610 = vmatmul.mubr.f32.gmra.mxu1 %v9755_v21  ;;  %7394 = vmatprep.mubr.f32.mxu0 %v960_v43  ;;  %v1009_v43 = vsub.f32 %v9918_v52, %v13371_v35  ;;  %13373 = vst [vmem:[#allocation179_spill] sm:$0xff] %v9972_v55  ;;  %v1019_v35 = vsub.f32 %v9925_v17, %v13374_v6  ;;  %v9982_v21 = vand.u32 4294901760, %v95_v44  ;;  %13376 = vst [vmem:[#allocation181_spill] sm:$0xff] %v9989_v15 }
  0xb2   :  { %7612 = vmatprep.mubr.f32.mxu1 %v9771_v2  ;;  %v96_v2 = vld [vmem:[%s12566_s1 + $0x2a8] sm:$0xff]  ;;  %v12907_v17 = vand.u32 4294901760, %v9972_v55  ;;  %v13379_v52 = vand.u32 4294901760, %v9956_v20 }
  0xb3   :  { %13375 = vst [vmem:[#allocation180_spill] sm:$0xff] %v9982_v21  ;;  %v10003_v19 = vsub.f32 %v95_v44, %v9982_v21 }
  0xb4   :  { %7395 = vmatmul.mubr.f32.gmra.mxu0 %v970_v47  ;;  %v1000_v47 = vand.u32 4294901760, %v999_v37  ;;  %v13378_v37 = vand.u32 4294901760, %v9941_v46  ;;  %v1039_v0 = vsub.f32 %v9956_v20, %v13379_v52  ;;  %v1049_v52 = vsub.f32 %v9969_v30, %v12908_v53  ;;  %v102_v30 = vld [vmem:[%s12566_s1 + $0x2d8] sm:$0xff]  ;;  %v103_v53 = vld [vmem:[%s12566_s1 + $0x2e0] sm:$0xff] }
  0xb5   :  { %7613 = vmatmul.mubr.f32.gmra.mxu1 %v9788_v39  ;;  %7397 = vmatprep.mubr.f32.mxu0 %v980_v23  ;;  %v9991_v39 = vand.u32 4294901760, %v96_v2  ;;  %v1010_v23 = vand.u32 4294901760, %v1009_v43  ;;  %13380 = vst [vmem:[#allocation183_spill] sm:$0xff] %v10003_v19  ;;  %v98_v43 = vld [vmem:[%s12566_s1 + $0x2b8] sm:$0xff] }
  0xb6   :  { %7615 = vmatprep.mubr.f32.mxu1 %v9797_v25  ;;  %v1029_v6 = vsub.f32 %v9941_v46, %v13378_v37  ;;  %v1020_v25 = vand.u32 4294901760, %v1019_v35  ;;  %v1040_v20 = vand.u32 4294901760, %v1039_v0 }
  0xb7   :  { %13377 = vst [vmem:[#allocation182_spill] sm:$0xff] %v9991_v39  ;;  %v10016_v37 = vsub.f32 %v96_v2, %v9991_v39 }
  0xb8   :  { %7398 = vmatmul.mubr.f32.gmra.mxu0 %v990_v32  ;;  %v10005_v32 = vand.u32 4294901760, %v97_v29  ;;  %v1030_v44 = vand.u32 4294901760, %v1029_v6  ;;  %v100_v6 = vld [vmem:[%s12566_s1 + $0x2c8] sm:$0xff] }
  0xb9   :  { %7616 = vmatmul.mubr.f32.gmra.mxu1 %v9816_v12  ;;  %7400 = vmatprep.mubr.f32.mxu0 %v1000_v47  ;;  %v99_v47 = vld [vmem:[%s12566_s1 + $0x2c0] sm:$0xff]  ;;  %13382 = vst [vmem:[#allocation185_spill] sm:$0xff] %v10016_v37  ;;  %v1059_v12 = vsub.f32 %v9972_v55, %v12907_v17  ;;  %v101_v17 = vld [vmem:[%s12566_s1 + $0x2d0] sm:$0xff] }
  0xba   :  { %13381 = vst [vmem:[#allocation184_spill] sm:$0xff] %v10005_v32  ;;  %7618 = vmatprep.mubr.f32.mxu1 %v9826_v42  ;;  %v10024_v42 = vand.u32 4294901760, %v98_v43  ;;  %v10029_v2 = vsub.f32 %v97_v29, %v10005_v32  ;;  %v1050_v29 = vand.u32 4294901760, %v1049_v52  ;;  %v10049_v55 = vand.u32 4294901760, %v101_v17 }
  0xbc   :  { %7401 = vmatmul.mubr.f32.gmra.mxu0 %v1010_v23  ;;  %13383 = vst [vmem:[#allocation186_spill] sm:$0xff] %v10024_v42  ;;  %13384 = vst [vmem:[#allocation187_spill] sm:$0xff] %v10029_v2  ;;  %v10031_v23 = vand.u32 4294901760, %v99_v47  ;;  %v10045_v35 = vsub.f32 %v98_v43, %v10024_v42 }
  0xbd   :  { %7619 = vmatmul.mubr.f32.gmra.mxu1 %v9835_v33  ;;  %7403 = vmatprep.mubr.f32.mxu0 %v1020_v25  ;;  %v13386_v25 = vand.u32 4294901760, %v9989_v15  ;;  %v10047_v33 = vand.u32 4294901760, %v100_v6  ;;  %13389 = vst [vmem:[#allocation191_spill] sm:$0xff] %v10049_v55 }
  0xbe   :  { %13385 = vst [vmem:[#allocation188_spill] sm:$0xff] %v10031_v23  ;;  %7621 = vmatprep.mubr.f32.mxu1 %v9841_v58  ;;  %13387 = vst [vmem:[#allocation189_spill] sm:$0xff] %v10045_v35  ;;  %v1060_v58 = vand.u32 4294901760, %v1059_v12  ;;  %v10060_v43 = vsub.f32 %v99_v47, %v10031_v23  ;;  %v10069_v12 = vand.u32 4294901760, %v102_v30  ;;  %v10076_v47 = vsub.f32 %v101_v17, %v10049_v55  ;;  %v105_v17 = vld [vmem:[%s12566_s1 + $0x2f0] sm:$0xff] }
  0xbf   :  { %v1069_v0 = vsub.f32 %v9989_v15, %v13386_v25  ;;  %13388 = vst [vmem:[#allocation190_spill] sm:$0xff] %v10047_v33  ;;  %v13390_v25 = vand.u32 4294901760, %v10003_v19  ;;  %v13392_v15 = vand.u32 4294901760, %v10016_v37  ;;  %v10073_v52 = vsub.f32 %v100_v6, %v10047_v33  ;;  %v104_v6 = vld [vmem:[%s12566_s1 + $0x2e8] sm:$0xff] }
  0xc0   :  { %7404 = vmatmul.mubr.f32.gmra.mxu0 %v1030_v44  ;;  %13391 = vst [vmem:[#allocation192_spill] sm:$0xff] %v10060_v43  ;;  %13393 = vst [vmem:[#allocation193_spill] sm:$0xff] %v10069_v12 }
  0xc1   :  { %7622 = vmatmul.mubr.f32.gmra.mxu1 %v9861_v18  ;;  %7406 = vmatprep.mubr.f32.mxu0 %v1040_v20  ;;  %v1079_v44 = vsub.f32 %v10003_v19, %v13390_v25  ;;  %v1089_v20 = vsub.f32 %v10016_v37, %v13392_v15  ;;  %v1070_v18 = vand.u32 4294901760, %v1069_v0  ;;  %v12931_v25 = vand.u32 4294901760, %v10045_v35  ;;  %13394 = vst [vmem:[#allocation194_spill] sm:$0xff] %v10073_v52  ;;  %v107_v37 = vld [vmem:[%s12566_s1 + $0x300] sm:$0xff] }
  0xc2   :  { %7624 = vmatprep.mubr.f32.mxu1 %v9875_v48  ;;  %13395 = vst [vmem:[#allocation195_spill] sm:$0xff] %v10076_v47  ;;  %v13396_v19 = vand.u32 4294901760, %v10029_v2  ;;  %v10093_v0 = vsub.f32 %v102_v30, %v10069_v12 }
  0xc3   :  { %v1080_v48 = vand.u32 4294901760, %v1079_v44  ;;  %v10112_v44 = vand.u32 4294901760, %v105_v17 }
  0xc4   :  { %7407 = vmatmul.mubr.f32.gmra.mxu0 %v1050_v29  ;;  %v1099_v15 = vsub.f32 %v10029_v2, %v13396_v19  ;;  %v10083_v29 = vand.u32 4294901760, %v103_v53  ;;  %13398 = vst [vmem:[#allocation197_spill] sm:$0xff] %v10093_v0  ;;  %v1109_v19 = vsub.f32 %v10045_v35, %v12931_v25  ;;  %v111_v35 = vld [vmem:[%s12566_s1 + $0x320] sm:$0xff] }
  0xc5   :  { %7625 = vmatmul.mubr.f32.gmra.mxu1 %v9892_v60  ;;  %7409 = vmatprep.mubr.f32.mxu0 %v1060_v58  ;;  %v1090_v58 = vand.u32 4294901760, %v1089_v20  ;;  %v10100_v60 = vand.u32 4294901760, %v104_v6  ;;  %13402 = vst [vmem:[#allocation200_spill] sm:$0xff] %v10112_v44 }
  0xc6   :  { %13397 = vst [vmem:[#allocation196_spill] sm:$0xff] %v10083_v29  ;;  %7627 = vmatprep.mubr.f32.mxu1 %v9901_v62  ;;  %v106_v62 = vld [vmem:[%s12566_s1 + $0x2f8] sm:$0xff]  ;;  %v1100_v30 = vand.u32 4294901760, %v1099_v15  ;;  %v10110_v25 = vsub.f32 %v103_v53, %v10083_v29  ;;  %v13404_v15 = vand.u32 4294901760, %v10073_v52  ;;  %v13405_v53 = vand.u32 4294901760, %v10076_v47 }
  0xc7   :  { %13399 = vst [vmem:[#allocation198_spill] sm:$0xff] %v10100_v60 }
  0xc8   :  { %7410 = vmatmul.mubr.f32.gmra.mxu0 %v1070_v18  ;;  %v13400_v18 = vand.u32 4294901760, %v10060_v43  ;;  %13401 = vst [vmem:[#allocation199_spill] sm:$0xff] %v10110_v25 }
  0xc9   :  { %7628 = vmatmul.mubr.f32.gmra.mxu1 %v9920_v51  ;;  %7412 = vmatprep.mubr.f32.mxu0 %v1080_v48  ;;  %v10119_v51 = vand.u32 4294901760, %v106_v62  ;;  %v1110_v48 = vand.u32 4294901760, %v1109_v19  ;;  %v10135_v19 = vand.u32 4294901760, %v107_v37 }
  0xca   :  { %v1119_v20 = vsub.f32 %v10060_v43, %v13400_v18  ;;  %7630 = vmatprep.mubr.f32.mxu1 %v9927_v50  ;;  %v1129_v18 = vsub.f32 %v10073_v52, %v13404_v15  ;;  %v1139_v43 = vsub.f32 %v10076_v47, %v13405_v53  ;;  %v10128_v50 = vsub.f32 %v104_v6, %v10100_v60  ;;  %v108_v15 = vld [vmem:[%s12566_s1 + $0x308] sm:$0xff]  ;;  %v109_v6 = vld [vmem:[%s12566_s1 + $0x310] sm:$0xff]  ;;  %v110_v52 = vld [vmem:[%s12566_s1 + $0x318] sm:$0xff] }
  0xcb   :  { %13403 = vst [vmem:[#allocation201_spill] sm:$0xff] %v10119_v51  ;;  %13408 = vst [vmem:[#allocation204_spill] sm:$0xff] %v10135_v19  ;;  %v10148_v53 = vsub.f32 %v106_v62, %v10119_v51  ;;  %v10153_v47 = vand.u32 4294901760, %v109_v6 }
  0xcc   :  { %7413 = vmatmul.mubr.f32.gmra.mxu0 %v1090_v58  ;;  %13406 = vst [vmem:[#allocation202_spill] sm:$0xff] %v10128_v50  ;;  %v1120_v2 = vand.u32 4294901760, %v1119_v20  ;;  %v10133_v58 = vsub.f32 %v105_v17, %v10112_v44  ;;  %v1130_v17 = vand.u32 4294901760, %v1129_v18  ;;  %v10164_v18 = vsub.f32 %v107_v37, %v10135_v19 }
  0xcd   :  { %7631 = vmatmul.mubr.f32.gmra.mxu1 %v9943_v57  ;;  %7415 = vmatprep.mubr.f32.mxu0 %v1100_v30  ;;  %v13409_v30 = vand.u32 4294901760, %v10093_v0  ;;  %13410 = vst [vmem:[#allocation205_spill] sm:$0xff] %v10148_v53  ;;  %v10151_v57 = vand.u32 4294901760, %v108_v15  ;;  %13412 = vst [vmem:[#allocation207_spill] sm:$0xff] %v10153_v47  ;;  %v10180_v37 = vsub.f32 %v109_v6, %v10153_v47  ;;  %v113_v6 = vld [vmem:[%s12566_s1 + $0x330] sm:$0xff] }
  0xce   :  { %13407 = vst [vmem:[#allocation203_spill] sm:$0xff] %v10133_v58  ;;  %7633 = vmatprep.mubr.f32.mxu1 %v9945_v8  ;;  %v1140_v8 = vand.u32 4294901760, %v1139_v43  ;;  %13414 = vst [vmem:[#allocation208_spill] sm:$0xff] %v10164_v18  ;;  %v13416_v43 = vand.u32 4294901760, %v10128_v50 }
  0xcf   :  { %v1149_v20 = vsub.f32 %v10093_v0, %v13409_v30  ;;  %13411 = vst [vmem:[#allocation206_spill] sm:$0xff] %v10151_v57  ;;  %v13413_v30 = vand.u32 4294901760, %v10110_v25  ;;  %13418 = vst [vmem:[#allocation211_spill] sm:$0xff] %v10180_v37  ;;  %v13419_v0 = vand.u32 4294901760, %v10133_v58 }
  0xd0   :  { %7416 = vmatmul.mubr.f32.gmra.mxu0 %v1110_v48  ;;  %v10177_v48 = vsub.f32 %v108_v15, %v10151_v57  ;;  %v112_v15 = vld [vmem:[%s12566_s1 + $0x328] sm:$0xff] }
  0xd1   :  { %7634 = vmatmul.mubr.f32.gmra.mxu1 %v9962_v28  ;;  %7418 = vmatprep.mubr.f32.mxu0 %v1120_v2  ;;  %v1159_v62 = vsub.f32 %v10110_v25, %v13413_v30  ;;  %v10171_v28 = vand.u32 4294901760, %v110_v52  ;;  %v1150_v2 = vand.u32 4294901760, %v1149_v20  ;;  %v1169_v30 = vsub.f32 %v10128_v50, %v13416_v43 }
  0xd2   :  { %7636 = vmatprep.mubr.f32.mxu1 %v9982_v21  ;;  %13417 = vst [vmem:[#allocation210_spill] sm:$0xff] %v10177_v48  ;;  %v1179_v25 = vsub.f32 %v10133_v58, %v13419_v0  ;;  %v12972_v20 = vand.u32 4294901760, %v10177_v48  ;;  %v10204_v58 = vand.u32 4294901760, %v112_v15  ;;  %v13424_v50 = vand.u32 4294901760, %v10164_v18 }
  0xd3   :  { %13415 = vst [vmem:[#allocation209_spill] sm:$0xff] %v10171_v28  ;;  %v1160_v21 = vand.u32 4294901760, %v1159_v62  ;;  %v10200_v0 = vsub.f32 %v110_v52, %v10171_v28  ;;  %v1170_v43 = vand.u32 4294901760, %v1169_v30  ;;  %v10213_v52 = vand.u32 4294901760, %v113_v6 }
  0xd4   :  { %7419 = vmatmul.mubr.f32.gmra.mxu0 %v1130_v17  ;;  %v10187_v17 = vand.u32 4294901760, %v111_v35  ;;  %13423 = vst [vmem:[#allocation214_spill] sm:$0xff] %v10204_v58  ;;  %v1199_v46 = vsub.f32 %v10164_v18, %v13424_v50  ;;  %v1209_v50 = vsub.f32 %v10177_v48, %v12972_v20 }
  0xd5   :  { %7637 = vmatmul.mubr.f32.gmra.mxu1 %v9991_v39  ;;  %7421 = vmatprep.mubr.f32.mxu0 %v1140_v8  ;;  %v13421_v8 = vand.u32 4294901760, %v10148_v53  ;;  %13422 = vst [vmem:[#allocation213_spill] sm:$0xff] %v10200_v0  ;;  %v12975_v39 = vand.u32 4294901760, %v10180_v37  ;;  %13426 = vst [vmem:[#allocation216_spill] sm:$0xff] %v10213_v52  ;;  %v10240_v20 = vsub.f32 %v113_v6, %v10213_v52 }
  0xd6   :  { %13420 = vst [vmem:[#allocation212_spill] sm:$0xff] %v10187_v17  ;;  %7639 = vmatprep.mubr.f32.mxu1 %v10005_v32  ;;  %v1180_v32 = vand.u32 4294901760, %v1179_v25 }
  0xd7   :  { %v1189_v62 = vsub.f32 %v10148_v53, %v13421_v8  ;;  %v10211_v8 = vsub.f32 %v111_v35, %v10187_v17  ;;  %v1219_v35 = vsub.f32 %v10180_v37, %v12975_v39  ;;  %13429 = vst [vmem:[#allocation219_spill] sm:$0xff] %v10240_v20  ;;  %v13431_v39 = vand.u32 4294901760, %v10200_v0 }
  0xd8   :  { %7422 = vmatmul.mubr.f32.gmra.mxu0 %v1150_v2  ;;  %v114_v2 = vld [vmem:[%s12566_s1 + $0x338] sm:$0xff]  ;;  %v13441_v53 = vand.u32 4294901760, %v10240_v20 }
  0xd9   :  { %7640 = vmatmul.mubr.f32.gmra.mxu1 %v10024_v42  ;;  %7424 = vmatprep.mubr.f32.mxu0 %v1160_v21  ;;  %13425 = vst [vmem:[#allocation215_spill] sm:$0xff] %v10211_v8  ;;  %v115_v21 = vld [vmem:[%s12566_s1 + $0x340] sm:$0xff]  ;;  %v1190_v25 = vand.u32 4294901760, %v1189_v62  ;;  %v10230_v42 = vsub.f32 %v112_v15, %v10204_v58  ;;  %v116_v62 = vld [vmem:[%s12566_s1 + $0x348] sm:$0xff]  ;;  %v117_v15 = vld [vmem:[%s12566_s1 + $0x350] sm:$0xff]  ;;  %v1229_v37 = vsub.f32 %v10200_v0, %v13431_v39  ;;  %v13434_v18 = vand.u32 4294901760, %v10211_v8 }
  0xda   :  { %7642 = vmatprep.mubr.f32.mxu1 %v10031_v23  ;;  %v10232_v23 = vand.u32 4294901760, %v114_v2  ;;  %v10242_v48 = vand.u32 4294901760, %v115_v21 }
  0xdb   :  { %13427 = vst [vmem:[#allocation217_spill] sm:$0xff] %v10230_v42  ;;  %v1239_v39 = vsub.f32 %v10211_v8, %v13434_v18  ;;  %v1230_v18 = vand.u32 4294901760, %v1229_v37  ;;  %v1259_v37 = vsub.f32 %v10240_v20, %v13441_v53 }
  0xdc   :  { %7425 = vmatmul.mubr.f32.gmra.mxu0 %v1170_v43  ;;  %13428 = vst [vmem:[#allocation218_spill] sm:$0xff] %v10232_v23  ;;  %v1200_v43 = vand.u32 4294901760, %v1199_v46  ;;  %13430 = vst [vmem:[#allocation220_spill] sm:$0xff] %v10242_v48  ;;  %v1210_v46 = vand.u32 4294901760, %v1209_v50  ;;  %v10255_v30 = vsub.f32 %v114_v2, %v10232_v23  ;;  %v10266_v50 = vsub.f32 %v115_v21, %v10242_v48  ;;  %v119_v2 = vld [vmem:[%s12566_s1 + $0x360] sm:$0xff] }
  0xdd   :  { %7643 = vmatmul.mubr.f32.gmra.mxu1 %v10047_v33  ;;  %7427 = vmatprep.mubr.f32.mxu0 %v1180_v32  ;;  %v10251_v33 = vand.u32 4294901760, %v116_v62  ;;  %v1220_v32 = vand.u32 4294901760, %v1219_v35  ;;  %v10268_v35 = vand.u32 4294901760, %v117_v15  ;;  %v10283_v0 = vand.u32 4294901760, %v119_v2 }
  0xde   :  { %7645 = vmatprep.mubr.f32.mxu1 %v10049_v55  ;;  %13433 = vst [vmem:[#allocation222_spill] sm:$0xff] %v10255_v30  ;;  %v118_v55 = vld [vmem:[%s12566_s1 + $0x358] sm:$0xff]  ;;  %13435 = vst [vmem:[#allocation223_spill] sm:$0xff] %v10266_v50  ;;  %v1260_v22 = vand.u32 4294901760, %v1259_v37 }
  0xdf   :  { %13432 = vst [vmem:[#allocation221_spill] sm:$0xff] %v10251_v33  ;;  %13436 = vst [vmem:[#allocation224_spill] sm:$0xff] %v10268_v35  ;;  %v10275_v6 = vsub.f32 %v116_v62, %v10251_v33  ;;  %v1240_v62 = vand.u32 4294901760, %v1239_v39 }
  0xe0   :  { %7428 = vmatmul.mubr.f32.gmra.mxu0 %v1190_v25  ;;  %v13439_v25 = vand.u32 4294901760, %v10230_v42  ;;  %13440 = vst [vmem:[#allocation227_spill] sm:$0xff] %v10283_v0 }
  0xe1   :  { %7646 = vmatmul.mubr.f32.gmra.mxu1 %v10069_v12  ;;  %7430 = vmatprep.mubr.f32.mxu0 %v1200_v43  ;;  %13437 = vst [vmem:[#allocation225_spill] sm:$0xff] %v10275_v6  ;;  %v10277_v43 = vand.u32 4294901760, %v118_v55 }
  0xe2   :  { %7648 = vmatprep.mubr.f32.mxu1 %v10083_v29  ;;  %v1249_v21 = vsub.f32 %v10230_v42, %v13439_v25  ;;  %v120_v29 = vld [vmem:[%s12566_s1 + $0x368] sm:$0xff]  ;;  %v10294_v25 = vsub.f32 %v117_v15, %v10268_v35  ;;  %v121_v42 = vld [vmem:[%s12566_s1 + $0x370] sm:$0xff]  ;;  %v13445_v15 = vand.u32 4294901760, %v10255_v30 }
  0xe3   :  { %13438 = vst [vmem:[#allocation226_spill] sm:$0xff] %v10277_v43  ;;  %v10304_v39 = vand.u32 4294901760, %v120_v29  ;;  %v10317_v59 = vand.u32 4294901760, %v121_v42 }
  0xe4   :  { %v7288_v12 = vpop.f32.mrf.mxu0  ;;  %7431 = vmatmul.mubr.f32.gmra.mxu0 %v1210_v46  ;;  %13442 = vst [vmem:[#allocation228_spill] sm:$0xff] %v10294_v25  ;;  %v1250_v46 = vand.u32 4294901760, %v1249_v21  ;;  %v1269_v20 = vsub.f32 %v10255_v30, %v13445_v15  ;;  %v13452_v14 = vand.u32 4294901760, %v10294_v25 }
  0xe5   :  { %7649 = vmatmul.mubr.f32.gmra.mxu1 %v10100_v60  ;;  %7433 = vmatprep.mubr.f32.mxu0 %v1220_v32  ;;  %v10302_v32 = vsub.f32 %v118_v55, %v10277_v43  ;;  %13444 = vst [vmem:[#allocation230_spill] sm:$0xff] %v10304_v39  ;;  %v13447_v60 = vand.u32 4294901760, %v10266_v50  ;;  %13448 = vst [vmem:[#allocation232_spill] sm:$0xff] %v10317_v59  ;;  %v10331_v15 = vsub.f32 %v120_v29, %v10304_v39 }
  0xe6   :  { %v242_v8 = vpop.f32.mrf.mxu0  ;;  %7651 = vmatprep.mubr.f32.mxu1 %v10112_v44  ;;  %v10310_v44 = vsub.f32 %v119_v2, %v10283_v0  ;;  %v123_v2 = vld [vmem:[%s12566_s1 + $0x380] sm:$0xff] }
  0xe7   :  { %13443 = vst [vmem:[#allocation229_spill] sm:$0xff] %v10302_v32  ;;  %v1279_v55 = vsub.f32 %v10266_v50, %v13447_v60  ;;  %13450 = vst [vmem:[#allocation233_spill] sm:$0xff] %v10331_v15  ;;  %v10341_v60 = vsub.f32 %v121_v42, %v10317_v59  ;;  %v10343_v29 = vand.u32 4294901760, %v123_v2  ;;  %v13456_v42 = vand.u32 4294901760, %v10302_v32 }
  0xe8   :  { %v7291_v53 = vpop.f32.mrf.mxu0  ;;  %7434 = vmatmul.mubr.f32.gmra.mxu0 %v1230_v18  ;;  %13446 = vst [vmem:[#allocation231_spill] sm:$0xff] %v10310_v44  ;;  %v122_v18 = vld [vmem:[%s12566_s1 + $0x378] sm:$0xff] }
  0xe9   :  { %7652 = vmatmul.mubr.f32.gmra.mxu1 %v10119_v51  ;;  %7436 = vmatprep.mubr.f32.mxu0 %v1240_v62  ;;  %v13449_v62 = vand.u32 4294901760, %v10275_v6  ;;  %v1270_v51 = vand.u32 4294901760, %v1269_v20  ;;  %v10334_v30 = vand.u32 4294901760, %v122_v18  ;;  %v1280_v49 = vand.u32 4294901760, %v1279_v55  ;;  %13453 = vst [vmem:[#allocation235_spill] sm:$0xff] %v10341_v60  ;;  %13454 = vst [vmem:[#allocation236_spill] sm:$0xff] %v10343_v29 }
  0xea   :  { %v262_v21 = vpop.f32.mrf.mxu0  ;;  %7654 = vmatprep.mubr.f32.mxu1 %v10135_v19  ;;  %v124_v20 = vld [vmem:[%s12566_s1 + $0x388] sm:$0xff] }
  0xeb   :  { %v1289_v37 = vsub.f32 %v10275_v6, %v13449_v62  ;;  %13451 = vst [vmem:[#allocation234_spill] sm:$0xff] %v10334_v30  ;;  %v1299_v62 = vsub.f32 %v10294_v25, %v13452_v14 }
  0xec   :  { %v7294_v7 = vpop.f32.mrf.mxu0  ;;  %7437 = vmatmul.mubr.f32.gmra.mxu0 %v1250_v46 }
  0xed   :  { %v7512_v19 = vpop.f32.mrf.mxu1  ;;  %7655 = vmatmul.mubr.f32.gmra.mxu1 %v10151_v57  ;;  %7439 = vmatprep.mubr.f32.mxu0 %v1260_v22  ;;  %v125_v22 = vld [vmem:[%s12566_s1 + $0x390] sm:$0xff]  ;;  %v1290_v14 = vand.u32 4294901760, %v1289_v37  ;;  %v1309_v57 = vsub.f32 %v10302_v32, %v13456_v42  ;;  %v126_v37 = vld [vmem:[%s12566_s1 + $0x398] sm:$0xff] }
  0xee   :  { %v10348_v46 = vadd.f32 %v7512_v19, %v7288_v12  ;;  %v282_v50 = vpop.f32.mrf.mxu0  ;;  %7657 = vmatprep.mubr.f32.mxu1 %v10153_v47  ;;  %v13458_v12 = vand.u32 4294901760, %v10310_v44  ;;  %v10364_v47 = vsub.f32 %v122_v18, %v10334_v30 }
  0xef   :  { %v1663_v55 = vpop.f32.mrf.mxu1 }
  0xf0   :  { %13455 = vst [vmem:[#allocation237_spill] sm:$0xff] %v10348_v46  ;;  %v10358_v6 = vadd.f32 %v1663_v55, %v242_v8  ;;  %v7297_v45 = vpop.f32.mrf.mxu0  ;;  %7440 = vmatmul.mubr.f32.gmra.mxu0 %v1270_v51  ;;  %v1319_v19 = vsub.f32 %v10310_v44, %v13458_v12  ;;  %13459 = vst [vmem:[#allocation239_spill] sm:$0xff] %v10364_v47  ;;  %v10366_v46 = vand.u32 4294901760, %v124_v20  ;;  %v1300_v8 = vand.u32 4294901760, %v1299_v62  ;;  %v127_v44 = vld [vmem:[%s12566_s1 + $0x3a0] sm:$0xff] }
  0xf1   :  { %v7515_v42 = vpop.f32.mrf.mxu1  ;;  %7658 = vmatmul.mubr.f32.gmra.mxu1 %v10171_v28  ;;  %7442 = vmatprep.mubr.f32.mxu0 %v1280_v49  ;;  %v10374_v55 = vsub.f32 %v123_v2, %v10343_v29  ;;  %v10376_v12 = vand.u32 4294901760, %v125_v22  ;;  %v1310_v28 = vand.u32 4294901760, %v1309_v57  ;;  %v13464_v49 = vand.u32 4294901760, %v10331_v15  ;;  %v128_v57 = vld [vmem:[%s12566_s1 + $0x3a8] sm:$0xff] }
  0xf2   :  { %13457 = vst [vmem:[#allocation238_spill] sm:$0xff] %v10358_v6  ;;  %13460 = vst [vmem:[#allocation240_spill] sm:$0xff] %v10366_v46  ;;  %v10378_v18 = vadd.f32 %v7515_v42, %v7291_v53  ;;  %v302_v25 = vpop.f32.mrf.mxu0  ;;  %7660 = vmatprep.mubr.f32.mxu1 %v10187_v17  ;;  %v10387_v51 = vand.u32 4294901760, %v126_v37  ;;  %v1320_v53 = vand.u32 4294901760, %v1319_v19  ;;  %v10393_v17 = vsub.f32 %v124_v20, %v10366_v46  ;;  %v129_v20 = vld [vmem:[%s12566_s1 + $0x3b0] sm:$0xff] }
  0xf3   :  { %13461 = vst [vmem:[#allocation241_spill] sm:$0xff] %v10374_v55  ;;  %13462 = vst [vmem:[#allocation242_spill] sm:$0xff] %v10376_v12  ;;  %v1675_v32 = vpop.f32.mrf.mxu1  ;;  %v1329_v62 = vsub.f32 %v10331_v15, %v13464_v49  ;;  %v13468_v49 = vand.u32 4294901760, %v10341_v60  ;;  %v10406_v19 = vand.u32 4294901760, %v127_v44 }
  0xf4   :  { %13463 = vst [vmem:[#allocation243_spill] sm:$0xff] %v10378_v18  ;;  %13465 = vst [vmem:[#allocation244_spill] sm:$0xff] %v10387_v51  ;;  %v10389_v2 = vadd.f32 %v1675_v32, %v262_v21  ;;  %v7300_v6 = vpop.f32.mrf.mxu0  ;;  %7443 = vmatmul.mubr.f32.gmra.mxu0 %v1290_v14  ;;  %v10404_v14 = vsub.f32 %v125_v22, %v10376_v12  ;;  %v10417_v21 = vand.u32 4294901760, %v128_v57 }
  0xf5   :  { %13467 = vst [vmem:[#allocation246_spill] sm:$0xff] %v10393_v17  ;;  %v7518_v18 = vpop.f32.mrf.mxu1  ;;  %7661 = vmatmul.mubr.f32.gmra.mxu1 %v10204_v58  ;;  %7445 = vmatprep.mubr.f32.mxu0 %v1300_v8  ;;  %v1339_v32 = vsub.f32 %v10341_v60, %v13468_v49  ;;  %13470 = vst [vmem:[#allocation248_spill] sm:$0xff] %v10406_v19  ;;  %v1330_v58 = vand.u32 4294901760, %v1329_v62  ;;  %v10415_v49 = vsub.f32 %v126_v37, %v10387_v51  ;;  %v130_v62 = vld [vmem:[%s12566_s1 + $0x3b8] sm:$0xff] }
  0xf6   :  { %13466 = vst [vmem:[#allocation245_spill] sm:$0xff] %v10389_v2  ;;  %13469 = vst [vmem:[#allocation247_spill] sm:$0xff] %v10404_v14  ;;  %v10411_v42 = vadd.f32 %v7518_v18, %v7294_v7  ;;  %v322_v15 = vpop.f32.mrf.mxu0  ;;  %7663 = vmatprep.mubr.f32.mxu1 %v10213_v52  ;;  %v13475_v2 = vand.u32 4294901760, %v10364_v47  ;;  %v10425_v18 = vand.u32 4294901760, %v129_v20 }
  0xf7   :  { %v1687_v8 = vpop.f32.mrf.mxu1  ;;  %13472 = vst [vmem:[#allocation250_spill] sm:$0xff] %v10415_v49  ;;  %13473 = vst [vmem:[#allocation251_spill] sm:$0xff] %v10417_v21 }
  0xf8   :  { %13471 = vst [vmem:[#allocation249_spill] sm:$0xff] %v10411_v42  ;;  %v10419_v22 = vadd.f32 %v1687_v8, %v282_v50  ;;  %v7303_v60 = vpop.f32.mrf.mxu0  ;;  %7446 = vmatmul.mubr.f32.gmra.mxu0 %v1310_v28  ;;  %v1349_v31 = vsub.f32 %v10364_v47, %v13475_v2  ;;  %13476 = vst [vmem:[#allocation253_spill] sm:$0xff] %v10425_v18  ;;  %v1340_v50 = vand.u32 4294901760, %v1339_v32  ;;  %v13477_v8 = vand.u32 4294901760, %v10374_v55 }
  0xf9   :  { %v7521_v37 = vpop.f32.mrf.mxu1  ;;  %7664 = vmatmul.mubr.f32.gmra.mxu1 %v10232_v23  ;;  %7448 = vmatprep.mubr.f32.mxu0 %v1320_v53  ;;  %v10436_v2 = vsub.f32 %v127_v44, %v10406_v19  ;;  %v131_v23 = vld [vmem:[%s12566_s1 + $0x3c0] sm:$0xff]  ;;  %v13485_v32 = vand.u32 4294901760, %v10404_v14 }
  0xfa   :  { %13474 = vst [vmem:[#allocation252_spill] sm:$0xff] %v10419_v22  ;;  %v1359_v28 = vsub.f32 %v10374_v55, %v13477_v8  ;;  %v10438_v7 = vadd.f32 %v7521_v37, %v7297_v45  ;;  %v342_v47 = vpop.f32.mrf.mxu0  ;;  %7666 = vmatprep.mubr.f32.mxu1 %v10242_v48  ;;  %v10446_v22 = vsub.f32 %v128_v57, %v10417_v21  ;;  %v10448_v8 = vand.u32 4294901760, %v130_v62 }
  0xfb   :  { %13478 = vst [vmem:[#allocation254_spill] sm:$0xff] %v10436_v2  ;;  %v1699_v53 = vpop.f32.mrf.mxu1  ;;  %v1350_v45 = vand.u32 4294901760, %v1349_v31  ;;  %v13483_v37 = vand.u32 4294901760, %v10393_v17  ;;  %v10456_v55 = vsub.f32 %v129_v20, %v10425_v18  ;;  %v132_v31 = vld [vmem:[%s12566_s1 + $0x3c8] sm:$0xff] }
  0xfc   :  { %13479 = vst [vmem:[#allocation255_spill] sm:$0xff] %v10438_v7  ;;  %13480 = vst [vmem:[#allocation256_spill] sm:$0xff] %v10446_v22  ;;  %v10450_v52 = vadd.f32 %v1699_v53, %v302_v25  ;;  %v7306_v44 = vpop.f32.mrf.mxu0  ;;  %7449 = vmatmul.mubr.f32.gmra.mxu0 %v1330_v58  ;;  %v1360_v57 = vand.u32 4294901760, %v1359_v28  ;;  %v1379_v25 = vsub.f32 %v10404_v14, %v13485_v32  ;;  %v10463_v58 = vand.u32 4294901760, %v131_v23 }
  0xfd   :  { %13481 = vst [vmem:[#allocation257_spill] sm:$0xff] %v10448_v8  ;;  %v1369_v48 = vsub.f32 %v10393_v17, %v13483_v37  ;;  %13484 = vst [vmem:[#allocation259_spill] sm:$0xff] %v10456_v55  ;;  %v7524_v7 = vpop.f32.mrf.mxu1  ;;  %7667 = vmatmul.mubr.f32.gmra.mxu1 %v10251_v33  ;;  %7451 = vmatprep.mubr.f32.mxu0 %v1340_v50  ;;  %v133_v50 = vld [vmem:[%s12566_s1 + $0x3d0] sm:$0xff]  ;;  %v13488_v32 = vand.u32 4294901760, %v10415_v49  ;;  %v10479_v14 = vsub.f32 %v130_v62, %v10448_v8  ;;  %v135_v33 = vld [vmem:[%s12566_s1 + $0x3e0] sm:$0xff] }
  0xfe   :  { %13482 = vst [vmem:[#allocation258_spill] sm:$0xff] %v10450_v52  ;;  %13486 = vst [vmem:[#allocation260_spill] sm:$0xff] %v10463_v58  ;;  %v10468_v37 = vadd.f32 %v7524_v7, %v7300_v6  ;;  %v362_v20 = vpop.f32.mrf.mxu0  ;;  %7669 = vmatprep.mubr.f32.mxu1 %v10268_v35  ;;  %v134_v52 = vld [vmem:[%s12566_s1 + $0x3d8] sm:$0xff]  ;;  %v13492_v62 = vand.u32 4294901760, %v10436_v2 }
  0xff   :  { %v1711_v28 = vpop.f32.mrf.mxu1  ;;  %v1389_v53 = vsub.f32 %v10415_v49, %v13488_v32  ;;  %13489 = vst [vmem:[#allocation262_spill] sm:$0xff] %v10479_v14  ;;  %v1370_v7 = vand.u32 4294901760, %v1369_v48  ;;  %v1380_v32 = vand.u32 4294901760, %v1379_v25  ;;  %v10496_v48 = vand.u32 4294901760, %v133_v50 }
 0x100   :  { %13487 = vst [vmem:[#allocation261_spill] sm:$0xff] %v10468_v37  ;;  %v10481_v17 = vadd.f32 %v1711_v28, %v322_v15  ;;  %v7309_v6 = vpop.f32.mrf.mxu0  ;;  %7452 = vmatmul.mubr.f32.gmra.mxu0 %v1350_v45  ;;  %v10484_v37 = vand.u32 4294901760, %v132_v31  ;;  %v1399_v15 = vsub.f32 %v10436_v2, %v13492_v62  ;;  %v10494_v45 = vsub.f32 %v131_v23, %v10463_v58 }
 0x101   :  { %v7527_v42 = vpop.f32.mrf.mxu1  ;;  %7670 = vmatmul.mubr.f32.gmra.mxu1 %v10277_v43  ;;  %7454 = vmatprep.mubr.f32.mxu0 %v1360_v57  ;;  %13494 = vst [vmem:[#allocation266_spill] sm:$0xff] %v10496_v48  ;;  %v13496_v25 = vand.u32 4294901760, %v10446_v22  ;;  %v10508_v23 = vand.u32 4294901760, %v134_v52 }
 0x102   :  { %13490 = vst [vmem:[#allocation263_spill] sm:$0xff] %v10481_v17  ;;  %13491 = vst [vmem:[#allocation264_spill] sm:$0xff] %v10484_v37  ;;  %v10498_v28 = vadd.f32 %v7527_v42, %v7303_v60  ;;  %v382_v35 = vpop.f32.mrf.mxu0  ;;  %7672 = vmatprep.mubr.f32.mxu1 %v10283_v0  ;;  %v1390_v42 = vand.u32 4294901760, %v1389_v53  ;;  %v13498_v0 = vand.u32 4294901760, %v10456_v55  ;;  %v136_v53 = vld [vmem:[%s12566_s1 + $0x3e8] sm:$0xff] }
 0x103   :  { %13493 = vst [vmem:[#allocation265_spill] sm:$0xff] %v10494_v45  ;;  %v1723_v57 = vpop.f32.mrf.mxu1  ;;  %v1409_v43 = vsub.f32 %v10446_v22, %v13496_v25  ;;  %13497 = vst [vmem:[#allocation268_spill] sm:$0xff] %v10508_v23  ;;  %v1400_v25 = vand.u32 4294901760, %v1399_v15  ;;  %v10543_v22 = vand.u32 4294901760, %v136_v53 }
 0x104   :  { %13495 = vst [vmem:[#allocation267_spill] sm:$0xff] %v10498_v28  ;;  %v10510_v2 = vadd.f32 %v1723_v57, %v342_v47  ;;  %v7312_v60 = vpop.f32.mrf.mxu0  ;;  %7455 = vmatmul.mubr.f32.gmra.mxu0 %v1370_v7  ;;  %v1419_v49 = vsub.f32 %v10456_v55, %v13498_v0  ;;  %v10516_v28 = vsub.f32 %v132_v31, %v10484_v37  ;;  %v10523_v57 = vand.u32 4294901760, %v135_v33  ;;  %v137_v7 = vld [vmem:[%s12566_s1 + $0x3f0] sm:$0xff] }
 0x105   :  { %v7530_v17 = vpop.f32.mrf.mxu1  ;;  %7673 = vmatmul.mubr.f32.gmra.mxu1 %v10304_v39  ;;  %7457 = vmatprep.mubr.f32.mxu0 %v1380_v32  ;;  %v10521_v47 = vsub.f32 %v133_v50, %v10496_v48  ;;  %v1410_v15 = vand.u32 4294901760, %v1409_v43  ;;  %v13503_v50 = vand.u32 4294901760, %v10479_v14  ;;  %v10538_v39 = vsub.f32 %v134_v52, %v10508_v23  ;;  %13505 = vst [vmem:[#allocation274_spill] sm:$0xff] %v10543_v22 }
 0x106   :  { %13499 = vst [vmem:[#allocation269_spill] sm:$0xff] %v10516_v28  ;;  %13501 = vst [vmem:[#allocation271_spill] sm:$0xff] %v10523_v57  ;;  %v10528_v0 = vadd.f32 %v7530_v17, %v7306_v44  ;;  %v402_v31 = vpop.f32.mrf.mxu0  ;;  %7675 = vmatprep.mubr.f32.mxu1 %v10317_v59  ;;  %v1420_v44 = vand.u32 4294901760, %v1419_v49  ;;  %v13506_v43 = vand.u32 4294901760, %v10494_v45  ;;  %v138_v49 = vld [vmem:[%s12566_s1 + $0x3f8] sm:$0xff] }
 0x107   :  { %13500 = vst [vmem:[#allocation270_spill] sm:$0xff] %v10521_v47  ;;  %v1735_v32 = vpop.f32.mrf.mxu1  ;;  %v1429_v62 = vsub.f32 %v10479_v14, %v13503_v50 }
 0x108   :  { %13502 = vst [vmem:[#allocation272_spill] sm:$0xff] %v10528_v0  ;;  %v10540_v55 = vadd.f32 %v1735_v32, %v362_v20  ;;  %v7315_v17 = vpop.f32.mrf.mxu0  ;;  %7458 = vmatmul.mubr.f32.gmra.mxu0 %v1390_v42  ;;  %v1439_v50 = vsub.f32 %v10494_v45, %v13506_v43  ;;  %v10551_v20 = vsub.f32 %v135_v33, %v10523_v57  ;;  %v10553_v32 = vand.u32 4294901760, %v137_v7 }
 0x109   :  { %v7533_v0 = vpop.f32.mrf.mxu1  ;;  %7676 = vmatmul.mubr.f32.gmra.mxu1 %v10334_v30  ;;  %7460 = vmatprep.mubr.f32.mxu0 %v1400_v25  ;;  %v1430_v30 = vand.u32 4294901760, %v1429_v62  ;;  %v13508_v33 = vand.u32 4294901760, %v10516_v28  ;;  %v13510_v43 = vand.u32 4294901760, %v10521_v47 }
 0x10a   :  { %13504 = vst [vmem:[#allocation273_spill] sm:$0xff] %v10540_v55  ;;  %13507 = vst [vmem:[#allocation275_spill] sm:$0xff] %v10553_v32  ;;  %v10558_v42 = vadd.f32 %v7533_v0, %v7309_v6  ;;  %v422_v59 = vpop.f32.mrf.mxu0  ;;  %7678 = vmatprep.mubr.f32.mxu1 %v10343_v29  ;;  %v10568_v55 = vsub.f32 %v136_v53, %v10543_v22  ;;  %v10570_v6 = vand.u32 4294901760, %v138_v49  ;;  %v1440_v62 = vand.u32 4294901760, %v1439_v50 }
 0x10b   :  { %v1747_v25 = vpop.f32.mrf.mxu1  ;;  %v1449_v14 = vsub.f32 %v10516_v28, %v13508_v33  ;;  %v13511_v28 = vand.u32 4294901760, %v10538_v39 }
 0x10c   :  { %v10562_v45 = vadd.f32 %v1747_v25, %v382_v35  ;;  %v7318_v52 = vpop.f32.mrf.mxu0  ;;  %7461 = vmatmul.mubr.f32.gmra.mxu0 %v1410_v15  ;;  %13509 = vst [vmem:[#allocation276_spill] sm:$0xff] %v10570_v6  ;;  %v1459_v35 = vsub.f32 %v10521_v47, %v13510_v43  ;;  %v10578_v25 = vsub.f32 %v137_v7, %v10553_v32 }
 0x10d   :  { %v7536_v0 = vpop.f32.mrf.mxu1  ;;  %7679 = vmatmul.mubr.f32.gmra.mxu1 %v10366_v46  ;;  %7463 = vmatprep.mubr.f32.mxu0 %v1420_v44  ;;  %v1469_v44 = vsub.f32 %v10538_v39, %v13511_v28  ;;  %v1450_v43 = vand.u32 4294901760, %v1449_v14  ;;  %v10590_v7 = vsub.f32 %v138_v49, %v10570_v6 }
 0x10e   :  { %v10580_v33 = vadd.f32 %v7536_v0, %v7312_v60  ;;  %v442_v53 = vpop.f32.mrf.mxu0  ;;  %7681 = vmatprep.mubr.f32.mxu1 %v10376_v12  ;;  %v1460_v0 = vand.u32 4294901760, %v1459_v35  ;;  %v13512_v12 = vand.u32 4294901760, %v10551_v20 }
 0x10f   :  { %v1759_v29 = vpop.f32.mrf.mxu1  ;;  %v1470_v15 = vand.u32 4294901760, %v1469_v44 }
 0x110   :  { %v10586_v50 = vadd.f32 %v1759_v29, %v402_v31  ;;  %v7321_v46 = vpop.f32.mrf.mxu0  ;;  %7464 = vmatmul.mubr.f32.gmra.mxu0 %v1430_v30  ;;  %v1479_v47 = vsub.f32 %v10551_v20, %v13512_v12  ;;  %v13098_v29 = vand.u32 4294901760, %v10578_v25 }
 0x111   :  { %v7539_v60 = vpop.f32.mrf.mxu1  ;;  %7682 = vmatmul.mubr.f32.gmra.mxu1 %v10387_v51  ;;  %7466 = vmatprep.mubr.f32.mxu0 %v1440_v62  ;;  %v13513_v62 = vand.u32 4294901760, %v10568_v55 }
 0x112   :  { %v10597_v28 = vadd.f32 %v7539_v60, %v7315_v17  ;;  %v462_v30 = vpop.f32.mrf.mxu0  ;;  %7684 = vmatprep.mubr.f32.mxu1 %v10406_v19  ;;  %v1480_v17 = vand.u32 4294901760, %v1479_v47  ;;  %v1499_v60 = vsub.f32 %v10578_v25, %v13098_v29  ;;  %v13514_v19 = vand.u32 4294901760, %v10590_v7 }
 0x113   :  { %v1771_v14 = vpop.f32.mrf.mxu1  ;;  %v1489_v35 = vsub.f32 %v10568_v55, %v13513_v62 }
 0x114   :  { %v10600_v31 = vadd.f32 %v1771_v14, %v422_v59  ;;  %v7324_v49 = vpop.f32.mrf.mxu0  ;;  %7467 = vmatmul.mubr.f32.gmra.mxu0 %v1450_v43  ;;  %v1500_v29 = vand.u32 4294901760, %v1499_v60 }
 0x115   :  { %v7542_v12 = vpop.f32.mrf.mxu1  ;;  %7685 = vmatmul.mubr.f32.gmra.mxu1 %v10417_v21  ;;  %7469 = vmatprep.mubr.f32.mxu0 %v1460_v0  ;;  %v1490_v51 = vand.u32 4294901760, %v1489_v35  ;;  %v1509_v0 = vsub.f32 %v10590_v7, %v13514_v19 }
 0x116   :  { %v10610_v59 = vadd.f32 %v7542_v12, %v7318_v52  ;;  %v482_v14 = vpop.f32.mrf.mxu0  ;;  %7687 = vmatprep.mubr.f32.mxu1 %v10425_v18 }
 0x117   :  { %v1783_v44 = vpop.f32.mrf.mxu1 }
 0x118   :  { %v10613_v43 = vadd.f32 %v1783_v44, %v442_v53  ;;  %v7327_v62 = vpop.f32.mrf.mxu0  ;;  %7470 = vmatmul.mubr.f32.gmra.mxu0 %v1470_v15  ;;  %v1510_v15 = vand.u32 4294901760, %v1509_v0 }
 0x119   :  { %v7545_v47 = vpop.f32.mrf.mxu1  ;;  %7688 = vmatmul.mubr.f32.gmra.mxu1 %v10448_v8  ;;  %7472 = vmatprep.mubr.f32.mxu0 %v1480_v17 }
 0x11a   :  { %v10619_v52 = vadd.f32 %v7545_v47, %v7321_v46  ;;  %v502_v12 = vpop.f32.mrf.mxu0  ;;  %7690 = vmatprep.mubr.f32.mxu1 %v10463_v58 }
 0x11b   :  { %v1795_v18 = vpop.f32.mrf.mxu1 }
 0x11c   :  { %v10622_v53 = vadd.f32 %v1795_v18, %v462_v30  ;;  %v7330_v44 = vpop.f32.mrf.mxu0  ;;  %7473 = vmatmul.mubr.f32.gmra.mxu0 %v1490_v51  ;;  %v13515_v18 = vld [vmem:[#allocation17_spill] sm:$0xff] }
 0x11d   :  { %v7548_v35 = vpop.f32.mrf.mxu1  ;;  %7691 = vmatmul.mubr.f32.gmra.mxu1 %v10484_v37  ;;  %7475 = vmatprep.mubr.f32.mxu0 %v1500_v29  ;;  %v13522_v37 = vld [vmem:[#allocation4_spill] sm:$0xff] }
 0x11e   :  { %v10625_v19 = vadd.f32 %v7548_v35, %v7324_v49  ;;  %v522_v8 = vpop.f32.mrf.mxu0  ;;  %7693 = vmatprep.mubr.f32.mxu1 %v10496_v48  ;;  %v13516_v35 = vld [vmem:[#allocation19_spill] sm:$0xff] }
 0x11f   :  { %v1807_v46 = vpop.f32.mrf.mxu1 }
 0x120   :  { %v10628_v17 = vadd.f32 %v1807_v46, %v482_v14  ;;  %v7333_v60 = vpop.f32.mrf.mxu0  ;;  %7476 = vmatmul.mubr.f32.gmra.mxu0 %v1510_v15  ;;  %v13517_v15 = vld [vmem:[#allocation26_spill] sm:$0xff] }
 0x121   :  { %v7551_v47 = vpop.f32.mrf.mxu1  ;;  %7694 = vmatmul.mubr.f32.gmra.mxu1 %v10508_v23  ;;  %7734 = vmatprep.mubr.f32.mxu0 %v13515_v18 }
 0x122   :  { %v10632_v51 = vadd.f32 %v7551_v47, %v7327_v62  ;;  %v542_v30 = vpop.f32.mrf.mxu0  ;;  %7696 = vmatprep.mubr.f32.mxu1 %v10523_v57  ;;  %v13518_v47 = vld [vmem:[#allocation3_spill] sm:$0xff]  ;;  %v13519_v57 = vld [vmem:[#allocation29_spill] sm:$0xff] }
 0x123   :  { %v1819_v29 = vpop.f32.mrf.mxu1 }
 0x124   :  { %v10635_v49 = vadd.f32 %v1819_v29, %v502_v12  ;;  %v7336_v0 = vpop.f32.mrf.mxu0  ;;  %7735 = vmatmul.mubr.f32.vlgmr.msra.gmra.mxu0 %v13516_v35 }
 0x125   :  { %v7554_v14 = vpop.f32.mrf.mxu1  ;;  %7697 = vmatmul.mubr.f32.gmra.mxu1 %v10543_v22  ;;  %7737 = vmatprep.mubr.f32.mxu0 %v13517_v15  ;;  %v13520_v22 = vld [vmem:[#allocation33_spill] sm:$0xff] }
 0x126   :  { %v10640_v46 = vadd.f32 %v7554_v14, %v7330_v44  ;;  %v562_v23 = vpop.f32.mrf.mxu0  ;;  %7699 = vmatprep.mubr.f32.mxu1 %v10553_v32  ;;  %8151 = vmatpush3.msra.mxu0 %v13270_v36  ;;  %v13521_v32 = vand.u32 4294901760, %v13515_v18 }
 0x127   :  { %v1831_v62 = vpop.f32.mrf.mxu1  ;;  %8152 = vmatprep.subr.mxu0 %v13518_v47 }
 0x128   :  { %v10645_v12 = vadd.f32 %v1831_v62, %v522_v8  ;;  %v7339_v29 = vpop.f32.mrf.mxu0  ;;  %7738 = vmatmul.mubr.f32.gmra.mxu0 %v13519_v57 }
 0x129   :  { %v7557_v48 = vpop.f32.mrf.mxu1  ;;  %7700 = vmatmul.mubr.f32.gmra.mxu1 %v10570_v6  ;;  %7740 = vmatprep.mubr.f32.mxu0 %v13520_v22  ;;  %v13523_v6 = vand.u32 4294901760, %v13516_v35  ;;  %v13526_v35 = vand.u32 4294901760, %v13520_v22  ;;  %v13529_v22 = vld [vmem:[#allocation43_spill] sm:$0xff] }
 0x12a   :  { %v10650_v44 = vadd.f32 %v7557_v48, %v7333_v60  ;;  %v582_v14 = vpop.f32.mrf.mxu0  ;;  %7958 = vmatprep.mubr.f32.mxu1 %v13521_v32  ;;  %8153 = vmatpush3.msra.mxu0 %v13518_v47  ;;  %v13524_v60 = vand.u32 4294901760, %v13517_v15 }
 0x12b   :  { %v1843_v36 = vpop.f32.mrf.mxu1  ;;  %8154 = vmatprep.subr.mxu0 %v13522_v37 }
 0x12c   :  { %v10656_v8 = vadd.f32 %v1843_v36, %v542_v30  ;;  %v7342_v62 = vpop.f32.mrf.mxu0  ;;  %7741 = vmatmul.mubr.f32.gmra.mxu0 %v8901_v26 }
 0x12d   :  { %v7560_v58 = vpop.f32.mrf.mxu1  ;;  %7959 = vmatmul.mubr.f32.vlgmr.msra.gmra.mxu1 %v13523_v6  ;;  %7743 = vmatprep.mubr.f32.mxu0 %v8921_v56  ;;  %v13525_v6 = vand.u32 4294901760, %v13519_v57 }
 0x12e   :  { %v10662_v48 = vadd.f32 %v7560_v58, %v7336_v0  ;;  %8375 = vmatpush3.msra.mxu1 %v8622_v3  ;;  %v602_v32 = vpop.f32.mrf.mxu0  ;;  %7961 = vmatprep.mubr.f32.mxu1 %v13524_v60 }
 0x12f   :  { %v1855_v18 = vpop.f32.mrf.mxu1  ;;  %8376 = vmatprep.subr.mxu1 %v8624_v4  ;;  %8155 = vmatpush3.msra.mxu0 %v13522_v37 }
 0x130   :  { %v10669_v30 = vadd.f32 %v1855_v18, %v562_v23  ;;  %v7345_v47 = vpop.f32.mrf.mxu0  ;;  %7744 = vmatmul.mubr.f32.gmra.mxu0 %v8939_v61  ;;  %8377 = vmatpush3.msra.mxu1 %v8624_v4  ;;  %v13527_v23 = vld [vmem:[#allocation5_spill] sm:$0xff]  ;;  %v13531_v18 = vld [vmem:[#allocation6_spill] sm:$0xff] }
 0x131   :  { %v7563_v58 = vpop.f32.mrf.mxu1  ;;  %7962 = vmatmul.mubr.f32.gmra.mxu1 %v13525_v6  ;;  %7746 = vmatprep.mubr.f32.mxu0 %v8953_v13 }
 0x132   :  { %v10676_v3 = vadd.f32 %v7563_v58, %v7339_v29  ;;  %v622_v0 = vpop.f32.mrf.mxu0  ;;  %7964 = vmatprep.mubr.f32.mxu1 %v13526_v35  ;;  %8378 = vmatprep.subr.mxu1 %v8626_v5  ;;  %v13528_v29 = vand.u32 4294901760, %v8901_v26 }
 0x133   :  { %v1867_v37 = vpop.f32.mrf.mxu1  ;;  %8379 = vmatpush3.msra.mxu1 %v8626_v5  ;;  %8156 = vmatprep.subr.mxu0 %v13527_v23  ;;  %v13530_v5 = vand.u32 4294901760, %v8921_v56  ;;  %v13533_v56 = vld [vmem:[#allocation46_spill] sm:$0xff] }
 0x134   :  { %v10683_v4 = vadd.f32 %v1867_v37, %v582_v14  ;;  %v7348_v15 = vpop.f32.mrf.mxu0  ;;  %7747 = vmatmul.mubr.f32.gmra.mxu0 %v8964_v40  ;;  %8380 = vmatprep.subr.mxu1 %v8637_v9 }
 0x135   :  { %v7566_v57 = vpop.f32.mrf.mxu1  ;;  %7965 = vmatmul.mubr.f32.gmra.mxu1 %v13528_v29  ;;  %7749 = vmatprep.mubr.f32.mxu0 %v13529_v22 }
 0x136   :  { %v10690_v36 = vadd.f32 %v7566_v57, %v7342_v62  ;;  %v642_v60 = vpop.f32.mrf.mxu0  ;;  %7967 = vmatprep.mubr.f32.mxu1 %v13530_v5  ;;  %8157 = vmatpush3.msra.mxu0 %v13527_v23  ;;  %v13532_v62 = vand.u32 4294901760, %v8939_v61  ;;  %v13535_v23 = vld [vmem:[#allocation7_spill] sm:$0xff]  ;;  %v13536_v61 = vld [vmem:[#allocation48_spill] sm:$0xff]  ;;  %v13537_v5 = vand.u32 4294901760, %v8964_v40 }
 0x137   :  { %v1879_v14 = vpop.f32.mrf.mxu1  ;;  %8381 = vmatpush3.msra.mxu1 %v8637_v9  ;;  %8158 = vmatprep.subr.mxu0 %v13531_v18  ;;  %v13534_v9 = vand.u32 4294901760, %v8953_v13  ;;  %v13538_v13 = vld [vmem:[#allocation50_spill] sm:$0xff] }
 0x138   :  { %v10697_v58 = vadd.f32 %v1879_v14, %v602_v32  ;;  %v7351_v6 = vpop.f32.mrf.mxu0  ;;  %7750 = vmatmul.mubr.f32.gmra.mxu0 %v8991_v1  ;;  %8382 = vmatprep.subr.mxu1 %v8639_v10 }
 0x139   :  { %v7569_v26 = vpop.f32.mrf.mxu1  ;;  %7968 = vmatmul.mubr.f32.gmra.mxu1 %v13532_v62  ;;  %7752 = vmatprep.mubr.f32.mxu0 %v13533_v56 }
 0x13a   :  { %v10704_v35 = vadd.f32 %v7569_v26, %v7345_v47  ;;  %v662_v37 = vpop.f32.mrf.mxu0  ;;  %7970 = vmatprep.mubr.f32.mxu1 %v13534_v9  ;;  %8159 = vmatpush3.msra.mxu0 %v13531_v18  ;;  %v13540_v26 = vld [vmem:[#allocation9_spill] sm:$0xff] }
 0x13b   :  { %v1891_v32 = vpop.f32.mrf.mxu1  ;;  %8383 = vmatpush3.msra.mxu1 %v8639_v10  ;;  %8160 = vmatprep.subr.mxu0 %v13535_v23  ;;  %v13539_v10 = vand.u32 4294901760, %v13529_v22 }
 0x13c   :  { %v10711_v57 = vadd.f32 %v1891_v32, %v622_v0  ;;  %v7354_v29 = vpop.f32.mrf.mxu0  ;;  %7753 = vmatmul.mubr.f32.gmra.mxu0 %v13536_v61  ;;  %8384 = vmatprep.subr.mxu1 %v8641_v11 }
 0x13d   :  { %v7572_v47 = vpop.f32.mrf.mxu1  ;;  %7971 = vmatmul.mubr.f32.gmra.mxu1 %v13537_v5  ;;  %7755 = vmatprep.mubr.f32.mxu0 %v13538_v13 }
 0x13e   :  { %v10718_v14 = vadd.f32 %v7572_v47, %v7348_v15  ;;  %v682_v18 = vpop.f32.mrf.mxu0  ;;  %7973 = vmatprep.mubr.f32.mxu1 %v13539_v10  ;;  %8161 = vmatpush3.msra.mxu0 %v13535_v23  ;;  %v13541_v15 = vand.u32 4294901760, %v8991_v1  ;;  %v13543_v23 = vld [vmem:[#allocation11_spill] sm:$0xff] }
 0x13f   :  { %v1903_v0 = vpop.f32.mrf.mxu1  ;;  %8385 = vmatpush3.msra.mxu1 %v8641_v11  ;;  %8162 = vmatprep.subr.mxu0 %v13540_v26  ;;  %v13542_v11 = vand.u32 4294901760, %v13533_v56  ;;  %v13545_v56 = vld [vmem:[#allocation55_spill] sm:$0xff] }
 0x140   :  { %v10725_v62 = vadd.f32 %v1903_v0, %v642_v60  ;;  %v7357_v9 = vpop.f32.mrf.mxu0  ;;  %7756 = vmatmul.mubr.f32.gmra.mxu0 %v9050_v63  ;;  %8386 = vmatprep.subr.mxu1 %v8656_v16 }
 0x141   :  { %v7575_v40 = vpop.f32.mrf.mxu1  ;;  %7974 = vmatmul.mubr.f32.gmra.mxu1 %v13541_v15  ;;  %7758 = vmatprep.mubr.f32.mxu0 %v9065_v38 }
 0x142   :  { %v10732_v22 = vadd.f32 %v7575_v40, %v7351_v6  ;;  %v702_v32 = vpop.f32.mrf.mxu0  ;;  %7976 = vmatprep.mubr.f32.mxu1 %v13542_v11  ;;  %8163 = vmatpush3.msra.mxu0 %v13540_v26  ;;  %v13544_v6 = vand.u32 4294901760, %v13536_v61  ;;  %v13547_v26 = vld [vmem:[#allocation13_spill] sm:$0xff]  ;;  %v13549_v11 = vand.u32 4294901760, %v9050_v63  ;;  %v13552_v63 = vld [vmem:[#allocation60_spill] sm:$0xff] }
 0x143   :  { %v1915_v60 = vpop.f32.mrf.mxu1  ;;  %8387 = vmatpush3.msra.mxu1 %v8656_v16  ;;  %8164 = vmatprep.subr.mxu0 %v13543_v23  ;;  %v13546_v16 = vand.u32 4294901760, %v13538_v13  ;;  %v13548_v61 = vld [vmem:[#allocation57_spill] sm:$0xff] }
 0x144   :  { %v10739_v47 = vadd.f32 %v1915_v60, %v662_v37  ;;  %v7360_v5 = vpop.f32.mrf.mxu0  ;;  %7759 = vmatmul.mubr.f32.gmra.mxu0 %v9081_v54  ;;  %8388 = vmatprep.subr.mxu1 %v8681_v24 }
 0x145   :  { %v7578_v1 = vpop.f32.mrf.mxu1  ;;  %7977 = vmatmul.mubr.f32.gmra.mxu1 %v13544_v6  ;;  %7761 = vmatprep.mubr.f32.mxu0 %v13545_v56 }
 0x146   :  { %v10746_v10 = vadd.f32 %v7578_v1, %v7354_v29  ;;  %v722_v0 = vpop.f32.mrf.mxu0  ;;  %7979 = vmatprep.mubr.f32.mxu1 %v13546_v16  ;;  %8165 = vmatpush3.msra.mxu0 %v13543_v23  ;;  %v13551_v23 = vld [vmem:[#allocation15_spill] sm:$0xff]  ;;  %v13553_v16 = vand.u32 4294901760, %v9081_v54  ;;  %v13559_v54 = vld [vmem:[#allocation64_spill] sm:$0xff] }
 0x147   :  { %v1927_v37 = vpop.f32.mrf.mxu1  ;;  %8389 = vmatpush3.msra.mxu1 %v8681_v24  ;;  %8166 = vmatprep.subr.mxu0 %v13547_v26  ;;  %v13550_v24 = vand.u32 4294901760, %v9065_v38  ;;  %v13554_v38 = vld [vmem:[#allocation62_spill] sm:$0xff] }
 0x148   :  { %v10753_v40 = vadd.f32 %v1927_v37, %v682_v18  ;;  %v7363_v15 = vpop.f32.mrf.mxu0  ;;  %7762 = vmatmul.mubr.f32.gmra.mxu0 %v13548_v61  ;;  %8390 = vmatprep.subr.mxu1 %v8690_v27 }
 0x149   :  { %v7581_v29 = vpop.f32.mrf.mxu1  ;;  %7980 = vmatmul.mubr.f32.gmra.mxu1 %v13549_v11  ;;  %7764 = vmatprep.mubr.f32.mxu0 %v9120_v41 }
 0x14a   :  { %v10760_v13 = vadd.f32 %v7581_v29, %v7357_v9  ;;  %v742_v60 = vpop.f32.mrf.mxu0  ;;  %7982 = vmatprep.mubr.f32.mxu1 %v13550_v24  ;;  %8167 = vmatpush3.msra.mxu0 %v13547_v26  ;;  %v13557_v29 = vld [vmem:[#allocation20_spill] sm:$0xff] }
 0x14b   :  { %v1939_v18 = vpop.f32.mrf.mxu1  ;;  %8391 = vmatpush3.msra.mxu1 %v8690_v27  ;;  %8168 = vmatprep.subr.mxu0 %v13551_v23  ;;  %v13556_v27 = vand.u32 4294901760, %v13545_v56  ;;  %v13562_v56 = vld [vmem:[#allocation67_spill] sm:$0xff] }
 0x14c   :  { %v10767_v1 = vadd.f32 %v1939_v18, %v702_v32  ;;  %v7366_v6 = vpop.f32.mrf.mxu0  ;;  %7765 = vmatmul.mubr.f32.gmra.mxu0 %v13552_v63  ;;  %8392 = vmatprep.subr.mxu1 %v8709_v34  ;;  %v13560_v18 = vld [vmem:[#allocation8_spill] sm:$0xff] }
 0x14d   :  { %v7584_v9 = vpop.f32.mrf.mxu1  ;;  %7983 = vmatmul.mubr.f32.gmra.mxu1 %v13553_v16  ;;  %7767 = vmatprep.mubr.f32.mxu0 %v13554_v38 }
 0x14e   :  { %v10774_v37 = vadd.f32 %v7584_v9, %v7360_v5  ;;  %v762_v26 = vpop.f32.mrf.mxu0  ;;  %7985 = vmatprep.mubr.f32.mxu1 %v13556_v27  ;;  %8169 = vmatpush3.msra.mxu0 %v13551_v23  ;;  %v13561_v9 = vand.u32 4294901760, %v13548_v61  ;;  %v13565_v27 = vld [vmem:[#allocation23_spill] sm:$0xff]  ;;  %v13567_v61 = vld [vmem:[#allocation69_spill] sm:$0xff] }
 0x14f   :  { %v1951_v32 = vpop.f32.mrf.mxu1  ;;  %8393 = vmatpush3.msra.mxu1 %v8709_v34  ;;  %8170 = vmatprep.subr.mxu0 %v13557_v29  ;;  %v13564_v34 = vand.u32 4294901760, %v9120_v41  ;;  %v13570_v41 = vld [vmem:[#allocation70_spill] sm:$0xff] }
 0x150   :  { %13555 = vst [vmem:[#allocation17_spill] sm:$0xff] %v10774_v37  ;;  %v10781_v11 = vadd.f32 %v1951_v32, %v722_v0  ;;  %v7369_v24 = vpop.f32.mrf.mxu0  ;;  %7768 = vmatmul.mubr.f32.gmra.mxu0 %v13559_v54  ;;  %8394 = vmatprep.subr.mxu1 %v13560_v18  ;;  %v13800_v37 = vld [vmem:[#allocation213_spill] sm:$0xff] }
 0x151   :  { %v7587_v5 = vpop.f32.mrf.mxu1  ;;  %7986 = vmatmul.mubr.f32.gmra.mxu1 %v13561_v9  ;;  %7770 = vmatprep.mubr.f32.mxu0 %v13562_v56  ;;  %v13568_v9 = vld [vmem:[#allocation10_spill] sm:$0xff] }
 0x152   :  { %13558 = vst [vmem:[#allocation19_spill] sm:$0xff] %v10781_v11  ;;  %v10788_v16 = vadd.f32 %v7587_v5, %v7363_v15  ;;  %v782_v23 = vpop.f32.mrf.mxu0  ;;  %7988 = vmatprep.mubr.f32.mxu1 %v13564_v34  ;;  %8171 = vmatpush3.msra.mxu0 %v13557_v29  ;;  %v13569_v5 = vand.u32 4294901760, %v13552_v63  ;;  %v13575_v63 = vld [vmem:[#allocation72_spill] sm:$0xff] }
 0x153   :  { %v1963_v0 = vpop.f32.mrf.mxu1  ;;  %8395 = vmatpush3.msra.mxu1 %v13560_v18  ;;  %8172 = vmatprep.subr.mxu0 %v13565_v27  ;;  %v13572_v18 = vand.u32 4294901760, %v13554_v38  ;;  %v13578_v38 = vld [vmem:[#allocation74_spill] sm:$0xff] }
 0x154   :  { %13563 = vst [vmem:[#allocation26_spill] sm:$0xff] %v10788_v16  ;;  %v10795_v32 = vadd.f32 %v1963_v0, %v742_v60  ;;  %v7372_v21 = vpop.f32.mrf.mxu0  ;;  %7771 = vmatmul.mubr.f32.gmra.mxu0 %v13567_v61  ;;  %8396 = vmatprep.subr.mxu1 %v13568_v9  ;;  %v13573_v0 = vld [vmem:[#allocation25_spill] sm:$0xff] }
 0x155   :  { %v7590_v15 = vpop.f32.mrf.mxu1  ;;  %7989 = vmatmul.mubr.f32.gmra.mxu1 %v13569_v5  ;;  %7773 = vmatprep.mubr.f32.mxu0 %v13570_v41  ;;  %v13576_v5 = vld [vmem:[#allocation12_spill] sm:$0xff] }
 0x156   :  { %13566 = vst [vmem:[#allocation3_spill] sm:$0xff] %v10795_v32  ;;  %v10802_v34 = vadd.f32 %v7590_v15, %v7366_v6  ;;  %v802_v29 = vpop.f32.mrf.mxu0  ;;  %7991 = vmatprep.mubr.f32.mxu1 %v13572_v18  ;;  %8173 = vmatpush3.msra.mxu0 %v13565_v27  ;;  %v13577_v15 = vand.u32 4294901760, %v13559_v54  ;;  %v13583_v54 = vld [vmem:[#allocation77_spill] sm:$0xff] }
 0x157   :  { %v1975_v60 = vpop.f32.mrf.mxu1  ;;  %8397 = vmatpush3.msra.mxu1 %v13568_v9  ;;  %8174 = vmatprep.subr.mxu0 %v13573_v0  ;;  %v13580_v9 = vand.u32 4294901760, %v13562_v56  ;;  %v13586_v56 = vld [vmem:[#allocation78_spill] sm:$0xff] }
 0x158   :  { %13571 = vst [vmem:[#allocation29_spill] sm:$0xff] %v10802_v34  ;;  %v10809_v32 = vadd.f32 %v1975_v60, %v762_v26  ;;  %v7375_v16 = vpop.f32.mrf.mxu0  ;;  %7774 = vmatmul.mubr.f32.gmra.mxu0 %v13575_v63  ;;  %8398 = vmatprep.subr.mxu1 %v13576_v5  ;;  %v13581_v60 = vld [vmem:[#allocation35_spill] sm:$0xff] }
 0x159   :  { %v7593_v6 = vpop.f32.mrf.mxu1  ;;  %7992 = vmatmul.mubr.f32.gmra.mxu1 %v13577_v15  ;;  %7776 = vmatprep.mubr.f32.mxu0 %v13578_v38  ;;  %v13584_v15 = vld [vmem:[#allocation18_spill] sm:$0xff] }
 0x15a   :  { %13574 = vst [vmem:[#allocation33_spill] sm:$0xff] %v10809_v32  ;;  %v10816_v18 = vadd.f32 %v7593_v6, %v7369_v24  ;;  %v822_v27 = vpop.f32.mrf.mxu0  ;;  %7994 = vmatprep.mubr.f32.mxu1 %v13580_v9  ;;  %8175 = vmatpush3.msra.mxu0 %v13573_v0  ;;  %v13585_v6 = vand.u32 4294901760, %v13567_v61  ;;  %v13591_v61 = vld [vmem:[#allocation80_spill] sm:$0xff] }
 0x15b   :  { %v1987_v26 = vpop.f32.mrf.mxu1  ;;  %8399 = vmatpush3.msra.mxu1 %v13576_v5  ;;  %8176 = vmatprep.subr.mxu0 %v13581_v60  ;;  %v13588_v5 = vand.u32 4294901760, %v13570_v41  ;;  %v13594_v41 = vld [vmem:[#allocation83_spill] sm:$0xff] }
 0x15c   :  { %13579 = vst [vmem:[#allocation4_spill] sm:$0xff] %v10816_v18  ;;  %v10823_v32 = vadd.f32 %v1987_v26, %v782_v23  ;;  %v7378_v34 = vpop.f32.mrf.mxu0  ;;  %7777 = vmatmul.mubr.f32.gmra.mxu0 %v13583_v54  ;;  %8400 = vmatprep.subr.mxu1 %v13584_v15  ;;  %v13589_v26 = vld [vmem:[#allocation37_spill] sm:$0xff] }
 0x15d   :  { %v7596_v24 = vpop.f32.mrf.mxu1  ;;  %7995 = vmatmul.mubr.f32.gmra.mxu1 %v13585_v6  ;;  %7779 = vmatprep.mubr.f32.mxu0 %v13586_v56  ;;  %v13592_v6 = vld [vmem:[#allocation22_spill] sm:$0xff] }
 0x15e   :  { %13582 = vst [vmem:[#allocation5_spill] sm:$0xff] %v10823_v32  ;;  %v10830_v9 = vadd.f32 %v7596_v24, %v7372_v21  ;;  %v842_v0 = vpop.f32.mrf.mxu0  ;;  %7997 = vmatprep.mubr.f32.mxu1 %v13588_v5  ;;  %8177 = vmatpush3.msra.mxu0 %v13581_v60  ;;  %v13593_v24 = vand.u32 4294901760, %v13575_v63  ;;  %v13599_v63 = vld [vmem:[#allocation85_spill] sm:$0xff] }
 0x15f   :  { %v1999_v23 = vpop.f32.mrf.mxu1  ;;  %8401 = vmatpush3.msra.mxu1 %v13584_v15  ;;  %8178 = vmatprep.subr.mxu0 %v13589_v26  ;;  %v13596_v15 = vand.u32 4294901760, %v13578_v38  ;;  %v13602_v38 = vld [vmem:[#allocation86_spill] sm:$0xff] }
 0x160   :  { %13587 = vst [vmem:[#allocation43_spill] sm:$0xff] %v10830_v9  ;;  %v10837_v32 = vadd.f32 %v1999_v23, %v802_v29  ;;  %v7381_v18 = vpop.f32.mrf.mxu0  ;;  %7780 = vmatmul.mubr.f32.gmra.mxu0 %v13591_v61  ;;  %8402 = vmatprep.subr.mxu1 %v13592_v6  ;;  %v13597_v23 = vld [vmem:[#allocation39_spill] sm:$0xff] }
 0x161   :  { %v7599_v21 = vpop.f32.mrf.mxu1  ;;  %7998 = vmatmul.mubr.f32.gmra.mxu1 %v13593_v24  ;;  %7782 = vmatprep.mubr.f32.mxu0 %v13594_v41  ;;  %v13600_v24 = vld [vmem:[#allocation27_spill] sm:$0xff] }
 0x162   :  { %13590 = vst [vmem:[#allocation6_spill] sm:$0xff] %v10837_v32  ;;  %v10844_v5 = vadd.f32 %v7599_v21, %v7375_v16  ;;  %v862_v60 = vpop.f32.mrf.mxu0  ;;  %8000 = vmatprep.mubr.f32.mxu1 %v13596_v15  ;;  %8179 = vmatpush3.msra.mxu0 %v13589_v26  ;;  %v13601_v21 = vand.u32 4294901760, %v13583_v54 }
 0x163   :  { %v2011_v29 = vpop.f32.mrf.mxu1  ;;  %8403 = vmatpush3.msra.mxu1 %v13592_v6  ;;  %8180 = vmatprep.subr.mxu0 %v13597_v23  ;;  %v13604_v6 = vand.u32 4294901760, %v13586_v56 }
 0x164   :  { %13595 = vst [vmem:[#allocation46_spill] sm:$0xff] %v10844_v5  ;;  %v10851_v32 = vadd.f32 %v2011_v29, %v822_v27  ;;  %v7384_v9 = vpop.f32.mrf.mxu0  ;;  %7783 = vmatmul.mubr.f32.gmra.mxu0 %v13599_v63  ;;  %8404 = vmatprep.subr.mxu1 %v13600_v24  ;;  %v13606_v5 = vld [vmem:[#allocation88_spill] sm:$0xff] }
 0x165   :  { %v7602_v16 = vpop.f32.mrf.mxu1  ;;  %8001 = vmatmul.mubr.f32.gmra.mxu1 %v13601_v21  ;;  %7785 = vmatprep.mubr.f32.mxu0 %v13602_v38  ;;  %v13607_v21 = vand.u32 4294901760, %v13591_v61  ;;  %v13614_v61 = vld [vmem:[#allocation94_spill] sm:$0xff] }
 0x166   :  { %13598 = vst [vmem:[#allocation7_spill] sm:$0xff] %v10851_v32  ;;  %v10858_v15 = vadd.f32 %v7602_v16, %v7378_v34  ;;  %v882_v26 = vpop.f32.mrf.mxu0  ;;  %8003 = vmatprep.mubr.f32.mxu1 %v13604_v6  ;;  %8181 = vmatpush3.msra.mxu0 %v13597_v23  ;;  %v13608_v34 = vld [vmem:[#allocation90_spill] sm:$0xff]  ;;  %v13610_v6 = vand.u32 4294901760, %v13594_v41 }
 0x167   :  { %v2023_v27 = vpop.f32.mrf.mxu1  ;;  %8405 = vmatpush3.msra.mxu1 %v13600_v24  ;;  %v13612_v24 = vld [vmem:[#allocation92_spill] sm:$0xff] }
 0x168   :  { %13603 = vst [vmem:[#allocation48_spill] sm:$0xff] %v10858_v15  ;;  %v10864_v29 = vadd.f32 %v2023_v27, %v842_v0  ;;  %v7387_v32 = vpop.f32.mrf.mxu0  ;;  %7786 = vmatmul.mubr.f32.gmra.mxu0 %v13606_v5 }
 0x169   :  { %v7605_v54 = vpop.f32.mrf.mxu1  ;;  %8004 = vmatmul.mubr.f32.gmra.mxu1 %v13607_v21  ;;  %7788 = vmatprep.mubr.f32.mxu0 %v13608_v34 }
 0x16a   :  { %13605 = vst [vmem:[#allocation50_spill] sm:$0xff] %v10864_v29  ;;  %v10870_v16 = vadd.f32 %v7605_v54, %v7381_v18  ;;  %v902_v56 = vpop.f32.mrf.mxu0  ;;  %8006 = vmatprep.mubr.f32.mxu1 %v13610_v6  ;;  %v13613_v29 = vand.u32 4294901760, %v13599_v63  ;;  %v13616_v54 = vand.u32 4294901760, %v13602_v38  ;;  %v13620_v63 = vld [vmem:[#allocation98_spill] sm:$0xff] }
 0x16b   :  { %v2035_v23 = vpop.f32.mrf.mxu1 }
 0x16c   :  { %13609 = vst [vmem:[#allocation9_spill] sm:$0xff] %v10870_v16  ;;  %v10874_v15 = vadd.f32 %v2035_v23, %v862_v60  ;;  %v7390_v0 = vpop.f32.mrf.mxu0  ;;  %7789 = vmatmul.mubr.f32.gmra.mxu0 %v13612_v24  ;;  %v13618_v23 = vld [vmem:[#allocation28_spill] sm:$0xff]  ;;  %v13619_v16 = vand.u32 4294901760, %v13606_v5  ;;  %v13626_v5 = vld [vmem:[#allocation31_spill] sm:$0xff] }
 0x16d   :  { %v7608_v27 = vpop.f32.mrf.mxu1  ;;  %8007 = vmatmul.mubr.f32.gmra.mxu1 %v13613_v29  ;;  %7791 = vmatprep.mubr.f32.mxu0 %v13614_v61 }
 0x16e   :  { %13611 = vst [vmem:[#allocation11_spill] sm:$0xff] %v10874_v15  ;;  %v10880_v21 = vadd.f32 %v7608_v27, %v7384_v9  ;;  %v922_v18 = vpop.f32.mrf.mxu0  ;;  %8009 = vmatprep.mubr.f32.mxu1 %v13616_v54  ;;  %v13622_v27 = vand.u32 4294901760, %v13608_v34 }
 0x16f   :  { %v2047_v41 = vpop.f32.mrf.mxu1 }
 0x170   :  { %13615 = vst [vmem:[#allocation55_spill] sm:$0xff] %v10880_v21  ;;  %v10884_v6 = vadd.f32 %v2047_v41, %v882_v26  ;;  %v7393_v60 = vpop.f32.mrf.mxu0  ;;  %7792 = vmatmul.mubr.f32.gmra.mxu0 %v13618_v23  ;;  %v13624_v41 = vld [vmem:[#allocation99_spill] sm:$0xff]  ;;  %v13625_v21 = vand.u32 4294901760, %v13612_v24  ;;  %v13632_v24 = vld [vmem:[#allocation104_spill] sm:$0xff] }
 0x171   :  { %v7611_v15 = vpop.f32.mrf.mxu1  ;;  %8010 = vmatmul.mubr.f32.gmra.mxu1 %v13619_v16  ;;  %7794 = vmatprep.mubr.f32.mxu0 %v13620_v63 }
 0x172   :  { %13617 = vst [vmem:[#allocation13_spill] sm:$0xff] %v10884_v6  ;;  %v10890_v29 = vadd.f32 %v7611_v15, %v7387_v32  ;;  %v942_v9 = vpop.f32.mrf.mxu0  ;;  %8012 = vmatprep.mubr.f32.mxu1 %v13622_v27  ;;  %v13628_v15 = vand.u32 4294901760, %v13614_v61 }
 0x173   :  { %v2059_v38 = vpop.f32.mrf.mxu1 }
 0x174   :  { %13621 = vst [vmem:[#allocation57_spill] sm:$0xff] %v10890_v29  ;;  %v10894_v54 = vadd.f32 %v2059_v38, %v902_v56  ;;  %v7396_v26 = vpop.f32.mrf.mxu0  ;;  %7795 = vmatmul.mubr.f32.gmra.mxu0 %v13624_v41  ;;  %v13630_v38 = vld [vmem:[#allocation102_spill] sm:$0xff]  ;;  %v13631_v29 = vand.u32 4294901760, %v13618_v23  ;;  %v13638_v23 = vld [vmem:[#allocation107_spill] sm:$0xff] }
 0x175   :  { %v7614_v6 = vpop.f32.mrf.mxu1  ;;  %8013 = vmatmul.mubr.f32.gmra.mxu1 %v13625_v21  ;;  %7797 = vmatprep.mubr.f32.mxu0 %v13626_v5 }
 0x176   :  { %13623 = vst [vmem:[#allocation15_spill] sm:$0xff] %v10894_v54  ;;  %v10900_v16 = vadd.f32 %v7614_v6, %v7390_v0  ;;  %v962_v32 = vpop.f32.mrf.mxu0  ;;  %8015 = vmatprep.mubr.f32.mxu1 %v13628_v15  ;;  %v13634_v6 = vand.u32 4294901760, %v13620_v63 }
 0x177   :  { %v2071_v34 = vpop.f32.mrf.mxu1 }
 0x178   :  { %13627 = vst [vmem:[#allocation60_spill] sm:$0xff] %v10900_v16  ;;  %v10904_v27 = vadd.f32 %v2071_v34, %v922_v18  ;;  %v7399_v56 = vpop.f32.mrf.mxu0  ;;  %7798 = vmatmul.mubr.f32.gmra.mxu0 %v13630_v38  ;;  %v13636_v34 = vld [vmem:[#allocation2_spill] sm:$0xff]  ;;  %v13637_v16 = vand.u32 4294901760, %v13624_v41  ;;  %v13644_v41 = vld [vmem:[#allocation112_spill] sm:$0xff] }
 0x179   :  { %v7617_v54 = vpop.f32.mrf.mxu1  ;;  %8016 = vmatmul.mubr.f32.gmra.mxu1 %v13631_v29  ;;  %7800 = vmatprep.mubr.f32.mxu0 %v13632_v24 }
 0x17a   :  { %13629 = vst [vmem:[#allocation62_spill] sm:$0xff] %v10904_v27  ;;  %v10910_v21 = vadd.f32 %v7617_v54, %v7393_v60  ;;  %v982_v0 = vpop.f32.mrf.mxu0  ;;  %8018 = vmatprep.mubr.f32.mxu1 %v13634_v6  ;;  %v13640_v54 = vand.u32 4294901760, %v13626_v5 }
 0x17b   :  { %v2083_v61 = vpop.f32.mrf.mxu1 }
 0x17c   :  { %13633 = vst [vmem:[#allocation20_spill] sm:$0xff] %v10910_v21  ;;  %v10914_v15 = vadd.f32 %v2083_v61, %v942_v9  ;;  %v7402_v18 = vpop.f32.mrf.mxu0  ;;  %7801 = vmatmul.mubr.f32.gmra.mxu0 %v13636_v34  ;;  %v13642_v61 = vld [vmem:[#allocation109_spill] sm:$0xff]  ;;  %v13643_v21 = vand.u32 4294901760, %v13630_v38  ;;  %v13650_v38 = vld [vmem:[#allocation115_spill] sm:$0xff] }
 0x17d   :  { %v7620_v27 = vpop.f32.mrf.mxu1  ;;  %8019 = vmatmul.mubr.f32.gmra.mxu1 %v13637_v16  ;;  %7803 = vmatprep.mubr.f32.mxu0 %v13638_v23 }
 0x17e   :  { %13635 = vst [vmem:[#allocation64_spill] sm:$0xff] %v10914_v15  ;;  %v10920_v29 = vadd.f32 %v7620_v27, %v7396_v26  ;;  %v1002_v60 = vpop.f32.mrf.mxu0  ;;  %8021 = vmatprep.mubr.f32.mxu1 %v13640_v54  ;;  %v13646_v27 = vand.u32 4294901760, %v13632_v24 }
 0x17f   :  { %v2095_v63 = vpop.f32.mrf.mxu1 }
 0x180   :  { %13639 = vst [vmem:[#allocation8_spill] sm:$0xff] %v10920_v29  ;;  %v10924_v6 = vadd.f32 %v2095_v63, %v962_v32  ;;  %v7405_v9 = vpop.f32.mrf.mxu0  ;;  %7804 = vmatmul.mubr.f32.gmra.mxu0 %v13642_v61  ;;  %v13648_v63 = vld [vmem:[#allocation114_spill] sm:$0xff]  ;;  %v13649_v29 = vand.u32 4294901760, %v13636_v34  ;;  %v13656_v34 = vld [vmem:[#allocation119_spill] sm:$0xff] }
 0x181   :  { %v7623_v15 = vpop.f32.mrf.mxu1  ;;  %8022 = vmatmul.mubr.f32.gmra.mxu1 %v13643_v21  ;;  %7806 = vmatprep.mubr.f32.mxu0 %v13644_v41 }
 0x182   :  { %13641 = vst [vmem:[#allocation67_spill] sm:$0xff] %v10924_v6  ;;  %v10930_v16 = vadd.f32 %v7623_v15, %v7399_v56  ;;  %v1022_v26 = vpop.f32.mrf.mxu0  ;;  %8024 = vmatprep.mubr.f32.mxu1 %v13646_v27  ;;  %v13652_v15 = vand.u32 4294901760, %v13638_v23 }
 0x183   :  { %v2107_v5 = vpop.f32.mrf.mxu1 }
 0x184   :  { %13645 = vst [vmem:[#allocation23_spill] sm:$0xff] %v10930_v16  ;;  %v10934_v54 = vadd.f32 %v2107_v5, %v982_v0  ;;  %v7408_v32 = vpop.f32.mrf.mxu0  ;;  %7807 = vmatmul.mubr.f32.gmra.mxu0 %v13648_v63  ;;  %v13654_v5 = vld [vmem:[#allocation117_spill] sm:$0xff]  ;;  %v13655_v16 = vand.u32 4294901760, %v13642_v61  ;;  %v13662_v61 = vld [vmem:[#allocation123_spill] sm:$0xff] }
 0x185   :  { %v7626_v6 = vpop.f32.mrf.mxu1  ;;  %8025 = vmatmul.mubr.f32.gmra.mxu1 %v13649_v29  ;;  %7809 = vmatprep.mubr.f32.mxu0 %v13650_v38 }
 0x186   :  { %13647 = vst [vmem:[#allocation69_spill] sm:$0xff] %v10934_v54  ;;  %v10940_v21 = vadd.f32 %v7626_v6, %v7402_v18  ;;  %v1042_v56 = vpop.f32.mrf.mxu0  ;;  %8027 = vmatprep.mubr.f32.mxu1 %v13652_v15  ;;  %v13658_v6 = vand.u32 4294901760, %v13644_v41 }
 0x187   :  { %v2119_v24 = vpop.f32.mrf.mxu1 }
 0x188   :  { %13651 = vst [vmem:[#allocation10_spill] sm:$0xff] %v10940_v21  ;;  %v10944_v27 = vadd.f32 %v2119_v24, %v1002_v60  ;;  %v7411_v0 = vpop.f32.mrf.mxu0  ;;  %7810 = vmatmul.mubr.f32.gmra.mxu0 %v13654_v5  ;;  %v13660_v24 = vld [vmem:[#allocation121_spill] sm:$0xff]  ;;  %v13661_v21 = vand.u32 4294901760, %v13648_v63  ;;  %v13668_v63 = vld [vmem:[#allocation128_spill] sm:$0xff] }
 0x189   :  { %v7629_v54 = vpop.f32.mrf.mxu1  ;;  %8028 = vmatmul.mubr.f32.gmra.mxu1 %v13655_v16  ;;  %7812 = vmatprep.mubr.f32.mxu0 %v13656_v34 }
 0x18a   :  { %13653 = vst [vmem:[#allocation70_spill] sm:$0xff] %v10944_v27  ;;  %v10950_v29 = vadd.f32 %v7629_v54, %v7405_v9  ;;  %v1062_v18 = vpop.f32.mrf.mxu0  ;;  %8030 = vmatprep.mubr.f32.mxu1 %v13658_v6  ;;  %v13664_v54 = vand.u32 4294901760, %v13650_v38 }
 0x18b   :  { %v2131_v23 = vpop.f32.mrf.mxu1 }
 0x18c   :  { %13657 = vst [vmem:[#allocation25_spill] sm:$0xff] %v10950_v29  ;;  %v10954_v15 = vadd.f32 %v2131_v23, %v1022_v26  ;;  %v7414_v60 = vpop.f32.mrf.mxu0  ;;  %7813 = vmatmul.mubr.f32.gmra.mxu0 %v13660_v24  ;;  %v13666_v23 = vld [vmem:[#allocation125_spill] sm:$0xff]  ;;  %v13667_v29 = vand.u32 4294901760, %v13654_v5  ;;  %v13674_v5 = vld [vmem:[#allocation131_spill] sm:$0xff] }
 0x18d   :  { %v7632_v27 = vpop.f32.mrf.mxu1  ;;  %8031 = vmatmul.mubr.f32.gmra.mxu1 %v13661_v21  ;;  %7815 = vmatprep.mubr.f32.mxu0 %v13662_v61 }
 0x18e   :  { %13659 = vst [vmem:[#allocation72_spill] sm:$0xff] %v10954_v15  ;;  %v10960_v16 = vadd.f32 %v7632_v27, %v7408_v32  ;;  %v1082_v9 = vpop.f32.mrf.mxu0  ;;  %8033 = vmatprep.mubr.f32.mxu1 %v13664_v54  ;;  %v13670_v27 = vand.u32 4294901760, %v13656_v34 }
 0x18f   :  { %v2143_v41 = vpop.f32.mrf.mxu1 }
 0x190   :  { %13663 = vst [vmem:[#allocation12_spill] sm:$0xff] %v10960_v16  ;;  %v10964_v6 = vadd.f32 %v2143_v41, %v1042_v56  ;;  %v7417_v26 = vpop.f32.mrf.mxu0  ;;  %7816 = vmatmul.mubr.f32.gmra.mxu0 %v13666_v23  ;;  %v13672_v41 = vld [vmem:[#allocation130_spill] sm:$0xff]  ;;  %v13673_v16 = vand.u32 4294901760, %v13660_v24  ;;  %v13680_v24 = vld [vmem:[#allocation135_spill] sm:$0xff] }
 0x191   :  { %v7635_v15 = vpop.f32.mrf.mxu1  ;;  %8034 = vmatmul.mubr.f32.gmra.mxu1 %v13667_v29  ;;  %7818 = vmatprep.mubr.f32.mxu0 %v13668_v63 }
 0x192   :  { %13665 = vst [vmem:[#allocation74_spill] sm:$0xff] %v10964_v6  ;;  %v10970_v21 = vadd.f32 %v7635_v15, %v7411_v0  ;;  %v1102_v32 = vpop.f32.mrf.mxu0  ;;  %8036 = vmatprep.mubr.f32.mxu1 %v13670_v27  ;;  %v13676_v15 = vand.u32 4294901760, %v13662_v61 }
 0x193   :  { %v2155_v38 = vpop.f32.mrf.mxu1 }
 0x194   :  { %13669 = vst [vmem:[#allocation35_spill] sm:$0xff] %v10970_v21  ;;  %v10974_v54 = vadd.f32 %v2155_v38, %v1062_v18  ;;  %v7420_v56 = vpop.f32.mrf.mxu0  ;;  %7819 = vmatmul.mubr.f32.gmra.mxu0 %v13672_v41  ;;  %v13678_v38 = vld [vmem:[#allocation133_spill] sm:$0xff]  ;;  %v13679_v21 = vand.u32 4294901760, %v13666_v23  ;;  %v13686_v23 = vld [vmem:[#allocation139_spill] sm:$0xff] }
 0x195   :  { %v7638_v6 = vpop.f32.mrf.mxu1  ;;  %8037 = vmatmul.mubr.f32.gmra.mxu1 %v13673_v16  ;;  %7821 = vmatprep.mubr.f32.mxu0 %v13674_v5 }
 0x196   :  { %13671 = vst [vmem:[#allocation77_spill] sm:$0xff] %v10974_v54  ;;  %v10980_v29 = vadd.f32 %v7638_v6, %v7414_v60  ;;  %v1122_v0 = vpop.f32.mrf.mxu0  ;;  %8039 = vmatprep.mubr.f32.mxu1 %v13676_v15  ;;  %v13682_v6 = vand.u32 4294901760, %v13668_v63 }
 0x197   :  { %v2167_v34 = vpop.f32.mrf.mxu1 }
 0x198   :  { %13675 = vst [vmem:[#allocation18_spill] sm:$0xff] %v10980_v29  ;;  %v10984_v27 = vadd.f32 %v2167_v34, %v1082_v9  ;;  %v7423_v18 = vpop.f32.mrf.mxu0  ;;  %7822 = vmatmul.mubr.f32.gmra.mxu0 %v13678_v38  ;;  %v13684_v34 = vld [vmem:[#allocation138_spill] sm:$0xff]  ;;  %v13685_v29 = vand.u32 4294901760, %v13672_v41  ;;  %v13692_v41 = vld [vmem:[#allocation144_spill] sm:$0xff] }
 0x199   :  { %v7641_v54 = vpop.f32.mrf.mxu1  ;;  %8040 = vmatmul.mubr.f32.gmra.mxu1 %v13679_v21  ;;  %7824 = vmatprep.mubr.f32.mxu0 %v13680_v24 }
 0x19a   :  { %13677 = vst [vmem:[#allocation78_spill] sm:$0xff] %v10984_v27  ;;  %v10990_v16 = vadd.f32 %v7641_v54, %v7417_v26  ;;  %v1142_v60 = vpop.f32.mrf.mxu0  ;;  %8042 = vmatprep.mubr.f32.mxu1 %v13682_v6  ;;  %v13688_v54 = vand.u32 4294901760, %v13674_v5 }
 0x19b   :  { %v2179_v61 = vpop.f32.mrf.mxu1 }
 0x19c   :  { %13681 = vst [vmem:[#allocation37_spill] sm:$0xff] %v10990_v16  ;;  %v10994_v15 = vadd.f32 %v2179_v61, %v1102_v32  ;;  %v7426_v9 = vpop.f32.mrf.mxu0  ;;  %7825 = vmatmul.mubr.f32.gmra.mxu0 %v13684_v34  ;;  %v13690_v61 = vld [vmem:[#allocation141_spill] sm:$0xff]  ;;  %v13691_v16 = vand.u32 4294901760, %v13678_v38  ;;  %v13698_v38 = vld [vmem:[#allocation147_spill] sm:$0xff] }
 0x19d   :  { %v7644_v27 = vpop.f32.mrf.mxu1  ;;  %8043 = vmatmul.mubr.f32.gmra.mxu1 %v13685_v29  ;;  %7827 = vmatprep.mubr.f32.mxu0 %v13686_v23 }
 0x19e   :  { %13683 = vst [vmem:[#allocation80_spill] sm:$0xff] %v10994_v15  ;;  %v11000_v21 = vadd.f32 %v7644_v27, %v7420_v56  ;;  %v1162_v26 = vpop.f32.mrf.mxu0  ;;  %8045 = vmatprep.mubr.f32.mxu1 %v13688_v54  ;;  %v13694_v27 = vand.u32 4294901760, %v13680_v24 }
 0x19f   :  { %v2191_v63 = vpop.f32.mrf.mxu1 }
 0x1a0   :  { %13687 = vst [vmem:[#allocation22_spill] sm:$0xff] %v11000_v21  ;;  %v11004_v6 = vadd.f32 %v2191_v63, %v1122_v0  ;;  %v7429_v32 = vpop.f32.mrf.mxu0  ;;  %7828 = vmatmul.mubr.f32.gmra.mxu0 %v13690_v61  ;;  %v13696_v63 = vld [vmem:[#allocation146_spill] sm:$0xff]  ;;  %v13697_v21 = vand.u32 4294901760, %v13684_v34  ;;  %v13704_v34 = vld [vmem:[#allocation151_spill] sm:$0xff] }
 0x1a1   :  { %v7647_v15 = vpop.f32.mrf.mxu1  ;;  %8046 = vmatmul.mubr.f32.gmra.mxu1 %v13691_v16  ;;  %7830 = vmatprep.mubr.f32.mxu0 %v13692_v41 }
 0x1a2   :  { %13689 = vst [vmem:[#allocation83_spill] sm:$0xff] %v11004_v6  ;;  %v11010_v29 = vadd.f32 %v7647_v15, %v7423_v18  ;;  %v1182_v56 = vpop.f32.mrf.mxu0  ;;  %8048 = vmatprep.mubr.f32.mxu1 %v13694_v27  ;;  %v13700_v15 = vand.u32 4294901760, %v13686_v23 }
 0x1a3   :  { %v2203_v5 = vpop.f32.mrf.mxu1 }
 0x1a4   :  { %13693 = vst [vmem:[#allocation39_spill] sm:$0xff] %v11010_v29  ;;  %v11014_v54 = vadd.f32 %v2203_v5, %v1142_v60  ;;  %v7432_v0 = vpop.f32.mrf.mxu0  ;;  %7831 = vmatmul.mubr.f32.gmra.mxu0 %v13696_v63  ;;  %v13702_v5 = vld [vmem:[#allocation149_spill] sm:$0xff]  ;;  %v13703_v29 = vand.u32 4294901760, %v13690_v61  ;;  %v13710_v61 = vld [vmem:[#allocation155_spill] sm:$0xff] }
 0x1a5   :  { %v7650_v6 = vpop.f32.mrf.mxu1  ;;  %8049 = vmatmul.mubr.f32.gmra.mxu1 %v13697_v21  ;;  %7833 = vmatprep.mubr.f32.mxu0 %v13698_v38 }
 0x1a6   :  { %13695 = vst [vmem:[#allocation85_spill] sm:$0xff] %v11014_v54  ;;  %v11020_v16 = vadd.f32 %v7650_v6, %v7426_v9  ;;  %v1202_v18 = vpop.f32.mrf.mxu0  ;;  %8051 = vmatprep.mubr.f32.mxu1 %v13700_v15  ;;  %v13706_v6 = vand.u32 4294901760, %v13692_v41 }
 0x1a7   :  { %v2215_v24 = vpop.f32.mrf.mxu1 }
 0x1a8   :  { %13699 = vst [vmem:[#allocation27_spill] sm:$0xff] %v11020_v16  ;;  %v11024_v27 = vadd.f32 %v2215_v24, %v1162_v26  ;;  %v7435_v60 = vpop.f32.mrf.mxu0  ;;  %7834 = vmatmul.mubr.f32.gmra.mxu0 %v13702_v5  ;;  %v13708_v24 = vld [vmem:[#allocation153_spill] sm:$0xff]  ;;  %v13709_v16 = vand.u32 4294901760, %v13696_v63  ;;  %v13716_v63 = vld [vmem:[#allocation160_spill] sm:$0xff] }
 0x1a9   :  { %v7653_v54 = vpop.f32.mrf.mxu1  ;;  %8052 = vmatmul.mubr.f32.gmra.mxu1 %v13703_v29  ;;  %7836 = vmatprep.mubr.f32.mxu0 %v13704_v34 }
 0x1aa   :  { %13701 = vst [vmem:[#allocation86_spill] sm:$0xff] %v11024_v27  ;;  %v11030_v21 = vadd.f32 %v7653_v54, %v7429_v32  ;;  %v1222_v9 = vpop.f32.mrf.mxu0  ;;  %8054 = vmatprep.mubr.f32.mxu1 %v13706_v6  ;;  %v13712_v54 = vand.u32 4294901760, %v13698_v38 }
 0x1ab   :  { %v2227_v23 = vpop.f32.mrf.mxu1 }
 0x1ac   :  { %13705 = vst [vmem:[#allocation88_spill] sm:$0xff] %v11030_v21  ;;  %v11034_v15 = vadd.f32 %v2227_v23, %v1182_v56  ;;  %v7438_v26 = vpop.f32.mrf.mxu0  ;;  %7837 = vmatmul.mubr.f32.gmra.mxu0 %v13708_v24  ;;  %v13714_v23 = vld [vmem:[#allocation158_spill] sm:$0xff]  ;;  %v13715_v21 = vand.u32 4294901760, %v13702_v5  ;;  %v13722_v5 = vld [vmem:[#allocation163_spill] sm:$0xff] }
 0x1ad   :  { %v7656_v27 = vpop.f32.mrf.mxu1  ;;  %8055 = vmatmul.mubr.f32.gmra.mxu1 %v13709_v16  ;;  %7839 = vmatprep.mubr.f32.mxu0 %v13710_v61 }
 0x1ae   :  { %13707 = vst [vmem:[#allocation90_spill] sm:$0xff] %v11034_v15  ;;  %v11040_v29 = vadd.f32 %v7656_v27, %v7432_v0  ;;  %v1242_v32 = vpop.f32.mrf.mxu0  ;;  %8057 = vmatprep.mubr.f32.mxu1 %v13712_v54  ;;  %v13718_v27 = vand.u32 4294901760, %v13704_v34 }
 0x1af   :  { %v2239_v41 = vpop.f32.mrf.mxu1 }
 0x1b0   :  { %13711 = vst [vmem:[#allocation92_spill] sm:$0xff] %v11040_v29  ;;  %v11044_v6 = vadd.f32 %v2239_v41, %v1202_v18  ;;  %v7441_v56 = vpop.f32.mrf.mxu0  ;;  %7840 = vmatmul.mubr.f32.gmra.mxu0 %v13714_v23  ;;  %v13720_v41 = vld [vmem:[#allocation161_spill] sm:$0xff]  ;;  %v13721_v29 = vand.u32 4294901760, %v13708_v24  ;;  %v13728_v24 = vld [vmem:[#allocation167_spill] sm:$0xff] }
 0x1b1   :  { %v7659_v15 = vpop.f32.mrf.mxu1  ;;  %8058 = vmatmul.mubr.f32.gmra.mxu1 %v13715_v21  ;;  %7842 = vmatprep.mubr.f32.mxu0 %v13716_v63 }
 0x1b2   :  { %13713 = vst [vmem:[#allocation94_spill] sm:$0xff] %v11044_v6  ;;  %v11050_v16 = vadd.f32 %v7659_v15, %v7435_v60  ;;  %v1262_v0 = vpop.f32.mrf.mxu0  ;;  %8060 = vmatprep.mubr.f32.mxu1 %v13718_v27  ;;  %v13724_v15 = vand.u32 4294901760, %v13710_v61 }
 0x1b3   :  { %v2251_v38 = vpop.f32.mrf.mxu1 }
 0x1b4   :  { %13717 = vst [vmem:[#allocation28_spill] sm:$0xff] %v11050_v16  ;;  %v11054_v54 = vadd.f32 %v2251_v38, %v1222_v9  ;;  %v7444_v18 = vpop.f32.mrf.mxu0  ;;  %7843 = vmatmul.mubr.f32.gmra.mxu0 %v13720_v41  ;;  %v13726_v38 = vld [vmem:[#allocation165_spill] sm:$0xff]  ;;  %v13727_v16 = vand.u32 4294901760, %v13714_v23  ;;  %v13734_v23 = vld [vmem:[#allocation171_spill] sm:$0xff] }
 0x1b5   :  { %v7662_v6 = vpop.f32.mrf.mxu1  ;;  %8061 = vmatmul.mubr.f32.gmra.mxu1 %v13721_v29  ;;  %7845 = vmatprep.mubr.f32.mxu0 %v13722_v5 }
 0x1b6   :  { %13719 = vst [vmem:[#allocation98_spill] sm:$0xff] %v11054_v54  ;;  %v11060_v21 = vadd.f32 %v7662_v6, %v7438_v26  ;;  %v1282_v60 = vpop.f32.mrf.mxu0  ;;  %8063 = vmatprep.mubr.f32.mxu1 %v13724_v15  ;;  %v13730_v6 = vand.u32 4294901760, %v13716_v63 }
 0x1b7   :  { %v2263_v34 = vpop.f32.mrf.mxu1 }
 0x1b8   :  { %13723 = vst [vmem:[#allocation99_spill] sm:$0xff] %v11060_v21  ;;  %v11064_v27 = vadd.f32 %v2263_v34, %v1242_v32  ;;  %v7447_v9 = vpop.f32.mrf.mxu0  ;;  %7846 = vmatmul.mubr.f32.gmra.mxu0 %v13726_v38  ;;  %v13732_v34 = vld [vmem:[#allocation169_spill] sm:$0xff]  ;;  %v13733_v21 = vand.u32 4294901760, %v13720_v41  ;;  %v13740_v41 = vld [vmem:[#allocation176_spill] sm:$0xff] }
 0x1b9   :  { %v7665_v54 = vpop.f32.mrf.mxu1  ;;  %8064 = vmatmul.mubr.f32.gmra.mxu1 %v13727_v16  ;;  %7848 = vmatprep.mubr.f32.mxu0 %v13728_v24 }
 0x1ba   :  { %13725 = vst [vmem:[#allocation31_spill] sm:$0xff] %v11064_v27  ;;  %v11070_v29 = vadd.f32 %v7665_v54, %v7441_v56  ;;  %v1302_v26 = vpop.f32.mrf.mxu0  ;;  %8066 = vmatprep.mubr.f32.mxu1 %v13730_v6  ;;  %v13736_v54 = vand.u32 4294901760, %v13722_v5 }
 0x1bb   :  { %v2275_v61 = vpop.f32.mrf.mxu1 }
 0x1bc   :  { %13729 = vst [vmem:[#allocation102_spill] sm:$0xff] %v11070_v29  ;;  %v11074_v15 = vadd.f32 %v2275_v61, %v1262_v0  ;;  %v7450_v32 = vpop.f32.mrf.mxu0  ;;  %7849 = vmatmul.mubr.f32.gmra.mxu0 %v13732_v34  ;;  %v13738_v61 = vld [vmem:[#allocation173_spill] sm:$0xff]  ;;  %v13739_v29 = vand.u32 4294901760, %v13726_v38  ;;  %v13746_v38 = vld [vmem:[#allocation179_spill] sm:$0xff] }
 0x1bd   :  { %v7668_v27 = vpop.f32.mrf.mxu1  ;;  %8067 = vmatmul.mubr.f32.gmra.mxu1 %v13733_v21  ;;  %7851 = vmatprep.mubr.f32.mxu0 %v13734_v23 }
 0x1be   :  { %13731 = vst [vmem:[#allocation104_spill] sm:$0xff] %v11074_v15  ;;  %v11080_v16 = vadd.f32 %v7668_v27, %v7444_v18  ;;  %v1322_v56 = vpop.f32.mrf.mxu0  ;;  %8069 = vmatprep.mubr.f32.mxu1 %v13736_v54  ;;  %v13742_v27 = vand.u32 4294901760, %v13728_v24 }
 0x1bf   :  { %v2287_v63 = vpop.f32.mrf.mxu1 }
 0x1c0   :  { %13735 = vst [vmem:[#allocation2_spill] sm:$0xff] %v11080_v16  ;;  %v11084_v6 = vadd.f32 %v2287_v63, %v1282_v60  ;;  %v7453_v0 = vpop.f32.mrf.mxu0  ;;  %7852 = vmatmul.mubr.f32.gmra.mxu0 %v13738_v61  ;;  %v13744_v63 = vld [vmem:[#allocation178_spill] sm:$0xff]  ;;  %v13745_v16 = vand.u32 4294901760, %v13732_v34  ;;  %v13752_v34 = vld [vmem:[#allocation183_spill] sm:$0xff] }
 0x1c1   :  { %v7671_v15 = vpop.f32.mrf.mxu1  ;;  %8070 = vmatmul.mubr.f32.gmra.mxu1 %v13739_v29  ;;  %7854 = vmatprep.mubr.f32.mxu0 %v13740_v41 }
 0x1c2   :  { %13737 = vst [vmem:[#allocation107_spill] sm:$0xff] %v11084_v6  ;;  %v11090_v21 = vadd.f32 %v7671_v15, %v7447_v9  ;;  %v1342_v18 = vpop.f32.mrf.mxu0  ;;  %8072 = vmatprep.mubr.f32.mxu1 %v13742_v27  ;;  %v13748_v15 = vand.u32 4294901760, %v13734_v23 }
 0x1c3   :  { %v2299_v5 = vpop.f32.mrf.mxu1 }
 0x1c4   :  { %13741 = vst [vmem:[#allocation109_spill] sm:$0xff] %v11090_v21  ;;  %v11094_v54 = vadd.f32 %v2299_v5, %v1302_v26  ;;  %v7456_v60 = vpop.f32.mrf.mxu0  ;;  %7855 = vmatmul.mubr.f32.gmra.mxu0 %v13744_v63  ;;  %v13750_v5 = vld [vmem:[#allocation181_spill] sm:$0xff]  ;;  %v13751_v21 = vand.u32 4294901760, %v13738_v61  ;;  %v13758_v61 = vld [vmem:[#allocation187_spill] sm:$0xff] }
 0x1c5   :  { %v7674_v6 = vpop.f32.mrf.mxu1  ;;  %8073 = vmatmul.mubr.f32.gmra.mxu1 %v13745_v16  ;;  %7857 = vmatprep.mubr.f32.mxu0 %v13746_v38 }
 0x1c6   :  { %13743 = vst [vmem:[#allocation112_spill] sm:$0xff] %v11094_v54  ;;  %v11100_v29 = vadd.f32 %v7674_v6, %v7450_v32  ;;  %v1362_v9 = vpop.f32.mrf.mxu0  ;;  %8075 = vmatprep.mubr.f32.mxu1 %v13748_v15  ;;  %v13754_v6 = vand.u32 4294901760, %v13740_v41 }
 0x1c7   :  { %v2311_v24 = vpop.f32.mrf.mxu1 }
 0x1c8   :  { %13747 = vst [vmem:[#allocation114_spill] sm:$0xff] %v11100_v29  ;;  %v11104_v27 = vadd.f32 %v2311_v24, %v1322_v56  ;;  %v7459_v26 = vpop.f32.mrf.mxu0  ;;  %7858 = vmatmul.mubr.f32.gmra.mxu0 %v13750_v5  ;;  %v13756_v24 = vld [vmem:[#allocation185_spill] sm:$0xff]  ;;  %v13757_v29 = vand.u32 4294901760, %v13744_v63  ;;  %v13764_v63 = vld [vmem:[#allocation192_spill] sm:$0xff] }
 0x1c9   :  { %v7677_v54 = vpop.f32.mrf.mxu1  ;;  %8076 = vmatmul.mubr.f32.gmra.mxu1 %v13751_v21  ;;  %7860 = vmatprep.mubr.f32.mxu0 %v13752_v34 }
 0x1ca   :  { %13749 = vst [vmem:[#allocation115_spill] sm:$0xff] %v11104_v27  ;;  %v11110_v16 = vadd.f32 %v7677_v54, %v7453_v0  ;;  %v1382_v32 = vpop.f32.mrf.mxu0  ;;  %8078 = vmatprep.mubr.f32.mxu1 %v13754_v6  ;;  %v13760_v54 = vand.u32 4294901760, %v13746_v38 }
 0x1cb   :  { %v2323_v23 = vpop.f32.mrf.mxu1 }
 0x1cc   :  { %13753 = vst [vmem:[#allocation117_spill] sm:$0xff] %v11110_v16  ;;  %v11114_v15 = vadd.f32 %v2323_v23, %v1342_v18  ;;  %v7462_v56 = vpop.f32.mrf.mxu0  ;;  %7861 = vmatmul.mubr.f32.gmra.mxu0 %v13756_v24  ;;  %v13762_v23 = vld [vmem:[#allocation189_spill] sm:$0xff]  ;;  %v13763_v16 = vand.u32 4294901760, %v13750_v5  ;;  %v13770_v5 = vld [vmem:[#allocation195_spill] sm:$0xff] }
 0x1cd   :  { %v7680_v27 = vpop.f32.mrf.mxu1  ;;  %8079 = vmatmul.mubr.f32.gmra.mxu1 %v13757_v29  ;;  %7863 = vmatprep.mubr.f32.mxu0 %v13758_v61 }
 0x1ce   :  { %13755 = vst [vmem:[#allocation119_spill] sm:$0xff] %v11114_v15  ;;  %v11120_v21 = vadd.f32 %v7680_v27, %v7456_v60  ;;  %v1402_v0 = vpop.f32.mrf.mxu0  ;;  %8081 = vmatprep.mubr.f32.mxu1 %v13760_v54  ;;  %v13766_v27 = vand.u32 4294901760, %v13752_v34 }
 0x1cf   :  { %v2335_v41 = vpop.f32.mrf.mxu1 }
 0x1d0   :  { %13759 = vst [vmem:[#allocation121_spill] sm:$0xff] %v11120_v21  ;;  %v11124_v6 = vadd.f32 %v2335_v41, %v1362_v9  ;;  %v7465_v18 = vpop.f32.mrf.mxu0  ;;  %7864 = vmatmul.mubr.f32.gmra.mxu0 %v13762_v23  ;;  %v13768_v41 = vld [vmem:[#allocation194_spill] sm:$0xff]  ;;  %v13769_v21 = vand.u32 4294901760, %v13756_v24  ;;  %v13776_v24 = vld [vmem:[#allocation199_spill] sm:$0xff] }
 0x1d1   :  { %v7683_v15 = vpop.f32.mrf.mxu1  ;;  %8082 = vmatmul.mubr.f32.gmra.mxu1 %v13763_v16  ;;  %7866 = vmatprep.mubr.f32.mxu0 %v13764_v63 }
 0x1d2   :  { %13761 = vst [vmem:[#allocation123_spill] sm:$0xff] %v11124_v6  ;;  %v11130_v29 = vadd.f32 %v7683_v15, %v7459_v26  ;;  %v1422_v60 = vpop.f32.mrf.mxu0  ;;  %8084 = vmatprep.mubr.f32.mxu1 %v13766_v27  ;;  %v13772_v15 = vand.u32 4294901760, %v13758_v61 }
 0x1d3   :  { %v2347_v38 = vpop.f32.mrf.mxu1 }
 0x1d4   :  { %13765 = vst [vmem:[#allocation125_spill] sm:$0xff] %v11130_v29  ;;  %v11134_v54 = vadd.f32 %v2347_v38, %v1382_v32  ;;  %v7468_v9 = vpop.f32.mrf.mxu0  ;;  %7867 = vmatmul.mubr.f32.gmra.mxu0 %v13768_v41  ;;  %v13774_v38 = vld [vmem:[#allocation197_spill] sm:$0xff]  ;;  %v13775_v29 = vand.u32 4294901760, %v13762_v23  ;;  %v13782_v23 = vld [vmem:[#allocation203_spill] sm:$0xff] }
 0x1d5   :  { %v7686_v6 = vpop.f32.mrf.mxu1  ;;  %8085 = vmatmul.mubr.f32.gmra.mxu1 %v13769_v21  ;;  %7869 = vmatprep.mubr.f32.mxu0 %v13770_v5 }
 0x1d6   :  { %13767 = vst [vmem:[#allocation128_spill] sm:$0xff] %v11134_v54  ;;  %v11140_v16 = vadd.f32 %v7686_v6, %v7462_v56  ;;  %v1442_v26 = vpop.f32.mrf.mxu0  ;;  %8087 = vmatprep.mubr.f32.mxu1 %v13772_v15  ;;  %v13778_v6 = vand.u32 4294901760, %v13764_v63 }
 0x1d7   :  { %v2359_v34 = vpop.f32.mrf.mxu1 }
 0x1d8   :  { %13771 = vst [vmem:[#allocation130_spill] sm:$0xff] %v11140_v16  ;;  %v11144_v27 = vadd.f32 %v2359_v34, %v1402_v0  ;;  %v7471_v32 = vpop.f32.mrf.mxu0  ;;  %7870 = vmatmul.mubr.f32.gmra.mxu0 %v13774_v38  ;;  %v13780_v34 = vld [vmem:[#allocation202_spill] sm:$0xff]  ;;  %v13781_v16 = vand.u32 4294901760, %v13768_v41  ;;  %v13788_v41 = vld [vmem:[#allocation208_spill] sm:$0xff] }
 0x1d9   :  { %v7689_v54 = vpop.f32.mrf.mxu1  ;;  %8088 = vmatmul.mubr.f32.gmra.mxu1 %v13775_v29  ;;  %7872 = vmatprep.mubr.f32.mxu0 %v13776_v24 }
 0x1da   :  { %13773 = vst [vmem:[#allocation131_spill] sm:$0xff] %v11144_v27  ;;  %v11150_v21 = vadd.f32 %v7689_v54, %v7465_v18  ;;  %v1462_v56 = vpop.f32.mrf.mxu0  ;;  %8090 = vmatprep.mubr.f32.mxu1 %v13778_v6  ;;  %v13784_v54 = vand.u32 4294901760, %v13770_v5 }
 0x1db   :  { %v2371_v61 = vpop.f32.mrf.mxu1 }
 0x1dc   :  { %13777 = vst [vmem:[#allocation133_spill] sm:$0xff] %v11150_v21  ;;  %v11154_v15 = vadd.f32 %v2371_v61, %v1422_v60  ;;  %v7474_v0 = vpop.f32.mrf.mxu0  ;;  %7873 = vmatmul.mubr.f32.gmra.mxu0 %v13780_v34  ;;  %v13786_v61 = vld [vmem:[#allocation205_spill] sm:$0xff]  ;;  %v13787_v21 = vand.u32 4294901760, %v13774_v38  ;;  %v13794_v38 = vand.u32 4294901760, %v13780_v34 }
 0x1dd   :  { %v7692_v27 = vpop.f32.mrf.mxu1  ;;  %8091 = vmatmul.mubr.f32.gmra.mxu1 %v13781_v16  ;;  %7875 = vmatprep.mubr.f32.mxu0 %v13782_v23 }
 0x1de   :  { %13779 = vst [vmem:[#allocation135_spill] sm:$0xff] %v11154_v15  ;;  %v11160_v29 = vadd.f32 %v7692_v27, %v7468_v9  ;;  %v1482_v18 = vpop.f32.mrf.mxu0  ;;  %8093 = vmatprep.mubr.f32.mxu1 %v13784_v54  ;;  %v13790_v27 = vand.u32 4294901760, %v13776_v24  ;;  %v13797_v24 = vand.u32 4294901760, %v13782_v23 }
 0x1df   :  { %v2383_v63 = vpop.f32.mrf.mxu1 }
 0x1e0   :  { %13783 = vst [vmem:[#allocation138_spill] sm:$0xff] %v11160_v29  ;;  %v11164_v6 = vadd.f32 %v2383_v63, %v1442_v26  ;;  %v7477_v60 = vpop.f32.mrf.mxu0  ;;  %7876 = vmatmul.mubr.f32.gmra.mxu0 %v13786_v61  ;;  %v13792_v63 = vld [vmem:[#allocation210_spill] sm:$0xff]  ;;  %v13793_v29 = vld [vmem:[#allocation237_spill] sm:$0xff] }
 0x1e1   :  { %v7695_v15 = vpop.f32.mrf.mxu1  ;;  %8094 = vmatmul.mubr.f32.gmra.mxu1 %v13787_v21  ;;  %7878 = vmatprep.mubr.f32.mxu0 %v13788_v41  ;;  %v13795_v21 = vld [vmem:[#allocation211_spill] sm:$0xff] }
 0x1e2   :  { %13785 = vst [vmem:[#allocation139_spill] sm:$0xff] %v11164_v6  ;;  %v11170_v16 = vadd.f32 %v7695_v15, %v7471_v32  ;;  %v1502_v9 = vpop.f32.mrf.mxu0  ;;  %8096 = vmatprep.mubr.f32.mxu1 %v13790_v27 }
 0x1e3   :  { %v2395_v5 = vpop.f32.mrf.mxu1 }
 0x1e4   :  { %13789 = vst [vmem:[#allocation141_spill] sm:$0xff] %v11170_v16  ;;  %v11174_v54 = vadd.f32 %v2395_v5, %v1462_v56  ;;  %v7736_v26 = vpop.f32.mrf.mxu0  ;;  %7879 = vmatmul.mubr.f32.gmra.mxu0 %v13792_v63  ;;  %v13798_v56 = vld [vmem:[#allocation238_spill] sm:$0xff] }
 0x1e5   :  { %v7698_v6 = vpop.f32.mrf.mxu1  ;;  %v2537_v11 = vadd.f32 %v7736_v26, %v13793_v29  ;;  %8097 = vmatmul.mubr.f32.gmra.mxu1 %v13794_v38  ;;  %7881 = vmatprep.mubr.f32.mxu0 %v13795_v21  ;;  %v13801_v26 = vld [vmem:[#allocation243_spill] sm:$0xff]  ;;  %v13802_v38 = vand.u32 4294901760, %v13786_v61 }
 0x1e6   :  { %13791 = vst [vmem:[#allocation144_spill] sm:$0xff] %v11174_v54  ;;  %v11181_v32 = vadd.f32 %v7698_v6, %v7474_v0  ;;  %v2529_v15 = vpop.f32.mrf.mxu0  ;;  %8099 = vmatprep.mubr.f32.mxu1 %v13797_v24  ;;  %v13803_v0 = vld [vmem:[#allocation215_spill] sm:$0xff]  ;;  %v13805_v24 = vand.u32 4294901760, %v13788_v41 }
 0x1e7   :  { %v2407_v27 = vpop.f32.mrf.mxu1  ;;  %v2530_v5 = vadd.f32 %v2529_v15, %v13798_v56 }
 0x1e8   :  { %13796 = vst [vmem:[#allocation146_spill] sm:$0xff] %v11181_v32  ;;  %v11186_v54 = vadd.f32 %v2407_v27, %v1482_v18  ;;  %v7739_v16 = vpop.f32.mrf.mxu0  ;;  %7882 = vmatmul.mubr.f32.gmra.mxu0 %v13800_v37  ;;  %v13806_v18 = vld [vmem:[#allocation245_spill] sm:$0xff] }
 0x1e9   :  { %v7701_v29 = vpop.f32.mrf.mxu1  ;;  %v2551_v34 = vadd.f32 %v7739_v16, %v13801_v26  ;;  %8100 = vmatmul.mubr.f32.gmra.mxu1 %v13802_v38  ;;  %7884 = vmatprep.mubr.f32.mxu0 %v13803_v0  ;;  %v13808_v32 = vld [vmem:[#allocation217_spill] sm:$0xff]  ;;  %v13810_v38 = vand.u32 4294901760, %v13792_v63 }
 0x1ea   :  { %13799 = vst [vmem:[#allocation147_spill] sm:$0xff] %v11186_v54  ;;  %v11193_v6 = vadd.f32 %v7701_v29, %v7477_v60  ;;  %v2543_v23 = vpop.f32.mrf.mxu0  ;;  %8102 = vmatprep.mubr.f32.mxu1 %v13805_v24  ;;  %v13809_v16 = vld [vmem:[#allocation249_spill] sm:$0xff]  ;;  %v13811_v60 = vld [vmem:[#allocation219_spill] sm:$0xff]  ;;  %v13813_v24 = vand.u32 4294901760, %v13795_v21 }
 0x1eb   :  { %v2419_v15 = vpop.f32.mrf.mxu1  ;;  %v2544_v27 = vadd.f32 %v2543_v23, %v13806_v18  ;;  %v13814_v23 = vld [vmem:[#allocation252_spill] sm:$0xff] }
 0x1ec   :  { %13804 = vst [vmem:[#allocation149_spill] sm:$0xff] %v11193_v6  ;;  %v11198_v56 = vadd.f32 %v2419_v15, %v1502_v9  ;;  %v7742_v54 = vpop.f32.mrf.mxu0  ;;  %7885 = vmatmul.mubr.f32.gmra.mxu0 %v13808_v32  ;;  %v13816_v6 = vld [vmem:[#allocation222_spill] sm:$0xff] }
 0x1ed   :  { %v2565_v26 = vadd.f32 %v7742_v54, %v13809_v16  ;;  %v7960_v61 = vpop.f32.mrf.mxu1  ;;  %8103 = vmatmul.mubr.f32.gmra.mxu1 %v13810_v38  ;;  %7887 = vmatprep.mubr.f32.mxu0 %v13811_v60  ;;  %v13817_v54 = vld [vmem:[#allocation255_spill] sm:$0xff]  ;;  %v13818_v38 = vand.u32 4294901760, %v13800_v37 }
 0x1ee   :  { %13807 = vst [vmem:[#allocation151_spill] sm:$0xff] %v11198_v56  ;;  %v11205_v29 = vadd.f32 %v7960_v61, %v2537_v11  ;;  %v2557_v41 = vpop.f32.mrf.mxu0  ;;  %8105 = vmatprep.mubr.f32.mxu1 %v13813_v24  ;;  %v13819_v11 = vld [vmem:[#allocation223_spill] sm:$0xff]  ;;  %v13821_v24 = vand.u32 4294901760, %v13803_v0 }
 0x1ef   :  { %v2558_v9 = vadd.f32 %v2557_v41, %v13814_v23  ;;  %v3507_v15 = vpop.f32.mrf.mxu1  ;;  %v13822_v41 = vld [vmem:[#allocation258_spill] sm:$0xff] }
 0x1f0   :  { %13812 = vst [vmem:[#allocation153_spill] sm:$0xff] %v11205_v29  ;;  %v11210_v18 = vadd.f32 %v3507_v15, %v2530_v5  ;;  %v7745_v56 = vpop.f32.mrf.mxu0  ;;  %7888 = vmatmul.mubr.f32.gmra.mxu0 %v13816_v6  ;;  %v13824_v29 = vld [vmem:[#allocation225_spill] sm:$0xff] }
 0x1f1   :  { %v2579_v16 = vadd.f32 %v7745_v56, %v13817_v54  ;;  %v7963_v63 = vpop.f32.mrf.mxu1  ;;  %8106 = vmatmul.mubr.f32.gmra.mxu1 %v13818_v38  ;;  %7890 = vmatprep.mubr.f32.mxu0 %v13819_v11  ;;  %v13825_v56 = vld [vmem:[#allocation261_spill] sm:$0xff]  ;;  %v13826_v38 = vand.u32 4294901760, %v13808_v32 }
 0x1f2   :  { %13815 = vst [vmem:[#allocation155_spill] sm:$0xff] %v11210_v18  ;;  %v11217_v61 = vadd.f32 %v7963_v63, %v2551_v34  ;;  %v2571_v21 = vpop.f32.mrf.mxu0  ;;  %8108 = vmatprep.mubr.f32.mxu1 %v13821_v24  ;;  %v13827_v34 = vld [vmem:[#allocation228_spill] sm:$0xff]  ;;  %v13828_v24 = vand.u32 4294901760, %v13811_v60 }
 0x1f3   :  { %v2572_v5 = vadd.f32 %v2571_v21, %v13822_v41  ;;  %v3523_v23 = vpop.f32.mrf.mxu1  ;;  %v13829_v21 = vld [vmem:[#allocation263_spill] sm:$0xff] }
 0x1f4   :  { %13820 = vst [vmem:[#allocation158_spill] sm:$0xff] %v11217_v61  ;;  %v11222_v15 = vadd.f32 %v3523_v23, %v2544_v27  ;;  %v7748_v18 = vpop.f32.mrf.mxu0  ;;  %7891 = vmatmul.mubr.f32.gmra.mxu0 %v13824_v29  ;;  %v13831_v61 = vld [vmem:[#allocation229_spill] sm:$0xff] }
 0x1f5   :  { %v2593_v54 = vadd.f32 %v7748_v18, %v13825_v56  ;;  %v7966_v37 = vpop.f32.mrf.mxu1  ;;  %8109 = vmatmul.mubr.f32.gmra.mxu1 %v13826_v38  ;;  %7893 = vmatprep.mubr.f32.mxu0 %v13827_v34  ;;  %v13832_v18 = vld [vmem:[#allocation267_spill] sm:$0xff]  ;;  %v13833_v38 = vand.u32 4294901760, %v13816_v6 }
 0x1f6   :  { %13823 = vst [vmem:[#allocation160_spill] sm:$0xff] %v11222_v15  ;;  %v11229_v63 = vadd.f32 %v7966_v37, %v2565_v26  ;;  %v2585_v0 = vpop.f32.mrf.mxu0  ;;  %8111 = vmatprep.mubr.f32.mxu1 %v13828_v24  ;;  %v13834_v26 = vld [vmem:[#allocation231_spill] sm:$0xff]  ;;  %v13836_v24 = vand.u32 4294901760, %v13819_v11 }
 0x1f7   :  { %v2586_v27 = vadd.f32 %v2585_v0, %v13829_v21  ;;  %v3539_v41 = vpop.f32.mrf.mxu1 }
 0x1f8   :  { %v11234_v23 = vadd.f32 %v3539_v41, %v2558_v9  ;;  %v7751_v15 = vpop.f32.mrf.mxu0  ;;  %7894 = vmatmul.mubr.f32.gmra.mxu0 %v13831_v61 }
 0x1f9   :  { %v2607_v56 = vadd.f32 %v7751_v15, %v13832_v18  ;;  %v7969_v32 = vpop.f32.mrf.mxu1  ;;  %8112 = vmatmul.mubr.f32.gmra.mxu1 %v13833_v38  ;;  %7896 = vmatprep.mubr.f32.mxu0 %v13834_v26  ;;  %v13839_v15 = vld [vmem:[#allocation272_spill] sm:$0xff]  ;;  %v13840_v38 = vand.u32 4294901760, %v13824_v29 }
 0x1fa   :  { %13830 = vst [vmem:[#allocation161_spill] sm:$0xff] %v11234_v23  ;;  %v11241_v37 = vadd.f32 %v7969_v32, %v2579_v16  ;;  %v2599_v60 = vpop.f32.mrf.mxu0  ;;  %8114 = vmatprep.mubr.f32.mxu1 %v13836_v24  ;;  %v13838_v23 = vld [vmem:[#allocation233_spill] sm:$0xff]  ;;  %v13841_v16 = vld [vmem:[#allocation235_spill] sm:$0xff]  ;;  %v13842_v24 = vand.u32 4294901760, %v13827_v34 }
 0x1fb   :  { %v2600_v9 = vadd.f32 %v2599_v60, %v10510_v2  ;;  %v3555_v0 = vpop.f32.mrf.mxu1  ;;  %v13843_v2 = vld [vmem:[#allocation273_spill] sm:$0xff] }
 0x1fc   :  { %13835 = vst [vmem:[#allocation163_spill] sm:$0xff] %v11241_v37  ;;  %v11246_v21 = vadd.f32 %v3555_v0, %v2572_v5  ;;  %v7754_v41 = vpop.f32.mrf.mxu0  ;;  %7897 = vmatmul.mubr.f32.gmra.mxu0 %v13838_v23  ;;  %v13844_v37 = vld [vmem:[#allocation239_spill] sm:$0xff] }
 0x1fd   :  { %v2621_v18 = vadd.f32 %v7754_v41, %v13839_v15  ;;  %v7972_v6 = vpop.f32.mrf.mxu1  ;;  %8115 = vmatmul.mubr.f32.gmra.mxu1 %v13840_v38  ;;  %7899 = vmatprep.mubr.f32.mxu0 %v13841_v16  ;;  %v13845_v15 = vand.u32 4294901760, %v13831_v61  ;;  %v13847_v38 = vand.u32 4294901760, %v13834_v26 }
 0x1fe   :  { %13837 = vst [vmem:[#allocation165_spill] sm:$0xff] %v11246_v21  ;;  %v11253_v32 = vadd.f32 %v7972_v6, %v2593_v54  ;;  %v2613_v11 = vpop.f32.mrf.mxu0  ;;  %8117 = vmatprep.mubr.f32.mxu1 %v13842_v24  ;;  %v13846_v54 = vld [vmem:[#allocation241_spill] sm:$0xff] }
 0x1ff   :  { %v2614_v5 = vadd.f32 %v2613_v11, %v13843_v2  ;;  %v3571_v60 = vpop.f32.mrf.mxu1 }
 0x200   :  { %v11258_v0 = vadd.f32 %v3571_v60, %v2586_v27  ;;  %v7757_v21 = vpop.f32.mrf.mxu0  ;;  %7900 = vmatmul.mubr.f32.gmra.mxu0 %v13844_v37  ;;  %v13848_v60 = vld [vmem:[#allocation246_spill] sm:$0xff] }
 0x201   :  { %v2635_v41 = vadd.f32 %v7757_v21, %v10558_v42  ;;  %v7975_v29 = vpop.f32.mrf.mxu1  ;;  %8118 = vmatmul.mubr.f32.gmra.mxu1 %v13845_v15  ;;  %7902 = vmatprep.mubr.f32.mxu0 %v13846_v54  ;;  %v13849_v21 = vand.u32 4294901760, %v13838_v23  ;;  %v13851_v15 = vand.u32 4294901760, %v13841_v16 }
 0x202   :  { %v11265_v6 = vadd.f32 %v7975_v29, %v2607_v56  ;;  %v2627_v34 = vpop.f32.mrf.mxu0  ;;  %8120 = vmatprep.mubr.f32.mxu1 %v13847_v38  ;;  %v13850_v56 = vld [vmem:[#allocation247_spill] sm:$0xff] }
 0x203   :  { %v2628_v27 = vadd.f32 %v2627_v34, %v10562_v45  ;;  %v3587_v11 = vpop.f32.mrf.mxu1 }
 0x204   :  { %v11270_v24 = vadd.f32 %v3587_v11, %v2600_v9  ;;  %v7760_v2 = vpop.f32.mrf.mxu0  ;;  %7903 = vmatmul.mubr.f32.gmra.mxu0 %v13848_v60  ;;  %v13852_v11 = vld [vmem:[#allocation250_spill] sm:$0xff] }
 0x205   :  { %v2649_v42 = vadd.f32 %v7760_v2, %v10580_v33  ;;  %v7978_v61 = vpop.f32.mrf.mxu1  ;;  %8121 = vmatmul.mubr.f32.gmra.mxu1 %v13849_v21  ;;  %7905 = vmatprep.mubr.f32.mxu0 %v13850_v56  ;;  %v13853_v2 = vand.u32 4294901760, %v13844_v37  ;;  %v13855_v21 = vand.u32 4294901760, %v13846_v54 }
 0x206   :  { %v11277_v29 = vadd.f32 %v7978_v61, %v2621_v18  ;;  %v2641_v26 = vpop.f32.mrf.mxu0  ;;  %8123 = vmatprep.mubr.f32.mxu1 %v13851_v15  ;;  %v13854_v18 = vld [vmem:[#allocation254_spill] sm:$0xff] }
 0x207   :  { %v2642_v45 = vadd.f32 %v2641_v26, %v10586_v50  ;;  %v3603_v9 = vpop.f32.mrf.mxu1 }
 0x208   :  { %v11282_v34 = vadd.f32 %v3603_v9, %v2614_v5  ;;  %v7763_v38 = vpop.f32.mrf.mxu0  ;;  %7906 = vmatmul.mubr.f32.gmra.mxu0 %v13852_v11  ;;  %v13856_v9 = vld [vmem:[#allocation256_spill] sm:$0xff] }
 0x209   :  { %v2663_v33 = vadd.f32 %v7763_v38, %v10597_v28  ;;  %v7981_v23 = vpop.f32.mrf.mxu1  ;;  %8124 = vmatmul.mubr.f32.gmra.mxu1 %v13853_v2  ;;  %7908 = vmatprep.mubr.f32.mxu0 %v13854_v18  ;;  %v13857_v38 = vand.u32 4294901760, %v13848_v60  ;;  %v13859_v2 = vand.u32 4294901760, %v13850_v56 }
 0x20a   :  { %v11289_v61 = vadd.f32 %v7981_v23, %v2635_v41  ;;  %v2655_v16 = vpop.f32.mrf.mxu0  ;;  %8126 = vmatprep.mubr.f32.mxu1 %v13855_v21  ;;  %v13858_v41 = vld [vmem:[#allocation259_spill] sm:$0xff] }
 0x20b   :  { %v2656_v50 = vadd.f32 %v2655_v16, %v10600_v31  ;;  %v3619_v5 = vpop.f32.mrf.mxu1 }
 0x20c   :  { %v11294_v26 = vadd.f32 %v3619_v5, %v2628_v27  ;;  %v7766_v15 = vpop.f32.mrf.mxu0  ;;  %7909 = vmatmul.mubr.f32.gmra.mxu0 %v13856_v9  ;;  %v13860_v5 = vld [vmem:[#allocation262_spill] sm:$0xff] }
 0x20d   :  { %v2677_v28 = vadd.f32 %v7766_v15, %v10610_v59  ;;  %v7984_v37 = vpop.f32.mrf.mxu1  ;;  %8127 = vmatmul.mubr.f32.gmra.mxu1 %v13857_v38  ;;  %7911 = vmatprep.mubr.f32.mxu0 %v13858_v41  ;;  %v13861_v15 = vand.u32 4294901760, %v13852_v11  ;;  %v13863_v38 = vand.u32 4294901760, %v13854_v18 }
 0x20e   :  { %v11301_v23 = vadd.f32 %v7984_v37, %v2649_v42  ;;  %v2669_v54 = vpop.f32.mrf.mxu0  ;;  %8129 = vmatprep.mubr.f32.mxu1 %v13859_v2  ;;  %v13862_v42 = vld [vmem:[#allocation265_spill] sm:$0xff] }
 0x20f   :  { %v2670_v31 = vadd.f32 %v2669_v54, %v10613_v43  ;;  %v3635_v27 = vpop.f32.mrf.mxu1 }
 0x210   :  { %v11306_v16 = vadd.f32 %v3635_v27, %v2642_v45  ;;  %v7769_v21 = vpop.f32.mrf.mxu0  ;;  %7912 = vmatmul.mubr.f32.gmra.mxu0 %v13860_v5  ;;  %v13864_v27 = vld [vmem:[#allocation269_spill] sm:$0xff] }
 0x211   :  { %v2691_v59 = vadd.f32 %v7769_v21, %v10619_v52  ;;  %v7987_v60 = vpop.f32.mrf.mxu1  ;;  %8130 = vmatmul.mubr.f32.gmra.mxu1 %v13861_v15  ;;  %7914 = vmatprep.mubr.f32.mxu0 %v13862_v42  ;;  %v13865_v21 = vand.u32 4294901760, %v13856_v9  ;;  %v13867_v15 = vand.u32 4294901760, %v13858_v41 }
 0x212   :  { %v11313_v37 = vadd.f32 %v7987_v60, %v2663_v33  ;;  %v2683_v56 = vpop.f32.mrf.mxu0  ;;  %8132 = vmatprep.mubr.f32.mxu1 %v13863_v38  ;;  %v13866_v33 = vld [vmem:[#allocation270_spill] sm:$0xff] }
 0x213   :  { %v2684_v43 = vadd.f32 %v2683_v56, %v10622_v53  ;;  %v3651_v45 = vpop.f32.mrf.mxu1 }
 0x214   :  { %v11318_v54 = vadd.f32 %v3651_v45, %v2656_v50  ;;  %v7772_v2 = vpop.f32.mrf.mxu0  ;;  %7915 = vmatmul.mubr.f32.gmra.mxu0 %v13864_v27  ;;  %v13868_v45 = vand.u32 4294901760, %v13860_v5 }
 0x215   :  { %v2705_v52 = vadd.f32 %v7772_v2, %v10625_v19  ;;  %v7990_v11 = vpop.f32.mrf.mxu1  ;;  %8133 = vmatmul.mubr.f32.gmra.mxu1 %v13865_v21  ;;  %7917 = vmatprep.mubr.f32.mxu0 %v13866_v33  ;;  %v13869_v2 = vand.u32 4294901760, %v13862_v42 }
 0x216   :  { %v11325_v60 = vadd.f32 %v7990_v11, %v2677_v28  ;;  %v2697_v18 = vpop.f32.mrf.mxu0  ;;  %8135 = vmatprep.mubr.f32.mxu1 %v13867_v15  ;;  %v13871_v15 = vand.u32 4294901760, %v13866_v33 }
 0x217   :  { %v2698_v53 = vadd.f32 %v2697_v18, %v10628_v17  ;;  %v3667_v50 = vpop.f32.mrf.mxu1  ;;  %v13870_v18 = vand.u32 4294901760, %v13864_v27 }
 0x218   :  { %v11330_v56 = vadd.f32 %v3667_v50, %v2670_v31  ;;  %v7775_v38 = vpop.f32.mrf.mxu0  ;;  %7918 = vmatmul.mubr.f32.gmra.mxu0 %v10538_v39 }
 0x219   :  { %v2719_v19 = vadd.f32 %v7775_v38, %v10632_v51  ;;  %v7993_v9 = vpop.f32.mrf.mxu1  ;;  %8136 = vmatmul.mubr.f32.gmra.mxu1 %v13868_v45  ;;  %7920 = vmatprep.mubr.f32.mxu0 %v10551_v20 }
 0x21a   :  { %v11337_v28 = vadd.f32 %v7993_v9, %v2691_v59  ;;  %v2711_v41 = vpop.f32.mrf.mxu0  ;;  %8138 = vmatprep.mubr.f32.mxu1 %v13869_v2  ;;  %v13872_v9 = vand.u32 4294901760, %v10538_v39 }
 0x21b   :  { %v2712_v17 = vadd.f32 %v2711_v41, %v10635_v49  ;;  %v3683_v31 = vpop.f32.mrf.mxu1  ;;  %v13874_v41 = vand.u32 4294901760, %v10551_v20 }
 0x21c   :  { %v11342_v11 = vadd.f32 %v3683_v31, %v2684_v43  ;;  %v7778_v21 = vpop.f32.mrf.mxu0  ;;  %7921 = vmatmul.mubr.f32.gmra.mxu0 %v10568_v55 }
 0x21d   :  { %v2733_v51 = vadd.f32 %v7778_v21, %v10640_v46  ;;  %v7996_v5 = vpop.f32.mrf.mxu1  ;;  %8139 = vmatmul.mubr.f32.gmra.mxu1 %v13870_v18  ;;  %7923 = vmatprep.mubr.f32.mxu0 %v10578_v25  ;;  %v13875_v21 = vld [vmem:[#allocation16_spill] sm:$0xff] }
 0x21e   :  { %v11349_v59 = vadd.f32 %v7996_v5, %v2705_v52  ;;  %v2725_v42 = vpop.f32.mrf.mxu0  ;;  %8141 = vmatprep.mubr.f32.mxu1 %v13871_v15  ;;  %v13873_v52 = vld [vmem:[#allocation14_spill] sm:$0xff]  ;;  %v13876_v5 = vand.u32 4294901760, %v10568_v55 }
 0x21f   :  { %v2726_v49 = vadd.f32 %v2725_v42, %v10645_v12  ;;  %v3699_v43 = vpop.f32.mrf.mxu1  ;;  %v13878_v42 = vand.u32 4294901760, %v10578_v25 }
 0x220   :  { %v11354_v50 = vadd.f32 %v3699_v43, %v2698_v53  ;;  %v7781_v38 = vpop.f32.mrf.mxu0  ;;  %7924 = vmatmul.mubr.f32.gmra.mxu0 %v10590_v7 }
 0x221   :  { %v2747_v46 = vadd.f32 %v7781_v38, %v10650_v44  ;;  %v7999_v27 = vpop.f32.mrf.mxu1  ;;  %8142 = vmatmul.mubr.f32.gmra.mxu1 %v13872_v9  ;;  %8182 = vmatprep.mubr.f32.mxu0 %v13873_v52  ;;  %v13879_v38 = vld [vmem:[#allocation24_spill] sm:$0xff] }
 0x222   :  { %v11361_v45 = vadd.f32 %v7999_v27, %v2719_v19  ;;  %v2739_v33 = vpop.f32.mrf.mxu0  ;;  %8144 = vmatprep.mubr.f32.mxu1 %v13874_v41  ;;  %v13877_v19 = vld [vmem:[#allocation21_spill] sm:$0xff]  ;;  %v13880_v27 = vand.u32 4294901760, %v10590_v7  ;;  %v13883_v7 = vld [vmem:[#allocation34_spill] sm:$0xff] }
 0x223   :  { %v2740_v12 = vadd.f32 %v2739_v33, %v10656_v8  ;;  %v3715_v53 = vpop.f32.mrf.mxu1 }
 0x224   :  { %v11366_v2 = vadd.f32 %v3715_v53, %v2712_v17  ;;  %v7784_v31 = vpop.f32.mrf.mxu0  ;;  %8183 = vmatmul.mubr.f32.vlgmr.msra.gmra.mxu0 %v13875_v21  ;;  %v13882_v53 = vld [vmem:[#allocation32_spill] sm:$0xff] }
 0x225   :  { %v2761_v44 = vadd.f32 %v7784_v31, %v10662_v48  ;;  %v8002_v39 = vpop.f32.mrf.mxu1  ;;  %8145 = vmatmul.mubr.f32.gmra.mxu1 %v13876_v5  ;;  %8185 = vmatprep.mubr.f32.mxu0 %v13877_v19 }
 0x226   :  { %v11373_v18 = vadd.f32 %v8002_v39, %v2733_v51  ;;  %v2753_v20 = vpop.f32.mrf.mxu0  ;;  %8147 = vmatprep.mubr.f32.mxu1 %v13878_v42  ;;  %v13881_v51 = vld [vmem:[#allocation30_spill] sm:$0xff] }
 0x227   :  { %v2754_v8 = vadd.f32 %v2753_v20, %v10669_v30  ;;  %v3731_v17 = vpop.f32.mrf.mxu1  ;;  %v13884_v20 = vld [vmem:[#allocation36_spill] sm:$0xff] }
 0x228   :  { %v11378_v15 = vadd.f32 %v3731_v17, %v2726_v49  ;;  %v7787_v43 = vpop.f32.mrf.mxu0  ;;  %8186 = vmatmul.mubr.f32.gmra.mxu0 %v13879_v38 }
 0x229   :  { %v2775_v48 = vadd.f32 %v7787_v43, %v10676_v3  ;;  %v8005_v55 = vpop.f32.mrf.mxu1  ;;  %8148 = vmatmul.mubr.f32.gmra.mxu1 %v13880_v27  ;;  %8188 = vmatprep.mubr.f32.mxu0 %v13881_v51 }
 0x22a   :  { %v11385_v9 = vadd.f32 %v8005_v55, %v2747_v46  ;;  %v2767_v25 = vpop.f32.mrf.mxu0  ;;  %8406 = vmatprep.mubr.f32.mxu1 %v13873_v52  ;;  %v13886_v55 = vld [vmem:[#allocation40_spill] sm:$0xff] }
 0x22b   :  { %v2768_v30 = vadd.f32 %v2767_v25, %v10683_v4  ;;  %v3747_v49 = vpop.f32.mrf.mxu1 }
 0x22c   :  { %v11389_v33 = vadd.f32 %v3747_v49, %v2740_v12  ;;  %v7790_v41 = vpop.f32.mrf.mxu0  ;;  %8189 = vmatmul.mubr.f32.gmra.mxu0 %v13882_v53 }
 0x22d   :  { %v2789_v3 = vadd.f32 %v7790_v41, %v10690_v36  ;;  %v8008_v31 = vpop.f32.mrf.mxu1  ;;  %8407 = vmatmul.mubr.f32.vlgmr.msra.gmra.mxu1 %v13875_v21  ;;  %8191 = vmatprep.mubr.f32.mxu0 %v13883_v7  ;;  %v13885_v21 = vld [vmem:[#allocation38_spill] sm:$0xff] }
 0x22e   :  { %v11395_v46 = vadd.f32 %v8008_v31, %v2761_v44  ;;  %v2781_v39 = vpop.f32.mrf.mxu0  ;;  %8409 = vmatprep.mubr.f32.mxu1 %v13877_v19  ;;  %v13888_v41 = vld [vmem:[#allocation42_spill] sm:$0xff] }
 0x22f   :  { %v2782_v4 = vadd.f32 %v2781_v39, %v10697_v58  ;;  %v3763_v52 = vpop.f32.mrf.mxu1 }
 0x230   :  { %v11399_v12 = vadd.f32 %v3763_v52, %v2754_v8  ;;  %v7793_v5 = vpop.f32.mrf.mxu0  ;;  %8192 = vmatmul.mubr.f32.gmra.mxu0 %v13884_v20 }
 0x231   :  { %v2803_v36 = vadd.f32 %v7793_v5, %v10704_v35  ;;  %v8011_v42 = vpop.f32.mrf.mxu1  ;;  %8410 = vmatmul.mubr.f32.gmra.mxu1 %v13879_v38  ;;  %8194 = vmatprep.mubr.f32.mxu0 %v13885_v21  ;;  %v13887_v38 = vld [vmem:[#allocation41_spill] sm:$0xff] }
 0x232   :  { %v11405_v44 = vadd.f32 %v8011_v42, %v2775_v48  ;;  %v2795_v17 = vpop.f32.mrf.mxu0  ;;  %8412 = vmatprep.mubr.f32.mxu1 %v13881_v51  ;;  %v13890_v5 = vld [vmem:[#allocation45_spill] sm:$0xff] }
 0x233   :  { %v2796_v58 = vadd.f32 %v2795_v17, %v10711_v57  ;;  %v3779_v19 = vpop.f32.mrf.mxu1 }
 0x234   :  { %v11409_v8 = vadd.f32 %v3779_v19, %v2768_v30  ;;  %v7796_v43 = vpop.f32.mrf.mxu0  ;;  %8195 = vmatmul.mubr.f32.gmra.mxu0 %v13886_v55 }
 0x235   :  { %v2817_v35 = vadd.f32 %v7796_v43, %v10718_v14  ;;  %v8014_v27 = vpop.f32.mrf.mxu1  ;;  %8413 = vmatmul.mubr.f32.gmra.mxu1 %v13882_v53  ;;  %8197 = vmatprep.mubr.f32.mxu0 %v13887_v38  ;;  %v13889_v53 = vld [vmem:[#allocation44_spill] sm:$0xff]  ;;  %v13892_v43 = vld [vmem:[#allocation49_spill] sm:$0xff] }
 0x236   :  { %v11415_v48 = vadd.f32 %v8014_v27, %v2789_v3  ;;  %v2809_v25 = vpop.f32.mrf.mxu0  ;;  %8415 = vmatprep.mubr.f32.mxu1 %v13883_v7 }
 0x237   :  { %v2810_v57 = vadd.f32 %v2809_v25, %v10725_v62  ;;  %v3795_v51 = vpop.f32.mrf.mxu1 }
 0x238   :  { %v11419_v30 = vadd.f32 %v3795_v51, %v2782_v4  ;;  %v7799_v49 = vpop.f32.mrf.mxu0  ;;  %8198 = vmatmul.mubr.f32.gmra.mxu0 %v13888_v41 }
 0x239   :  { %v2831_v14 = vadd.f32 %v7799_v49, %v10732_v22  ;;  %v8017_v31 = vpop.f32.mrf.mxu1  ;;  %8416 = vmatmul.mubr.f32.gmra.mxu1 %v13884_v20  ;;  %8200 = vmatprep.mubr.f32.mxu0 %v13889_v53  ;;  %v13891_v20 = vld [vmem:[#allocation47_spill] sm:$0xff]  ;;  %v13894_v49 = vld [vmem:[#allocation52_spill] sm:$0xff] }
 0x23a   :  { %v11425_v3 = vadd.f32 %v8017_v31, %v2803_v36  ;;  %v2823_v39 = vpop.f32.mrf.mxu0  ;;  %8418 = vmatprep.mubr.f32.mxu1 %v13885_v21  ;;  %v13895_v31 = vld [vmem:[#allocation17_spill] sm:$0xff] }
 0x23b   :  { %v2824_v62 = vadd.f32 %v2823_v39, %v10739_v47  ;;  %v3811_v7 = vpop.f32.mrf.mxu1 }
 0x23c   :  { %v11429_v4 = vadd.f32 %v3811_v7, %v2796_v58  ;;  %v7802_v52 = vpop.f32.mrf.mxu0  ;;  %8201 = vmatmul.mubr.f32.gmra.mxu0 %v13890_v5 }
 0x23d   :  { %v2845_v22 = vadd.f32 %v7802_v52, %v10746_v10  ;;  %v8020_v42 = vpop.f32.mrf.mxu1  ;;  %8419 = vmatmul.mubr.f32.gmra.mxu1 %v13886_v55  ;;  %8203 = vmatprep.mubr.f32.mxu0 %v13891_v20  ;;  %v13893_v55 = vld [vmem:[#allocation51_spill] sm:$0xff] }
 0x23e   :  { %v11435_v36 = vadd.f32 %v8020_v42, %v2817_v35  ;;  %v2837_v17 = vpop.f32.mrf.mxu0  ;;  %8421 = vmatprep.mubr.f32.mxu1 %v13887_v38 }
 0x23f   :  { %v2838_v47 = vadd.f32 %v2837_v17, %v10753_v40  ;;  %v3827_v21 = vpop.f32.mrf.mxu1  ;;  %v13898_v17 = vld [vmem:[#allocation54_spill] sm:$0xff] }
 0x240   :  { %v11439_v58 = vadd.f32 %v3827_v21, %v2810_v57  ;;  %v7805_v19 = vpop.f32.mrf.mxu0  ;;  %8204 = vmatmul.mubr.f32.gmra.mxu0 %v13892_v43  ;;  %v13899_v21 = vld [vmem:[#allocation26_spill] sm:$0xff] }
 0x241   :  { %v2859_v10 = vadd.f32 %v7805_v19, %v10760_v13  ;;  %v8023_v27 = vpop.f32.mrf.mxu1  ;;  %8422 = vmatmul.mubr.f32.gmra.mxu1 %v13888_v41  ;;  %8206 = vmatprep.mubr.f32.mxu0 %v13893_v55  ;;  %v13896_v41 = vld [vmem:[#allocation53_spill] sm:$0xff] }
 0x242   :  { %v11445_v35 = vadd.f32 %v8023_v27, %v2831_v14  ;;  %v2851_v25 = vpop.f32.mrf.mxu0  ;;  %8424 = vmatprep.mubr.f32.mxu1 %v13889_v53  ;;  %v13897_v53 = vld [vmem:[#allocation19_spill] sm:$0xff] }
 0x243   :  { %v2852_v40 = vadd.f32 %v2851_v25, %v10767_v1  ;;  %v3843_v38 = vpop.f32.mrf.mxu1 }
 0x244   :  { %v11449_v57 = vadd.f32 %v3843_v38, %v2824_v62  ;;  %v7808_v51 = vpop.f32.mrf.mxu0  ;;  %8207 = vmatmul.mubr.f32.gmra.mxu0 %v13894_v49 }
 0x245   :  { %v2873_v13 = vadd.f32 %v7808_v51, %v13895_v31  ;;  %v8026_v39 = vpop.f32.mrf.mxu1  ;;  %8425 = vmatmul.mubr.f32.gmra.mxu1 %v13890_v5  ;;  %8209 = vmatprep.mubr.f32.mxu0 %v13896_v41  ;;  %v13900_v5 = vld [vmem:[#allocation56_spill] sm:$0xff] }
 0x246   :  { %v11455_v14 = vadd.f32 %v8026_v39, %v2845_v22  ;;  %v2865_v7 = vpop.f32.mrf.mxu0  ;;  %8427 = vmatprep.mubr.f32.mxu1 %v13891_v20  ;;  %v13901_v20 = vld [vmem:[#allocation3_spill] sm:$0xff]  ;;  %v13902_v39 = vld [vmem:[#allocation58_spill] sm:$0xff] }
 0x247   :  { %v2866_v1 = vadd.f32 %v2865_v7, %v13897_v53  ;;  %v3859_v52 = vpop.f32.mrf.mxu1  ;;  %v13903_v7 = vld [vmem:[#allocation29_spill] sm:$0xff] }
 0x248   :  { %v11459_v62 = vadd.f32 %v3859_v52, %v2838_v47  ;;  %v7811_v42 = vpop.f32.mrf.mxu0  ;;  %8210 = vmatmul.mubr.f32.gmra.mxu0 %v13898_v17 }
 0x249   :  { %v2887_v19 = vadd.f32 %v7811_v42, %v13899_v21  ;;  %v8029_v27 = vpop.f32.mrf.mxu1  ;;  %8428 = vmatmul.mubr.f32.gmra.mxu1 %v13892_v43  ;;  %8212 = vmatprep.mubr.f32.mxu0 %v13900_v5  ;;  %v13904_v43 = vld [vmem:[#allocation59_spill] sm:$0xff] }
 0x24a   :  { %v11465_v22 = vadd.f32 %v8029_v27, %v2859_v10  ;;  %v2879_v25 = vpop.f32.mrf.mxu0  ;;  %8430 = vmatprep.mubr.f32.mxu1 %v13893_v55  ;;  %v13906_v55 = vld [vmem:[#allocation33_spill] sm:$0xff] }
 0x24b   :  { %v2880_v38 = vadd.f32 %v2879_v25, %v13901_v20  ;;  %v3875_v51 = vpop.f32.mrf.mxu1  ;;  %v13908_v20 = vld [vmem:[#allocation61_spill] sm:$0xff] }
 0x24c   :  { %v11469_v47 = vadd.f32 %v3875_v51, %v2852_v40  ;;  %v7814_v31 = vpop.f32.mrf.mxu0  ;;  %8213 = vmatmul.mubr.f32.gmra.mxu0 %v13902_v39  ;;  %v13909_v51 = vld [vmem:[#allocation4_spill] sm:$0xff] }
 0x24d   :  { %v2901_v53 = vadd.f32 %v7814_v31, %v13903_v7  ;;  %v8032_v52 = vpop.f32.mrf.mxu1  ;;  %8431 = vmatmul.mubr.f32.gmra.mxu1 %v13894_v49  ;;  %8215 = vmatprep.mubr.f32.mxu0 %v13904_v43  ;;  %v13910_v49 = vld [vmem:[#allocation63_spill] sm:$0xff] }
 0x24e   :  { %v11475_v10 = vadd.f32 %v8032_v52, %v2873_v13  ;;  %v2893_v42 = vpop.f32.mrf.mxu0  ;;  %8433 = vmatprep.mubr.f32.mxu1 %v13896_v41  ;;  %v13912_v41 = vld [vmem:[#allocation5_spill] sm:$0xff] }
 0x24f   :  { %v2894_v21 = vadd.f32 %v2893_v42, %v13906_v55  ;;  %v3891_v27 = vpop.f32.mrf.mxu1 }
 0x250   :  { %13905 = vst [vmem:[#allocation167_spill] sm:$0xff] %v11475_v10  ;;  %v11479_v40 = vadd.f32 %v3891_v27, %v2866_v1  ;;  %v7817_v25 = vpop.f32.mrf.mxu0  ;;  %8216 = vmatmul.mubr.f32.gmra.mxu0 %v13908_v20  ;;  %v13915_v10 = vld [vmem:[#allocation43_spill] sm:$0xff] }
 0x251   :  { %v2915_v31 = vadd.f32 %v7817_v25, %v13909_v51  ;;  %v8035_v7 = vpop.f32.mrf.mxu1  ;;  %8434 = vmatmul.mubr.f32.gmra.mxu1 %v13898_v17  ;;  %8218 = vmatprep.mubr.f32.mxu0 %v13910_v49  ;;  %v13916_v17 = vld [vmem:[#allocation66_spill] sm:$0xff] }
 0x252   :  { %13907 = vst [vmem:[#allocation169_spill] sm:$0xff] %v11479_v40  ;;  %v11485_v13 = vadd.f32 %v8035_v7, %v2887_v19  ;;  %v2907_v52 = vpop.f32.mrf.mxu0  ;;  %8436 = vmatprep.mubr.f32.mxu1 %v13900_v5  ;;  %v13914_v40 = vld [vmem:[#allocation65_spill] sm:$0xff]  ;;  %v13918_v5 = vld [vmem:[#allocation6_spill] sm:$0xff] }
 0x253   :  { %v2908_v42 = vadd.f32 %v2907_v52, %v13912_v41  ;;  %v3907_v55 = vpop.f32.mrf.mxu1 }
 0x254   :  { %13911 = vst [vmem:[#allocation171_spill] sm:$0xff] %v11485_v13  ;;  %v11489_v1 = vadd.f32 %v3907_v55, %v2880_v38  ;;  %v7820_v27 = vpop.f32.mrf.mxu0  ;;  %8219 = vmatmul.mubr.f32.gmra.mxu0 %v13914_v40  ;;  %v13921_v13 = vld [vmem:[#allocation46_spill] sm:$0xff] }
 0x255   :  { %v2929_v25 = vadd.f32 %v7820_v27, %v13915_v10  ;;  %v8038_v51 = vpop.f32.mrf.mxu1  ;;  %8437 = vmatmul.mubr.f32.gmra.mxu1 %v13902_v39  ;;  %8221 = vmatprep.mubr.f32.mxu0 %v13916_v17  ;;  %v13922_v39 = vld [vmem:[#allocation71_spill] sm:$0xff] }
 0x256   :  { %13913 = vst [vmem:[#allocation173_spill] sm:$0xff] %v11489_v1  ;;  %v11495_v19 = vadd.f32 %v8038_v51, %v2901_v53  ;;  %v2921_v7 = vpop.f32.mrf.mxu0  ;;  %8439 = vmatprep.mubr.f32.mxu1 %v13904_v43  ;;  %v13920_v1 = vld [vmem:[#allocation68_spill] sm:$0xff]  ;;  %v13924_v43 = vld [vmem:[#allocation7_spill] sm:$0xff] }
 0x257   :  { %v2922_v52 = vadd.f32 %v2921_v7, %v13918_v5  ;;  %v3923_v41 = vpop.f32.mrf.mxu1 }
 0x258   :  { %13917 = vst [vmem:[#allocation176_spill] sm:$0xff] %v11495_v19  ;;  %v11499_v38 = vadd.f32 %v3923_v41, %v2894_v21  ;;  %v7823_v55 = vpop.f32.mrf.mxu0  ;;  %8222 = vmatmul.mubr.f32.gmra.mxu0 %v13920_v1  ;;  %v13927_v19 = vld [vmem:[#allocation48_spill] sm:$0xff] }
 0x259   :  { %v2943_v10 = vadd.f32 %v7823_v55, %v13921_v13  ;;  %v8041_v27 = vpop.f32.mrf.mxu1  ;;  %8440 = vmatmul.mubr.f32.gmra.mxu1 %v13908_v20  ;;  %8224 = vmatprep.mubr.f32.mxu0 %v13922_v39  ;;  %v13928_v20 = vld [vmem:[#allocation75_spill] sm:$0xff] }
 0x25a   :  { %13919 = vst [vmem:[#allocation178_spill] sm:$0xff] %v11499_v38  ;;  %v11505_v53 = vadd.f32 %v8041_v27, %v2915_v31  ;;  %v2935_v51 = vpop.f32.mrf.mxu0  ;;  %8442 = vmatprep.mubr.f32.mxu1 %v13910_v49  ;;  %v13926_v38 = vld [vmem:[#allocation73_spill] sm:$0xff]  ;;  %v13930_v49 = vld [vmem:[#allocation50_spill] sm:$0xff] }
 0x25b   :  { %v2936_v7 = vadd.f32 %v2935_v51, %v13924_v43  ;;  %v3939_v5 = vpop.f32.mrf.mxu1 }
 0x25c   :  { %13923 = vst [vmem:[#allocation179_spill] sm:$0xff] %v11505_v53  ;;  %v11509_v21 = vadd.f32 %v3939_v5, %v2908_v42  ;;  %v7826_v41 = vpop.f32.mrf.mxu0  ;;  %8225 = vmatmul.mubr.f32.gmra.mxu0 %v13926_v38  ;;  %v13933_v53 = vld [vmem:[#allocation9_spill] sm:$0xff] }
 0x25d   :  { %v2957_v13 = vadd.f32 %v7826_v41, %v13927_v19  ;;  %v8044_v55 = vpop.f32.mrf.mxu1  ;;  %8443 = vmatmul.mubr.f32.gmra.mxu1 %v13914_v40  ;;  %8227 = vmatprep.mubr.f32.mxu0 %v13928_v20  ;;  %v13934_v40 = vld [vmem:[#allocation79_spill] sm:$0xff] }
 0x25e   :  { %13925 = vst [vmem:[#allocation181_spill] sm:$0xff] %v11509_v21  ;;  %v11515_v31 = vadd.f32 %v8044_v55, %v2929_v25  ;;  %v2949_v27 = vpop.f32.mrf.mxu0  ;;  %8445 = vmatprep.mubr.f32.mxu1 %v13916_v17  ;;  %v13932_v21 = vld [vmem:[#allocation76_spill] sm:$0xff]  ;;  %v13936_v17 = vld [vmem:[#allocation11_spill] sm:$0xff] }
 0x25f   :  { %v2950_v51 = vadd.f32 %v2949_v27, %v13930_v49  ;;  %v3955_v43 = vpop.f32.mrf.mxu1 }
 0x260   :  { %13929 = vst [vmem:[#allocation183_spill] sm:$0xff] %v11515_v31  ;;  %v11519_v42 = vadd.f32 %v3955_v43, %v2922_v52  ;;  %v7829_v5 = vpop.f32.mrf.mxu0  ;;  %8228 = vmatmul.mubr.f32.gmra.mxu0 %v13932_v21  ;;  %v13939_v31 = vld [vmem:[#allocation55_spill] sm:$0xff] }
 0x261   :  { %v2971_v19 = vadd.f32 %v7829_v5, %v13933_v53  ;;  %v8047_v41 = vpop.f32.mrf.mxu1  ;;  %8446 = vmatmul.mubr.f32.gmra.mxu1 %v13920_v1  ;;  %8230 = vmatprep.mubr.f32.mxu0 %v13934_v40  ;;  %v13940_v1 = vld [vmem:[#allocation82_spill] sm:$0xff] }
 0x262   :  { %13931 = vst [vmem:[#allocation185_spill] sm:$0xff] %v11519_v42  ;;  %v11525_v25 = vadd.f32 %v8047_v41, %v2943_v10  ;;  %v2963_v55 = vpop.f32.mrf.mxu0  ;;  %8448 = vmatprep.mubr.f32.mxu1 %v13922_v39  ;;  %v13938_v42 = vld [vmem:[#allocation81_spill] sm:$0xff] }
 0x263   :  { %v2964_v27 = vadd.f32 %v2963_v55, %v13936_v17  ;;  %v3971_v49 = vpop.f32.mrf.mxu1  ;;  %v13942_v39 = vld [vmem:[#allocation13_spill] sm:$0xff] }
 0x264   :  { %13935 = vst [vmem:[#allocation187_spill] sm:$0xff] %v11525_v25  ;;  %v11529_v52 = vadd.f32 %v3971_v49, %v2936_v7  ;;  %v7832_v43 = vpop.f32.mrf.mxu0  ;;  %8231 = vmatmul.mubr.f32.gmra.mxu0 %v13938_v42  ;;  %v13945_v25 = vld [vmem:[#allocation57_spill] sm:$0xff] }
 0x265   :  { %v2985_v53 = vadd.f32 %v7832_v43, %v13939_v31  ;;  %v8050_v5 = vpop.f32.mrf.mxu1  ;;  %8449 = vmatmul.mubr.f32.gmra.mxu1 %v13926_v38  ;;  %8233 = vmatprep.mubr.f32.mxu0 %v13940_v1  ;;  %v13946_v38 = vld [vmem:[#allocation87_spill] sm:$0xff] }
 0x266   :  { %13937 = vst [vmem:[#allocation189_spill] sm:$0xff] %v11529_v52  ;;  %v11535_v10 = vadd.f32 %v8050_v5, %v2957_v13  ;;  %v2977_v41 = vpop.f32.mrf.mxu0  ;;  %8451 = vmatprep.mubr.f32.mxu1 %v13928_v20  ;;  %v13944_v52 = vld [vmem:[#allocation84_spill] sm:$0xff]  ;;  %v13948_v20 = vld [vmem:[#allocation15_spill] sm:$0xff] }
 0x267   :  { %v2978_v55 = vadd.f32 %v2977_v41, %v13942_v39  ;;  %v3987_v17 = vpop.f32.mrf.mxu1 }
 0x268   :  { %13941 = vst [vmem:[#allocation192_spill] sm:$0xff] %v11535_v10  ;;  %v11539_v7 = vadd.f32 %v3987_v17, %v2950_v51  ;;  %v7835_v49 = vpop.f32.mrf.mxu0  ;;  %8234 = vmatmul.mubr.f32.gmra.mxu0 %v13944_v52  ;;  %v13951_v10 = vld [vmem:[#allocation60_spill] sm:$0xff] }
 0x269   :  { %v2999_v31 = vadd.f32 %v7835_v49, %v13945_v25  ;;  %v8053_v43 = vpop.f32.mrf.mxu1  ;;  %8452 = vmatmul.mubr.f32.gmra.mxu1 %v13932_v21  ;;  %8236 = vmatprep.mubr.f32.mxu0 %v13946_v38  ;;  %v13952_v21 = vld [vmem:[#allocation91_spill] sm:$0xff] }
 0x26a   :  { %13943 = vst [vmem:[#allocation194_spill] sm:$0xff] %v11539_v7  ;;  %v11545_v13 = vadd.f32 %v8053_v43, %v2971_v19  ;;  %v2991_v5 = vpop.f32.mrf.mxu0  ;;  %8454 = vmatprep.mubr.f32.mxu1 %v13934_v40  ;;  %v13950_v7 = vld [vmem:[#allocation89_spill] sm:$0xff]  ;;  %v13954_v40 = vld [vmem:[#allocation62_spill] sm:$0xff] }
 0x26b   :  { %v2992_v41 = vadd.f32 %v2991_v5, %v13948_v20  ;;  %v4003_v39 = vpop.f32.mrf.mxu1 }
 0x26c   :  { %13947 = vst [vmem:[#allocation195_spill] sm:$0xff] %v11545_v13  ;;  %v11549_v51 = vadd.f32 %v4003_v39, %v2964_v27  ;;  %v7838_v17 = vpop.f32.mrf.mxu0  ;;  %8237 = vmatmul.mubr.f32.gmra.mxu0 %v13950_v7  ;;  %v13957_v13 = vld [vmem:[#allocation20_spill] sm:$0xff] }
 0x26d   :  { %v3013_v25 = vadd.f32 %v7838_v17, %v13951_v10  ;;  %v8056_v49 = vpop.f32.mrf.mxu1  ;;  %8455 = vmatmul.mubr.f32.gmra.mxu1 %v13938_v42  ;;  %8239 = vmatprep.mubr.f32.mxu0 %v13952_v21  ;;  %v13958_v42 = vld [vmem:[#allocation95_spill] sm:$0xff] }
 0x26e   :  { %13949 = vst [vmem:[#allocation197_spill] sm:$0xff] %v11549_v51  ;;  %v11555_v19 = vadd.f32 %v8056_v49, %v2985_v53  ;;  %v3005_v43 = vpop.f32.mrf.mxu0  ;;  %8457 = vmatprep.mubr.f32.mxu1 %v13940_v1  ;;  %v13956_v51 = vld [vmem:[#allocation93_spill] sm:$0xff]  ;;  %v13960_v1 = vld [vmem:[#allocation64_spill] sm:$0xff] }
 0x26f   :  { %v3006_v5 = vadd.f32 %v3005_v43, %v13954_v40  ;;  %v4019_v20 = vpop.f32.mrf.mxu1 }
 0x270   :  { %13953 = vst [vmem:[#allocation199_spill] sm:$0xff] %v11555_v19  ;;  %v11559_v27 = vadd.f32 %v4019_v20, %v2978_v55  ;;  %v7841_v39 = vpop.f32.mrf.mxu0  ;;  %8240 = vmatmul.mubr.f32.gmra.mxu0 %v13956_v51  ;;  %v13963_v19 = vld [vmem:[#allocation8_spill] sm:$0xff] }
 0x271   :  { %v3027_v10 = vadd.f32 %v7841_v39, %v13957_v13  ;;  %v8059_v17 = vpop.f32.mrf.mxu1  ;;  %8458 = vmatmul.mubr.f32.gmra.mxu1 %v13944_v52  ;;  %8242 = vmatprep.mubr.f32.mxu0 %v13958_v42  ;;  %v13964_v52 = vld [vmem:[#allocation97_spill] sm:$0xff] }
 0x272   :  { %13955 = vst [vmem:[#allocation202_spill] sm:$0xff] %v11559_v27  ;;  %v11565_v53 = vadd.f32 %v8059_v17, %v2999_v31  ;;  %v3019_v49 = vpop.f32.mrf.mxu0  ;;  %8460 = vmatprep.mubr.f32.mxu1 %v13946_v38  ;;  %v13962_v27 = vld [vmem:[#allocation96_spill] sm:$0xff]  ;;  %v13966_v38 = vld [vmem:[#allocation67_spill] sm:$0xff] }
 0x273   :  { %v3020_v43 = vadd.f32 %v3019_v49, %v13960_v1  ;;  %v4035_v40 = vpop.f32.mrf.mxu1 }
 0x274   :  { %13959 = vst [vmem:[#allocation203_spill] sm:$0xff] %v11565_v53  ;;  %v11569_v55 = vadd.f32 %v4035_v40, %v2992_v41  ;;  %v7844_v20 = vpop.f32.mrf.mxu0  ;;  %8243 = vmatmul.mubr.f32.gmra.mxu0 %v13962_v27  ;;  %v13969_v53 = vld [vmem:[#allocation23_spill] sm:$0xff] }
 0x275   :  { %v3041_v13 = vadd.f32 %v7844_v20, %v13963_v19  ;;  %v8062_v39 = vpop.f32.mrf.mxu1  ;;  %8461 = vmatmul.mubr.f32.gmra.mxu1 %v13950_v7  ;;  %8245 = vmatprep.mubr.f32.mxu0 %v13964_v52  ;;  %v13970_v7 = vld [vmem:[#allocation101_spill] sm:$0xff] }
 0x276   :  { %13961 = vst [vmem:[#allocation205_spill] sm:$0xff] %v11569_v55  ;;  %v11575_v31 = vadd.f32 %v8062_v39, %v3013_v25  ;;  %v3033_v17 = vpop.f32.mrf.mxu0  ;;  %8463 = vmatprep.mubr.f32.mxu1 %v13952_v21  ;;  %v13968_v55 = vld [vmem:[#allocation100_spill] sm:$0xff]  ;;  %v13972_v21 = vld [vmem:[#allocation69_spill] sm:$0xff] }
 0x277   :  { %v3034_v49 = vadd.f32 %v3033_v17, %v13966_v38  ;;  %v4051_v1 = vpop.f32.mrf.mxu1 }
 0x278   :  { %13965 = vst [vmem:[#allocation208_spill] sm:$0xff] %v11575_v31  ;;  %v11579_v41 = vadd.f32 %v4051_v1, %v3006_v5  ;;  %v7847_v40 = vpop.f32.mrf.mxu0  ;;  %8246 = vmatmul.mubr.f32.gmra.mxu0 %v13968_v55  ;;  %v13975_v31 = vld [vmem:[#allocation10_spill] sm:$0xff] }
 0x279   :  { %v3055_v19 = vadd.f32 %v7847_v40, %v13969_v53  ;;  %v8065_v20 = vpop.f32.mrf.mxu1  ;;  %8464 = vmatmul.mubr.f32.gmra.mxu1 %v13956_v51  ;;  %8248 = vmatprep.mubr.f32.mxu0 %v13970_v7  ;;  %v13976_v51 = vld [vmem:[#allocation105_spill] sm:$0xff] }
 0x27a   :  { %13967 = vst [vmem:[#allocation210_spill] sm:$0xff] %v11579_v41  ;;  %v11585_v25 = vadd.f32 %v8065_v20, %v3027_v10  ;;  %v3047_v39 = vpop.f32.mrf.mxu0  ;;  %8466 = vmatprep.mubr.f32.mxu1 %v13958_v42  ;;  %v13974_v41 = vld [vmem:[#allocation103_spill] sm:$0xff]  ;;  %v13978_v42 = vld [vmem:[#allocation70_spill] sm:$0xff] }
 0x27b   :  { %v3048_v17 = vadd.f32 %v3047_v39, %v13972_v21  ;;  %v4067_v38 = vpop.f32.mrf.mxu1 }
 0x27c   :  { %13971 = vst [vmem:[#allocation237_spill] sm:$0xff] %v11585_v25  ;;  %v11589_v5 = vadd.f32 %v4067_v38, %v3020_v43  ;;  %v7850_v1 = vpop.f32.mrf.mxu0  ;;  %8249 = vmatmul.mubr.f32.gmra.mxu0 %v13974_v41  ;;  %v13981_v25 = vld [vmem:[#allocation25_spill] sm:$0xff] }
 0x27d   :  { %v3069_v53 = vadd.f32 %v7850_v1, %v13975_v31  ;;  %v8068_v40 = vpop.f32.mrf.mxu1  ;;  %8467 = vmatmul.mubr.f32.gmra.mxu1 %v13962_v27  ;;  %8251 = vmatprep.mubr.f32.mxu0 %v13976_v51  ;;  %v13982_v27 = vld [vmem:[#allocation108_spill] sm:$0xff] }
 0x27e   :  { %13973 = vst [vmem:[#allocation211_spill] sm:$0xff] %v11589_v5  ;;  %v11595_v10 = vadd.f32 %v8068_v40, %v3041_v13  ;;  %v3061_v20 = vpop.f32.mrf.mxu0  ;;  %8469 = vmatprep.mubr.f32.mxu1 %v13964_v52  ;;  %v13980_v5 = vld [vmem:[#allocation106_spill] sm:$0xff]  ;;  %v13984_v52 = vld [vmem:[#allocation72_spill] sm:$0xff] }
 0x27f   :  { %v3062_v39 = vadd.f32 %v3061_v20, %v13978_v42  ;;  %v4083_v21 = vpop.f32.mrf.mxu1 }
 0x280   :  { %13977 = vst [vmem:[#allocation238_spill] sm:$0xff] %v11595_v10  ;;  %v11599_v43 = vadd.f32 %v4083_v21, %v3034_v49  ;;  %v7853_v38 = vpop.f32.mrf.mxu0  ;;  %8252 = vmatmul.mubr.f32.gmra.mxu0 %v13980_v5  ;;  %v13987_v10 = vld [vmem:[#allocation12_spill] sm:$0xff] }
 0x281   :  { %v3083_v31 = vadd.f32 %v7853_v38, %v13981_v25  ;;  %v8071_v1 = vpop.f32.mrf.mxu1  ;;  %8470 = vmatmul.mubr.f32.gmra.mxu1 %v13968_v55  ;;  %8254 = vmatprep.mubr.f32.mxu0 %v13982_v27  ;;  %v13988_v55 = vld [vmem:[#allocation111_spill] sm:$0xff] }
 0x282   :  { %13979 = vst [vmem:[#allocation213_spill] sm:$0xff] %v11599_v43  ;;  %v11605_v13 = vadd.f32 %v8071_v1, %v3055_v19  ;;  %v3075_v40 = vpop.f32.mrf.mxu0  ;;  %8472 = vmatprep.mubr.f32.mxu1 %v13970_v7  ;;  %v13986_v43 = vld [vmem:[#allocation110_spill] sm:$0xff] }
 0x283   :  { %v3076_v20 = vadd.f32 %v3075_v40, %v13984_v52  ;;  %v4099_v42 = vpop.f32.mrf.mxu1  ;;  %v13990_v7 = vld [vmem:[#allocation74_spill] sm:$0xff] }
 0x284   :  { %13983 = vst [vmem:[#allocation243_spill] sm:$0xff] %v11605_v13  ;;  %v11609_v49 = vadd.f32 %v4099_v42, %v3048_v17  ;;  %v7856_v21 = vpop.f32.mrf.mxu0  ;;  %8255 = vmatmul.mubr.f32.gmra.mxu0 %v13986_v43  ;;  %v13993_v13 = vld [vmem:[#allocation35_spill] sm:$0xff] }
 0x285   :  { %v3097_v25 = vadd.f32 %v7856_v21, %v13987_v10  ;;  %v8074_v38 = vpop.f32.mrf.mxu1  ;;  %8473 = vmatmul.mubr.f32.gmra.mxu1 %v13974_v41  ;;  %8257 = vmatprep.mubr.f32.mxu0 %v13988_v55  ;;  %v13994_v41 = vld [vmem:[#allocation116_spill] sm:$0xff] }
 0x286   :  { %13985 = vst [vmem:[#allocation215_spill] sm:$0xff] %v11609_v49  ;;  %v11615_v19 = vadd.f32 %v8074_v38, %v3069_v53  ;;  %v3089_v1 = vpop.f32.mrf.mxu0  ;;  %8475 = vmatprep.mubr.f32.mxu1 %v13976_v51  ;;  %v13992_v49 = vld [vmem:[#allocation113_spill] sm:$0xff] }
 0x287   :  { %v3090_v40 = vadd.f32 %v3089_v1, %v13990_v7  ;;  %v4115_v52 = vpop.f32.mrf.mxu1  ;;  %v13996_v51 = vld [vmem:[#allocation77_spill] sm:$0xff] }
 0x288   :  { %13989 = vst [vmem:[#allocation245_spill] sm:$0xff] %v11615_v19  ;;  %v11619_v17 = vadd.f32 %v4115_v52, %v3062_v39  ;;  %v7859_v42 = vpop.f32.mrf.mxu0  ;;  %8258 = vmatmul.mubr.f32.gmra.mxu0 %v13992_v49  ;;  %v13999_v19 = vld [vmem:[#allocation18_spill] sm:$0xff] }
 0x289   :  { %v3111_v10 = vadd.f32 %v7859_v42, %v13993_v13  ;;  %v8077_v21 = vpop.f32.mrf.mxu1  ;;  %8476 = vmatmul.mubr.f32.gmra.mxu1 %v13980_v5  ;;  %8260 = vmatprep.mubr.f32.mxu0 %v13994_v41  ;;  %v14000_v5 = vld [vmem:[#allocation120_spill] sm:$0xff] }
 0x28a   :  { %13991 = vst [vmem:[#allocation217_spill] sm:$0xff] %v11619_v17  ;;  %v11625_v53 = vadd.f32 %v8077_v21, %v3083_v31  ;;  %v3103_v38 = vpop.f32.mrf.mxu0  ;;  %8478 = vmatprep.mubr.f32.mxu1 %v13982_v27  ;;  %v13998_v17 = vld [vmem:[#allocation118_spill] sm:$0xff] }
 0x28b   :  { %v3104_v1 = vadd.f32 %v3103_v38, %v13996_v51  ;;  %v4131_v7 = vpop.f32.mrf.mxu1  ;;  %v14002_v27 = vld [vmem:[#allocation78_spill] sm:$0xff] }
 0x28c   :  { %13995 = vst [vmem:[#allocation249_spill] sm:$0xff] %v11625_v53  ;;  %v11629_v39 = vadd.f32 %v4131_v7, %v3076_v20  ;;  %v7862_v52 = vpop.f32.mrf.mxu0  ;;  %8261 = vmatmul.mubr.f32.gmra.mxu0 %v13998_v17  ;;  %v14005_v53 = vld [vmem:[#allocation37_spill] sm:$0xff] }
 0x28d   :  { %v3125_v13 = vadd.f32 %v7862_v52, %v13999_v19  ;;  %v8080_v42 = vpop.f32.mrf.mxu1  ;;  %8479 = vmatmul.mubr.f32.gmra.mxu1 %v13986_v43  ;;  %8263 = vmatprep.mubr.f32.mxu0 %v14000_v5  ;;  %v14006_v43 = vld [vmem:[#allocation124_spill] sm:$0xff] }
 0x28e   :  { %13997 = vst [vmem:[#allocation219_spill] sm:$0xff] %v11629_v39  ;;  %v11635_v31 = vadd.f32 %v8080_v42, %v3097_v25  ;;  %v3117_v21 = vpop.f32.mrf.mxu0  ;;  %8481 = vmatprep.mubr.f32.mxu1 %v13988_v55  ;;  %v14004_v39 = vld [vmem:[#allocation122_spill] sm:$0xff]  ;;  %v14008_v55 = vld [vmem:[#allocation80_spill] sm:$0xff] }
 0x28f   :  { %v3118_v38 = vadd.f32 %v3117_v21, %v14002_v27  ;;  %v4147_v51 = vpop.f32.mrf.mxu1 }
 0x290   :  { %14001 = vst [vmem:[#allocation252_spill] sm:$0xff] %v11635_v31  ;;  %v11639_v20 = vadd.f32 %v4147_v51, %v3090_v40  ;;  %v7865_v7 = vpop.f32.mrf.mxu0  ;;  %8264 = vmatmul.mubr.f32.gmra.mxu0 %v14004_v39  ;;  %v14011_v31 = vld [vmem:[#allocation22_spill] sm:$0xff] }
 0x291   :  { %v3139_v19 = vadd.f32 %v7865_v7, %v14005_v53  ;;  %v8083_v52 = vpop.f32.mrf.mxu1  ;;  %8482 = vmatmul.mubr.f32.gmra.mxu1 %v13992_v49  ;;  %8266 = vmatprep.mubr.f32.mxu0 %v14006_v43  ;;  %v14012_v49 = vld [vmem:[#allocation127_spill] sm:$0xff] }
 0x292   :  { %14003 = vst [vmem:[#allocation222_spill] sm:$0xff] %v11639_v20  ;;  %v11645_v25 = vadd.f32 %v8083_v52, %v3111_v10  ;;  %v3131_v42 = vpop.f32.mrf.mxu0  ;;  %8484 = vmatprep.mubr.f32.mxu1 %v13994_v41  ;;  %v14010_v20 = vld [vmem:[#allocation126_spill] sm:$0xff]  ;;  %v14014_v41 = vld [vmem:[#allocation83_spill] sm:$0xff] }
 0x293   :  { %v3132_v21 = vadd.f32 %v3131_v42, %v14008_v55  ;;  %v4163_v27 = vpop.f32.mrf.mxu1 }
 0x294   :  { %14007 = vst [vmem:[#allocation255_spill] sm:$0xff] %v11645_v25  ;;  %v11649_v40 = vadd.f32 %v4163_v27, %v3104_v1  ;;  %v7868_v51 = vpop.f32.mrf.mxu0  ;;  %8267 = vmatmul.mubr.f32.gmra.mxu0 %v14010_v20  ;;  %v14017_v25 = vld [vmem:[#allocation39_spill] sm:$0xff] }
 0x295   :  { %v3153_v53 = vadd.f32 %v7868_v51, %v14011_v31  ;;  %v8086_v7 = vpop.f32.mrf.mxu1  ;;  %8485 = vmatmul.mubr.f32.gmra.mxu1 %v13998_v17  ;;  %8269 = vmatprep.mubr.f32.mxu0 %v14012_v49  ;;  %v14018_v17 = vld [vmem:[#allocation132_spill] sm:$0xff] }
 0x296   :  { %14009 = vst [vmem:[#allocation223_spill] sm:$0xff] %v11649_v40  ;;  %v11655_v10 = vadd.f32 %v8086_v7, %v3125_v13  ;;  %v3145_v52 = vpop.f32.mrf.mxu0  ;;  %8487 = vmatprep.mubr.f32.mxu1 %v14000_v5  ;;  %v14016_v40 = vld [vmem:[#allocation129_spill] sm:$0xff] }
 0x297   :  { %v3146_v42 = vadd.f32 %v3145_v52, %v14014_v41  ;;  %v4179_v55 = vpop.f32.mrf.mxu1  ;;  %v14020_v5 = vld [vmem:[#allocation85_spill] sm:$0xff] }
 0x298   :  { %14013 = vst [vmem:[#allocation258_spill] sm:$0xff] %v11655_v10  ;;  %v11659_v1 = vadd.f32 %v4179_v55, %v3118_v38  ;;  %v7871_v27 = vpop.f32.mrf.mxu0  ;;  %8270 = vmatmul.mubr.f32.gmra.mxu0 %v14016_v40  ;;  %v14023_v10 = vld [vmem:[#allocation27_spill] sm:$0xff] }
 0x299   :  { %v3167_v31 = vadd.f32 %v7871_v27, %v14017_v25  ;;  %v8089_v51 = vpop.f32.mrf.mxu1  ;;  %8488 = vmatmul.mubr.f32.gmra.mxu1 %v14004_v39  ;;  %8272 = vmatprep.mubr.f32.mxu0 %v14018_v17  ;;  %v14024_v39 = vld [vmem:[#allocation136_spill] sm:$0xff] }
 0x29a   :  { %14015 = vst [vmem:[#allocation225_spill] sm:$0xff] %v11659_v1  ;;  %v11665_v13 = vadd.f32 %v8089_v51, %v3139_v19  ;;  %v3159_v7 = vpop.f32.mrf.mxu0  ;;  %8490 = vmatprep.mubr.f32.mxu1 %v14006_v43  ;;  %v14022_v1 = vld [vmem:[#allocation134_spill] sm:$0xff] }
 0x29b   :  { %v3160_v52 = vadd.f32 %v3159_v7, %v14020_v5  ;;  %v4195_v41 = vpop.f32.mrf.mxu1  ;;  %v14026_v43 = vld [vmem:[#allocation86_spill] sm:$0xff] }
 0x29c   :  { %14019 = vst [vmem:[#allocation261_spill] sm:$0xff] %v11665_v13  ;;  %v11669_v38 = vadd.f32 %v4195_v41, %v3132_v21  ;;  %v7874_v55 = vpop.f32.mrf.mxu0  ;;  %8273 = vmatmul.mubr.f32.gmra.mxu0 %v14022_v1  ;;  %v14029_v13 = vld [vmem:[#allocation88_spill] sm:$0xff] }
 0x29d   :  { %v3181_v25 = vadd.f32 %v7874_v55, %v14023_v10  ;;  %v8092_v27 = vpop.f32.mrf.mxu1  ;;  %8491 = vmatmul.mubr.f32.gmra.mxu1 %v14010_v20  ;;  %8275 = vmatprep.mubr.f32.mxu0 %v14024_v39  ;;  %v14030_v20 = vld [vmem:[#allocation140_spill] sm:$0xff] }
 0x29e   :  { %14021 = vst [vmem:[#allocation228_spill] sm:$0xff] %v11669_v38  ;;  %v11675_v19 = vadd.f32 %v8092_v27, %v3153_v53  ;;  %v3173_v51 = vpop.f32.mrf.mxu0  ;;  %8493 = vmatprep.mubr.f32.mxu1 %v14012_v49  ;;  %v14028_v38 = vld [vmem:[#allocation137_spill] sm:$0xff]  ;;  %v14032_v49 = vld [vmem:[#allocation90_spill] sm:$0xff] }
 0x29f   :  { %v3174_v7 = vadd.f32 %v3173_v51, %v14026_v43  ;;  %v4211_v5 = vpop.f32.mrf.mxu1 }
 0x2a0   :  { %14025 = vst [vmem:[#allocation263_spill] sm:$0xff] %v11675_v19  ;;  %v11679_v21 = vadd.f32 %v4211_v5, %v3146_v42  ;;  %v7877_v41 = vpop.f32.mrf.mxu0  ;;  %8276 = vmatmul.mubr.f32.gmra.mxu0 %v14028_v38  ;;  %v14035_v19 = vld [vmem:[#allocation92_spill] sm:$0xff] }
 0x2a1   :  { %v3195_v10 = vadd.f32 %v7877_v41, %v14029_v13  ;;  %v8095_v55 = vpop.f32.mrf.mxu1  ;;  %8494 = vmatmul.mubr.f32.gmra.mxu1 %v14016_v40  ;;  %8278 = vmatprep.mubr.f32.mxu0 %v14030_v20  ;;  %v14036_v40 = vld [vmem:[#allocation143_spill] sm:$0xff] }
 0x2a2   :  { %14027 = vst [vmem:[#allocation229_spill] sm:$0xff] %v11679_v21  ;;  %v11685_v53 = vadd.f32 %v8095_v55, %v3167_v31  ;;  %v3187_v27 = vpop.f32.mrf.mxu0  ;;  %8496 = vmatprep.mubr.f32.mxu1 %v14018_v17  ;;  %v14034_v21 = vld [vmem:[#allocation142_spill] sm:$0xff] }
 0x2a3   :  { %v3188_v51 = vadd.f32 %v3187_v27, %v14032_v49  ;;  %v4227_v43 = vpop.f32.mrf.mxu1  ;;  %v14038_v17 = vld [vmem:[#allocation94_spill] sm:$0xff] }
 0x2a4   :  { %14031 = vst [vmem:[#allocation267_spill] sm:$0xff] %v11685_v53  ;;  %v11689_v42 = vadd.f32 %v4227_v43, %v3160_v52  ;;  %v7880_v5 = vpop.f32.mrf.mxu0  ;;  %8279 = vmatmul.mubr.f32.gmra.mxu0 %v14034_v21  ;;  %v14041_v53 = vld [vmem:[#allocation28_spill] sm:$0xff] }
 0x2a5   :  { %v3209_v13 = vadd.f32 %v7880_v5, %v14035_v19  ;;  %v8098_v41 = vpop.f32.mrf.mxu1  ;;  %8497 = vmatmul.mubr.f32.gmra.mxu1 %v14022_v1  ;;  %8281 = vmatprep.mubr.f32.mxu0 %v14036_v40  ;;  %v14042_v1 = vld [vmem:[#allocation148_spill] sm:$0xff] }
 0x2a6   :  { %14033 = vst [vmem:[#allocation231_spill] sm:$0xff] %v11689_v42  ;;  %v11695_v31 = vadd.f32 %v8098_v41, %v3181_v25  ;;  %v3201_v55 = vpop.f32.mrf.mxu0  ;;  %8499 = vmatprep.mubr.f32.mxu1 %v14024_v39  ;;  %v14040_v42 = vld [vmem:[#allocation145_spill] sm:$0xff]  ;;  %v14044_v39 = vld [vmem:[#allocation98_spill] sm:$0xff] }
 0x2a7   :  { %v3202_v27 = vadd.f32 %v3201_v55, %v14038_v17  ;;  %v4243_v49 = vpop.f32.mrf.mxu1 }
 0x2a8   :  { %14037 = vst [vmem:[#allocation233_spill] sm:$0xff] %v11695_v31  ;;  %v11699_v52 = vadd.f32 %v4243_v49, %v3174_v7  ;;  %v7883_v43 = vpop.f32.mrf.mxu0  ;;  %8282 = vmatmul.mubr.f32.gmra.mxu0 %v14040_v42  ;;  %v14047_v31 = vld [vmem:[#allocation99_spill] sm:$0xff] }
 0x2a9   :  { %v3223_v19 = vadd.f32 %v7883_v43, %v14041_v53  ;;  %v8101_v5 = vpop.f32.mrf.mxu1  ;;  %8500 = vmatmul.mubr.f32.gmra.mxu1 %v14028_v38  ;;  %8284 = vmatprep.mubr.f32.mxu0 %v14042_v1  ;;  %v14048_v38 = vld [vmem:[#allocation152_spill] sm:$0xff] }
 0x2aa   :  { %14039 = vst [vmem:[#allocation272_spill] sm:$0xff] %v11699_v52  ;;  %v11705_v25 = vadd.f32 %v8101_v5, %v3195_v10  ;;  %v3215_v41 = vpop.f32.mrf.mxu0  ;;  %8502 = vmatprep.mubr.f32.mxu1 %v14030_v20  ;;  %v14046_v52 = vld [vmem:[#allocation150_spill] sm:$0xff]  ;;  %v14050_v20 = vld [vmem:[#allocation31_spill] sm:$0xff] }
 0x2ab   :  { %v3216_v55 = vadd.f32 %v3215_v41, %v14044_v39  ;;  %v4259_v17 = vpop.f32.mrf.mxu1 }
 0x2ac   :  { %14043 = vst [vmem:[#allocation235_spill] sm:$0xff] %v11705_v25  ;;  %v11709_v7 = vadd.f32 %v4259_v17, %v3188_v51  ;;  %v7886_v49 = vpop.f32.mrf.mxu0  ;;  %8285 = vmatmul.mubr.f32.gmra.mxu0 %v14046_v52  ;;  %v14053_v25 = vld [vmem:[#allocation102_spill] sm:$0xff] }
 0x2ad   :  { %v3237_v53 = vadd.f32 %v7886_v49, %v14047_v31  ;;  %v8104_v43 = vpop.f32.mrf.mxu1  ;;  %8503 = vmatmul.mubr.f32.gmra.mxu1 %v14034_v21  ;;  %8287 = vmatprep.mubr.f32.mxu0 %v14048_v38  ;;  %v14054_v21 = vld [vmem:[#allocation156_spill] sm:$0xff] }
 0x2ae   :  { %14045 = vst [vmem:[#allocation273_spill] sm:$0xff] %v11709_v7  ;;  %v11715_v10 = vadd.f32 %v8104_v43, %v3209_v13  ;;  %v3229_v5 = vpop.f32.mrf.mxu0  ;;  %8505 = vmatprep.mubr.f32.mxu1 %v14036_v40  ;;  %v14052_v7 = vld [vmem:[#allocation154_spill] sm:$0xff]  ;;  %v14056_v40 = vld [vmem:[#allocation104_spill] sm:$0xff] }
 0x2af   :  { %v3230_v41 = vadd.f32 %v3229_v5, %v14050_v20  ;;  %v4275_v39 = vpop.f32.mrf.mxu1 }
 0x2b0   :  { %14049 = vst [vmem:[#allocation239_spill] sm:$0xff] %v11715_v10  ;;  %v11719_v51 = vadd.f32 %v4275_v39, %v3202_v27  ;;  %v7889_v17 = vpop.f32.mrf.mxu0  ;;  %8288 = vmatmul.mubr.f32.gmra.mxu0 %v14052_v7  ;;  %v14059_v10 = vld [vmem:[#allocation2_spill] sm:$0xff] }
 0x2b1   :  { %v3251_v31 = vadd.f32 %v7889_v17, %v14053_v25  ;;  %v8107_v49 = vpop.f32.mrf.mxu1  ;;  %8506 = vmatmul.mubr.f32.gmra.mxu1 %v14040_v42  ;;  %8290 = vmatprep.mubr.f32.mxu0 %v14054_v21  ;;  %v14060_v42 = vld [vmem:[#allocation159_spill] sm:$0xff] }
 0x2b2   :  { %14051 = vst [vmem:[#allocation241_spill] sm:$0xff] %v11719_v51  ;;  %v11725_v13 = vadd.f32 %v8107_v49, %v3223_v19  ;;  %v3243_v43 = vpop.f32.mrf.mxu0  ;;  %8508 = vmatprep.mubr.f32.mxu1 %v14042_v1  ;;  %v14058_v51 = vld [vmem:[#allocation157_spill] sm:$0xff]  ;;  %v14062_v1 = vld [vmem:[#allocation107_spill] sm:$0xff] }
 0x2b3   :  { %v3244_v5 = vadd.f32 %v3243_v43, %v14056_v40  ;;  %v4291_v20 = vpop.f32.mrf.mxu1 }
 0x2b4   :  { %14055 = vst [vmem:[#allocation246_spill] sm:$0xff] %v11725_v13  ;;  %v11729_v27 = vadd.f32 %v4291_v20, %v3216_v55  ;;  %v7892_v39 = vpop.f32.mrf.mxu0  ;;  %8291 = vmatmul.mubr.f32.gmra.mxu0 %v14058_v51  ;;  %v14065_v13 = vld [vmem:[#allocation109_spill] sm:$0xff] }
 0x2b5   :  { %v3265_v25 = vadd.f32 %v7892_v39, %v14059_v10  ;;  %v8110_v17 = vpop.f32.mrf.mxu1  ;;  %8509 = vmatmul.mubr.f32.gmra.mxu1 %v14046_v52  ;;  %8293 = vmatprep.mubr.f32.mxu0 %v14060_v42  ;;  %v14066_v52 = vld [vmem:[#allocation164_spill] sm:$0xff] }
 0x2b6   :  { %14057 = vst [vmem:[#allocation247_spill] sm:$0xff] %v11729_v27  ;;  %v11735_v19 = vadd.f32 %v8110_v17, %v3237_v53  ;;  %v3257_v49 = vpop.f32.mrf.mxu0  ;;  %8511 = vmatprep.mubr.f32.mxu1 %v14048_v38  ;;  %v14064_v27 = vld [vmem:[#allocation162_spill] sm:$0xff]  ;;  %v14068_v38 = vld [vmem:[#allocation112_spill] sm:$0xff] }
 0x2b7   :  { %v3258_v43 = vadd.f32 %v3257_v49, %v14062_v1  ;;  %v4307_v40 = vpop.f32.mrf.mxu1 }
 0x2b8   :  { %14061 = vst [vmem:[#allocation250_spill] sm:$0xff] %v11735_v19  ;;  %v11739_v55 = vadd.f32 %v4307_v40, %v3230_v41  ;;  %v7895_v20 = vpop.f32.mrf.mxu0  ;;  %8294 = vmatmul.mubr.f32.gmra.mxu0 %v14064_v27  ;;  %v14071_v19 = vld [vmem:[#allocation114_spill] sm:$0xff] }
 0x2b9   :  { %v3279_v10 = vadd.f32 %v7895_v20, %v14065_v13  ;;  %v8113_v39 = vpop.f32.mrf.mxu1  ;;  %8512 = vmatmul.mubr.f32.gmra.mxu1 %v14052_v7  ;;  %8296 = vmatprep.mubr.f32.mxu0 %v14066_v52  ;;  %v14072_v7 = vld [vmem:[#allocation168_spill] sm:$0xff] }
 0x2ba   :  { %14063 = vst [vmem:[#allocation254_spill] sm:$0xff] %v11739_v55  ;;  %v11745_v53 = vadd.f32 %v8113_v39, %v3251_v31  ;;  %v3271_v17 = vpop.f32.mrf.mxu0  ;;  %8514 = vmatprep.mubr.f32.mxu1 %v14054_v21  ;;  %v14070_v55 = vld [vmem:[#allocation166_spill] sm:$0xff]  ;;  %v14074_v21 = vld [vmem:[#allocation115_spill] sm:$0xff] }
 0x2bb   :  { %v3272_v49 = vadd.f32 %v3271_v17, %v14068_v38  ;;  %v4323_v1 = vpop.f32.mrf.mxu1 }
 0x2bc   :  { %14067 = vst [vmem:[#allocation256_spill] sm:$0xff] %v11745_v53  ;;  %v11749_v41 = vadd.f32 %v4323_v1, %v3244_v5  ;;  %v7898_v40 = vpop.f32.mrf.mxu0  ;;  %8297 = vmatmul.mubr.f32.gmra.mxu0 %v14070_v55  ;;  %v14077_v53 = vld [vmem:[#allocation117_spill] sm:$0xff] }
 0x2bd   :  { %v3293_v13 = vadd.f32 %v7898_v40, %v14071_v19  ;;  %v8116_v20 = vpop.f32.mrf.mxu1  ;;  %8515 = vmatmul.mubr.f32.gmra.mxu1 %v14058_v51  ;;  %8299 = vmatprep.mubr.f32.mxu0 %v14072_v7  ;;  %v14078_v51 = vld [vmem:[#allocation172_spill] sm:$0xff] }
 0x2be   :  { %14069 = vst [vmem:[#allocation259_spill] sm:$0xff] %v11749_v41  ;;  %v11755_v31 = vadd.f32 %v8116_v20, %v3265_v25  ;;  %v3285_v39 = vpop.f32.mrf.mxu0  ;;  %8517 = vmatprep.mubr.f32.mxu1 %v14060_v42  ;;  %v14076_v41 = vld [vmem:[#allocation170_spill] sm:$0xff]  ;;  %v14080_v42 = vld [vmem:[#allocation119_spill] sm:$0xff] }
 0x2bf   :  { %v3286_v17 = vadd.f32 %v3285_v39, %v14074_v21  ;;  %v4339_v38 = vpop.f32.mrf.mxu1 }
 0x2c0   :  { %14073 = vst [vmem:[#allocation262_spill] sm:$0xff] %v11755_v31  ;;  %v11759_v5 = vadd.f32 %v4339_v38, %v3258_v43  ;;  %v7901_v1 = vpop.f32.mrf.mxu0  ;;  %8300 = vmatmul.mubr.f32.gmra.mxu0 %v14076_v41  ;;  %v14083_v31 = vld [vmem:[#allocation121_spill] sm:$0xff] }
 0x2c1   :  { %v3307_v19 = vadd.f32 %v7901_v1, %v14077_v53  ;;  %v8119_v40 = vpop.f32.mrf.mxu1  ;;  %8518 = vmatmul.mubr.f32.gmra.mxu1 %v14064_v27  ;;  %8302 = vmatprep.mubr.f32.mxu0 %v14078_v51  ;;  %v14084_v27 = vld [vmem:[#allocation175_spill] sm:$0xff] }
 0x2c2   :  { %14075 = vst [vmem:[#allocation265_spill] sm:$0xff] %v11759_v5  ;;  %v11765_v25 = vadd.f32 %v8119_v40, %v3279_v10  ;;  %v3299_v20 = vpop.f32.mrf.mxu0  ;;  %8520 = vmatprep.mubr.f32.mxu1 %v14066_v52  ;;  %v14082_v5 = vld [vmem:[#allocation174_spill] sm:$0xff]  ;;  %v14086_v52 = vld [vmem:[#allocation123_spill] sm:$0xff] }
 0x2c3   :  { %v3300_v39 = vadd.f32 %v3299_v20, %v14080_v42  ;;  %v4355_v21 = vpop.f32.mrf.mxu1 }
 0x2c4   :  { %14079 = vst [vmem:[#allocation269_spill] sm:$0xff] %v11765_v25  ;;  %v11769_v43 = vadd.f32 %v4355_v21, %v3272_v49  ;;  %v7904_v38 = vpop.f32.mrf.mxu0  ;;  %8303 = vmatmul.mubr.f32.gmra.mxu0 %v14082_v5  ;;  %v14089_v25 = vld [vmem:[#allocation125_spill] sm:$0xff] }
 0x2c5   :  { %v3321_v53 = vadd.f32 %v7904_v38, %v14083_v31  ;;  %v8122_v1 = vpop.f32.mrf.mxu1  ;;  %8521 = vmatmul.mubr.f32.gmra.mxu1 %v14070_v55  ;;  %8305 = vmatprep.mubr.f32.mxu0 %v14084_v27  ;;  %v14090_v55 = vld [vmem:[#allocation180_spill] sm:$0xff] }
 0x2c6   :  { %14081 = vst [vmem:[#allocation270_spill] sm:$0xff] %v11769_v43  ;;  %v11775_v10 = vadd.f32 %v8122_v1, %v3293_v13  ;;  %v3313_v40 = vpop.f32.mrf.mxu0  ;;  %8523 = vmatprep.mubr.f32.mxu1 %v14072_v7  ;;  %v14088_v43 = vld [vmem:[#allocation177_spill] sm:$0xff]  ;;  %v14092_v7 = vld [vmem:[#allocation128_spill] sm:$0xff] }
 0x2c7   :  { %v3314_v20 = vadd.f32 %v3313_v40, %v14086_v52  ;;  %v4371_v42 = vpop.f32.mrf.mxu1 }
 0x2c8   :  { %14085 = vst [vmem:[#allocation14_spill] sm:$0xff] %v11775_v10  ;;  %v11779_v49 = vadd.f32 %v4371_v42, %v3286_v17  ;;  %v7907_v21 = vpop.f32.mrf.mxu0  ;;  %8306 = vmatmul.mubr.f32.gmra.mxu0 %v14088_v43  ;;  %v14095_v10 = vld [vmem:[#allocation130_spill] sm:$0xff] }
 0x2c9   :  { %v3335_v31 = vadd.f32 %v7907_v21, %v14089_v25  ;;  %v8125_v38 = vpop.f32.mrf.mxu1  ;;  %8524 = vmatmul.mubr.f32.gmra.mxu1 %v14076_v41  ;;  %8308 = vmatprep.mubr.f32.mxu0 %v14090_v55  ;;  %v14096_v41 = vld [vmem:[#allocation184_spill] sm:$0xff] }
 0x2ca   :  { %14087 = vst [vmem:[#allocation16_spill] sm:$0xff] %v11779_v49  ;;  %v11785_v13 = vadd.f32 %v8125_v38, %v3307_v19  ;;  %v3327_v1 = vpop.f32.mrf.mxu0  ;;  %8526 = vmatprep.mubr.f32.mxu1 %v14078_v51  ;;  %v14094_v49 = vld [vmem:[#allocation182_spill] sm:$0xff]  ;;  %v14098_v51 = vld [vmem:[#allocation131_spill] sm:$0xff] }
 0x2cb   :  { %v3328_v40 = vadd.f32 %v3327_v1, %v14092_v7  ;;  %v4387_v52 = vpop.f32.mrf.mxu1 }
 0x2cc   :  { %14091 = vst [vmem:[#allocation21_spill] sm:$0xff] %v11785_v13  ;;  %v11789_v17 = vadd.f32 %v4387_v52, %v3300_v39  ;;  %v7910_v42 = vpop.f32.mrf.mxu0  ;;  %8309 = vmatmul.mubr.f32.gmra.mxu0 %v14094_v49  ;;  %v14101_v13 = vld [vmem:[#allocation133_spill] sm:$0xff] }
 0x2cd   :  { %v3349_v25 = vadd.f32 %v7910_v42, %v14095_v10  ;;  %v8128_v21 = vpop.f32.mrf.mxu1  ;;  %8527 = vmatmul.mubr.f32.gmra.mxu1 %v14082_v5  ;;  %8311 = vmatprep.mubr.f32.mxu0 %v14096_v41  ;;  %v14102_v5 = vld [vmem:[#allocation188_spill] sm:$0xff] }
 0x2ce   :  { %14093 = vst [vmem:[#allocation24_spill] sm:$0xff] %v11789_v17  ;;  %v11795_v19 = vadd.f32 %v8128_v21, %v3321_v53  ;;  %v3341_v38 = vpop.f32.mrf.mxu0  ;;  %8529 = vmatprep.mubr.f32.mxu1 %v14084_v27  ;;  %v14100_v17 = vld [vmem:[#allocation186_spill] sm:$0xff]  ;;  %v14104_v27 = vld [vmem:[#allocation135_spill] sm:$0xff] }
 0x2cf   :  { %v3342_v1 = vadd.f32 %v3341_v38, %v14098_v51  ;;  %v4403_v7 = vpop.f32.mrf.mxu1 }
 0x2d0   :  { %14097 = vst [vmem:[#allocation30_spill] sm:$0xff] %v11795_v19  ;;  %v11799_v39 = vadd.f32 %v4403_v7, %v3314_v20  ;;  %v7913_v52 = vpop.f32.mrf.mxu0  ;;  %8312 = vmatmul.mubr.f32.gmra.mxu0 %v14100_v17  ;;  %v14107_v19 = vld [vmem:[#allocation138_spill] sm:$0xff] }
 0x2d1   :  { %v3363_v10 = vadd.f32 %v7913_v52, %v14101_v13  ;;  %v8131_v42 = vpop.f32.mrf.mxu1  ;;  %8530 = vmatmul.mubr.f32.gmra.mxu1 %v14088_v43  ;;  %8314 = vmatprep.mubr.f32.mxu0 %v14102_v5  ;;  %v14108_v43 = vld [vmem:[#allocation191_spill] sm:$0xff] }
 0x2d2   :  { %14099 = vst [vmem:[#allocation32_spill] sm:$0xff] %v11799_v39  ;;  %v11805_v53 = vadd.f32 %v8131_v42, %v3335_v31  ;;  %v3355_v21 = vpop.f32.mrf.mxu0  ;;  %8532 = vmatprep.mubr.f32.mxu1 %v14090_v55  ;;  %v14106_v39 = vld [vmem:[#allocation190_spill] sm:$0xff]  ;;  %v14110_v55 = vld [vmem:[#allocation139_spill] sm:$0xff] }
 0x2d3   :  { %v3356_v38 = vadd.f32 %v3355_v21, %v14104_v27  ;;  %v4419_v51 = vpop.f32.mrf.mxu1 }
 0x2d4   :  { %14103 = vst [vmem:[#allocation34_spill] sm:$0xff] %v11805_v53  ;;  %v11809_v20 = vadd.f32 %v4419_v51, %v3328_v40  ;;  %v7916_v7 = vpop.f32.mrf.mxu0  ;;  %8315 = vmatmul.mubr.f32.gmra.mxu0 %v14106_v39  ;;  %v14113_v53 = vld [vmem:[#allocation141_spill] sm:$0xff] }
 0x2d5   :  { %v3377_v13 = vadd.f32 %v7916_v7, %v14107_v19  ;;  %v8134_v52 = vpop.f32.mrf.mxu1  ;;  %8533 = vmatmul.mubr.f32.gmra.mxu1 %v14094_v49  ;;  %8317 = vmatprep.mubr.f32.mxu0 %v14108_v43  ;;  %v14114_v49 = vld [vmem:[#allocation196_spill] sm:$0xff] }
 0x2d6   :  { %14105 = vst [vmem:[#allocation36_spill] sm:$0xff] %v11809_v20  ;;  %v11815_v31 = vadd.f32 %v8134_v52, %v3349_v25  ;;  %v3369_v42 = vpop.f32.mrf.mxu0  ;;  %8535 = vmatprep.mubr.f32.mxu1 %v14096_v41  ;;  %v14112_v20 = vld [vmem:[#allocation193_spill] sm:$0xff]  ;;  %v14116_v41 = vld [vmem:[#allocation144_spill] sm:$0xff] }
 0x2d7   :  { %v3370_v21 = vadd.f32 %v3369_v42, %v14110_v55  ;;  %v4435_v27 = vpop.f32.mrf.mxu1 }
 0x2d8   :  { %14109 = vst [vmem:[#allocation38_spill] sm:$0xff] %v11815_v31  ;;  %v11819_v40 = vadd.f32 %v4435_v27, %v3342_v1  ;;  %v7919_v51 = vpop.f32.mrf.mxu0  ;;  %8318 = vmatmul.mubr.f32.gmra.mxu0 %v14112_v20  ;;  %v14119_v31 = vld [vmem:[#allocation146_spill] sm:$0xff] }
 0x2d9   :  { %v3391_v19 = vadd.f32 %v7919_v51, %v14113_v53  ;;  %v8137_v7 = vpop.f32.mrf.mxu1  ;;  %8536 = vmatmul.mubr.f32.gmra.mxu1 %v14100_v17  ;;  %8320 = vmatprep.mubr.f32.mxu0 %v14114_v49  ;;  %v14120_v17 = vld [vmem:[#allocation200_spill] sm:$0xff] }
 0x2da   :  { %14111 = vst [vmem:[#allocation40_spill] sm:$0xff] %v11819_v40  ;;  %v11825_v25 = vadd.f32 %v8137_v7, %v3363_v10  ;;  %v3383_v52 = vpop.f32.mrf.mxu0  ;;  %8538 = vmatprep.mubr.f32.mxu1 %v14102_v5  ;;  %v14118_v40 = vld [vmem:[#allocation198_spill] sm:$0xff]  ;;  %v14122_v5 = vld [vmem:[#allocation147_spill] sm:$0xff] }
 0x2db   :  { %v3384_v42 = vadd.f32 %v3383_v52, %v14116_v41  ;;  %v4451_v55 = vpop.f32.mrf.mxu1 }
 0x2dc   :  { %14115 = vst [vmem:[#allocation41_spill] sm:$0xff] %v11825_v25  ;;  %v11829_v1 = vadd.f32 %v4451_v55, %v3356_v38  ;;  %v7922_v27 = vpop.f32.mrf.mxu0  ;;  %8321 = vmatmul.mubr.f32.gmra.mxu0 %v14118_v40  ;;  %v14125_v25 = vld [vmem:[#allocation149_spill] sm:$0xff] }
 0x2dd   :  { %v3405_v53 = vadd.f32 %v7922_v27, %v14119_v31  ;;  %v8140_v51 = vpop.f32.mrf.mxu1  ;;  %8539 = vmatmul.mubr.f32.gmra.mxu1 %v14106_v39  ;;  %8323 = vmatprep.mubr.f32.mxu0 %v14120_v17  ;;  %v14126_v39 = vld [vmem:[#allocation204_spill] sm:$0xff] }
 0x2de   :  { %14117 = vst [vmem:[#allocation42_spill] sm:$0xff] %v11829_v1  ;;  %v11835_v10 = vadd.f32 %v8140_v51, %v3377_v13  ;;  %v3397_v7 = vpop.f32.mrf.mxu0  ;;  %8541 = vmatprep.mubr.f32.mxu1 %v14108_v43  ;;  %v14124_v1 = vld [vmem:[#allocation201_spill] sm:$0xff]  ;;  %v14128_v43 = vld [vmem:[#allocation151_spill] sm:$0xff] }
 0x2df   :  { %v3398_v52 = vadd.f32 %v3397_v7, %v14122_v5  ;;  %v4467_v41 = vpop.f32.mrf.mxu1 }
 0x2e0   :  { %14121 = vst [vmem:[#allocation44_spill] sm:$0xff] %v11835_v10  ;;  %v11839_v38 = vadd.f32 %v4467_v41, %v3370_v21  ;;  %v7925_v55 = vpop.f32.mrf.mxu0  ;;  %8324 = vmatmul.mubr.f32.gmra.mxu0 %v14124_v1 }
 0x2e1   :  { %v3419_v31 = vadd.f32 %v7925_v55, %v14125_v25  ;;  %v8143_v27 = vpop.f32.mrf.mxu1  ;;  %8542 = vmatmul.mubr.f32.gmra.mxu1 %v14112_v20  ;;  %8326 = vmatprep.mubr.f32.mxu0 %v14126_v39  ;;  %v14131_v25 = vld [vmem:[#allocation207_spill] sm:$0xff] }
 0x2e2   :  { %14123 = vst [vmem:[#allocation45_spill] sm:$0xff] %v11839_v38  ;;  %v11845_v13 = vadd.f32 %v8143_v27, %v3391_v19  ;;  %v3411_v51 = vpop.f32.mrf.mxu0  ;;  %8544 = vmatprep.mubr.f32.mxu1 %v14114_v49  ;;  %v14130_v38 = vld [vmem:[#allocation206_spill] sm:$0xff] }
 0x2e3   :  { %v3412_v7 = vadd.f32 %v3411_v51, %v14128_v43  ;;  %v4483_v5 = vpop.f32.mrf.mxu1  ;;  %v14134_v51 = vld [vmem:[#allocation209_spill] sm:$0xff]  ;;  %v14135_v43 = vld [vmem:[#allocation212_spill] sm:$0xff] }
 0x2e4   :  { %14127 = vst [vmem:[#allocation47_spill] sm:$0xff] %v11845_v13  ;;  %v11849_v21 = vadd.f32 %v4483_v5, %v3384_v42  ;;  %v8184_v41 = vpop.f32.mrf.mxu0  ;;  %8327 = vmatmul.mubr.f32.gmra.mxu0 %v14130_v38  ;;  %v14141_v13 = vld [vmem:[#allocation158_spill] sm:$0xff] }
 0x2e5   :  { %v8146_v10 = vpop.f32.mrf.mxu1  ;;  %8545 = vmatmul.mubr.f32.gmra.mxu1 %v14118_v40  ;;  %8329 = vmatprep.mubr.f32.mxu0 %v14131_v25 }
 0x2e6   :  { %14129 = vst [vmem:[#allocation49_spill] sm:$0xff] %v11849_v21  ;;  %v11854_v20 = vadd.f32 %v8146_v10, %v3405_v53  ;;  %v4642_v19 = vpop.f32.mrf.mxu0  ;;  %8547 = vmatprep.mubr.f32.mxu1 %v14120_v17  ;;  %v14137_v10 = vld [vmem:[#allocation153_spill] sm:$0xff]  ;;  %v14140_v21 = vld [vmem:[#allocation155_spill] sm:$0xff] }
 0x2e7   :  { %v4499_v55 = vpop.f32.mrf.mxu1 }
 0x2e8   :  { %14132 = vst [vmem:[#allocation51_spill] sm:$0xff] %v11854_v20  ;;  %v11857_v49 = vadd.f32 %v4499_v55, %v3398_v52  ;;  %v8187_v27 = vpop.f32.mrf.mxu0  ;;  %8330 = vmatmul.mubr.f32.gmra.mxu0 %v14134_v51  ;;  %v4649_v20 = vadd.f32 %v8184_v41, %v14137_v10  ;;  %v14138_v55 = vld [vmem:[#allocation214_spill] sm:$0xff] }
 0x2e9   :  { %v8149_v42 = vpop.f32.mrf.mxu1  ;;  %8548 = vmatmul.mubr.f32.gmra.mxu1 %v14124_v1  ;;  %8332 = vmatprep.mubr.f32.mxu0 %v14135_v43  ;;  %v14139_v1 = vld [vmem:[#allocation216_spill] sm:$0xff]  ;;  %v4661_v41 = vadd.f32 %v8187_v27, %v14141_v13  ;;  %v14142_v10 = vld [vmem:[#allocation218_spill] sm:$0xff] }
 0x2ea   :  { %14133 = vst [vmem:[#allocation52_spill] sm:$0xff] %v11857_v49  ;;  %v11862_v5 = vadd.f32 %v8149_v42, %v3419_v31  ;;  %v4654_v40 = vpop.f32.mrf.mxu0  ;;  %8550 = vmatprep.mubr.f32.mxu1 %v14126_v39  ;;  %v4643_v31 = vadd.f32 %v4642_v19, %v14140_v21  ;;  %v14143_v21 = vld [vmem:[#allocation220_spill] sm:$0xff] }
 0x2eb   :  { %v4515_v53 = vpop.f32.mrf.mxu1 }
 0x2ec   :  { %14136 = vst [vmem:[#allocation17_spill] sm:$0xff] %v11862_v5  ;;  %v11866_v17 = vadd.f32 %v4515_v53, %v3412_v7  ;;  %v8190_v52 = vpop.f32.mrf.mxu0  ;;  %8333 = vmatmul.mubr.f32.gmra.mxu0 %v14138_v55 }
 0x2ed   :  { %v8408_v49 = vpop.f32.mrf.mxu1  ;;  %8551 = vmatmul.mubr.f32.gmra.mxu1 %v14130_v38  ;;  %8335 = vmatprep.mubr.f32.mxu0 %v14139_v1  ;;  %v4673_v27 = vadd.f32 %v8190_v52, %v11229_v63 }
 0x2ee   :  { %v5498_v42 = vadd.f32 %v8408_v49, %v4649_v20  ;;  %v4666_v5 = vpop.f32.mrf.mxu0  ;;  %8553 = vmatprep.mubr.f32.mxu1 %v14131_v25  ;;  %v14144_v20 = vld [vmem:[#allocation160_spill] sm:$0xff] }
 0x2ef   :  { %v5491_v39 = vpop.f32.mrf.mxu1  ;;  %v4655_v19 = vadd.f32 %v4654_v40, %v14144_v20  ;;  %v14145_v40 = vld [vmem:[#allocation221_spill] sm:$0xff] }
 0x2f0   :  { %6259 = vst.msk [vmem:[%s12567_s2 + $0x8] sm:$0xff] %vm6257_vm0, %v5498_v42  ;;  %v5492_v7 = vadd.f32 %v5491_v39, %v4643_v31  ;;  %v8193_v53 = vpop.f32.mrf.mxu0  ;;  %8336 = vmatmul.mubr.f32.gmra.mxu0 %v14142_v10  ;;  %v14146_v39 = vld [vmem:[#allocation224_spill] sm:$0xff] }
 0x2f1   :  { %v8411_v38 = vpop.f32.mrf.mxu1  ;;  %8554 = vmatmul.mubr.f32.gmra.mxu1 %v14134_v51  ;;  %8338 = vmatprep.mubr.f32.mxu0 %v14143_v21 }
 0x2f2   :  { %6258 = vst.msk [vmem:[%s12567_s2] sm:$0xff] %vm6257_vm0, %v5492_v7  ;;  %v5510_v13 = vadd.f32 %v8411_v38, %v4661_v41  ;;  %v4678_v25 = vpop.f32.mrf.mxu0  ;;  %8556 = vmatprep.mubr.f32.mxu1 %v14135_v43  ;;  %v14147_v41 = vld [vmem:[#allocation161_spill] sm:$0xff]  ;;  %v14148_v38 = vld [vmem:[#allocation163_spill] sm:$0xff] }
 0x2f3   :  { %v5503_v49 = vpop.f32.mrf.mxu1  ;;  %v4667_v7 = vadd.f32 %v4666_v5, %v14147_v41  ;;  %v4685_v20 = vadd.f32 %v8193_v53, %v14148_v38  ;;  %v14149_v5 = vld [vmem:[#allocation226_spill] sm:$0xff] }
 0x2f4   :  { %6261 = vst.msk [vmem:[%s12567_s2 + $0x18] sm:$0xff] %vm6257_vm0, %v5510_v13  ;;  %v5504_v51 = vadd.f32 %v5503_v49, %v4655_v19  ;;  %v8196_v31 = vpop.f32.mrf.mxu0  ;;  %8339 = vmatmul.mubr.f32.gmra.mxu0 %v14145_v40  ;;  %v14150_v49 = vld [vmem:[#allocation227_spill] sm:$0xff] }
 0x2f5   :  { %v8414_v42 = vpop.f32.mrf.mxu1  ;;  %8557 = vmatmul.mubr.f32.gmra.mxu1 %v14138_v55  ;;  %8341 = vmatprep.mubr.f32.mxu0 %v14146_v39  ;;  %v4697_v41 = vadd.f32 %v8196_v31, %v11253_v32 }
 0x2f6   :  { %6260 = vst.msk [vmem:[%s12567_s2 + $0x10] sm:$0xff] %vm6257_vm0, %v5504_v51  ;;  %v5522_v63 = vadd.f32 %v8414_v42, %v4673_v27  ;;  %v4690_v43 = vpop.f32.mrf.mxu0  ;;  %8559 = vmatprep.mubr.f32.mxu1 %v14139_v1  ;;  %v14151_v27 = vld [vmem:[#allocation165_spill] sm:$0xff] }
 0x2f7   :  { %v5515_v52 = vpop.f32.mrf.mxu1  ;;  %v4679_v51 = vadd.f32 %v4678_v25, %v14151_v27  ;;  %v14152_v25 = vld [vmem:[#allocation230_spill] sm:$0xff]  ;;  %v4691_v38 = vadd.f32 %v4690_v43, %v11258_v0 }
 0x2f8   :  { %6263 = vst.msk [vmem:[%s12567_s2 + $0x28] sm:$0xff] %vm6257_vm0, %v5522_v63  ;;  %v5516_v55 = vadd.f32 %v5515_v52, %v4667_v7  ;;  %v8199_v19 = vpop.f32.mrf.mxu0  ;;  %8342 = vmatmul.mubr.f32.gmra.mxu0 %v14149_v5  ;;  %v14153_v52 = vld [vmem:[#allocation232_spill] sm:$0xff]  ;;  %v14154_v0 = vld [vmem:[#allocation234_spill] sm:$0xff] }
 0x2f9   :  { %v8417_v13 = vpop.f32.mrf.mxu1  ;;  %8560 = vmatmul.mubr.f32.gmra.mxu1 %v14142_v10  ;;  %8344 = vmatprep.mubr.f32.mxu0 %v14150_v49 }
 0x2fa   :  { %6262 = vst.msk [vmem:[%s12567_s2 + $0x20] sm:$0xff] %vm6257_vm0, %v5516_v55  ;;  %v5534_v1 = vadd.f32 %v8417_v13, %v4685_v20  ;;  %v4702_v53 = vpop.f32.mrf.mxu0  ;;  %8562 = vmatprep.mubr.f32.mxu1 %v14143_v21  ;;  %v4709_v20 = vadd.f32 %v8199_v19, %v11265_v6  ;;  %v14155_v13 = vld [vmem:[#allocation236_spill] sm:$0xff] }
 0x2fb   :  { %v5527_v42 = vpop.f32.mrf.mxu1  ;;  %v4703_v27 = vadd.f32 %v4702_v53, %v11270_v24  ;;  %v14156_v24 = vld [vmem:[#allocation240_spill] sm:$0xff] }
 0x2fc   :  { %6265 = vst.msk [vmem:[%s12567_s2 + $0x38] sm:$0xff] %vm6257_vm0, %v5534_v1  ;;  %v5528_v10 = vadd.f32 %v5527_v42, %v4679_v51  ;;  %v8202_v7 = vpop.f32.mrf.mxu0  ;;  %8345 = vmatmul.mubr.f32.gmra.mxu0 %v14152_v25  ;;  %v14157_v42 = vld [vmem:[#allocation242_spill] sm:$0xff] }
 0x2fd   :  { %v8420_v63 = vpop.f32.mrf.mxu1  ;;  %8563 = vmatmul.mubr.f32.gmra.mxu1 %v14145_v40  ;;  %8347 = vmatprep.mubr.f32.mxu0 %v14153_v52  ;;  %v4721_v51 = vadd.f32 %v8202_v7, %v11277_v29 }
 0x2fe   :  { %6264 = vst.msk [vmem:[%s12567_s2 + $0x30] sm:$0xff] %vm6257_vm0, %v5528_v10  ;;  %v5546_v32 = vadd.f32 %v8420_v63, %v4697_v41  ;;  %v4714_v21 = vpop.f32.mrf.mxu0  ;;  %8565 = vmatprep.mubr.f32.mxu1 %v14146_v39 }
 0x2ff   :  { %v5539_v31 = vpop.f32.mrf.mxu1  ;;  %v4715_v41 = vadd.f32 %v4714_v21, %v11282_v34  ;;  %v14158_v34 = vld [vmem:[#allocation244_spill] sm:$0xff] }
 0x300   :  { %6267 = vst.msk [vmem:[%s12567_s2 + $0x48] sm:$0xff] %vm6257_vm0, %v5546_v32  ;;  %v5540_v40 = vadd.f32 %v5539_v31, %v4691_v38  ;;  %v8205_v55 = vpop.f32.mrf.mxu0  ;;  %8348 = vmatmul.mubr.f32.gmra.mxu0 %v14154_v0  ;;  %v14159_v32 = vld [vmem:[#allocation248_spill] sm:$0xff] }
 0x301   :  { %v8423_v43 = vpop.f32.mrf.mxu1  ;;  %8566 = vmatmul.mubr.f32.gmra.mxu1 %v14149_v5  ;;  %8350 = vmatprep.mubr.f32.mxu0 %v14155_v13  ;;  %v4733_v7 = vadd.f32 %v8205_v55, %v11289_v61 }
 0x302   :  { %6266 = vst.msk [vmem:[%s12567_s2 + $0x40] sm:$0xff] %vm6257_vm0, %v5540_v40  ;;  %v5558_v6 = vadd.f32 %v8423_v43, %v4709_v20  ;;  %v4726_v39 = vpop.f32.mrf.mxu0  ;;  %8568 = vmatprep.mubr.f32.mxu1 %v14150_v49  ;;  %v14161_v43 = vld [vmem:[#allocation253_spill] sm:$0xff] }
 0x303   :  { %v5551_v19 = vpop.f32.mrf.mxu1  ;;  %v4727_v21 = vadd.f32 %v4726_v39, %v11294_v26  ;;  %v14160_v26 = vld [vmem:[#allocation251_spill] sm:$0xff] }
 0x304   :  { %6269 = vst.msk [vmem:[%s12567_s2 + $0x58] sm:$0xff] %vm6257_vm0, %v5558_v6  ;;  %v5552_v5 = vadd.f32 %v5551_v19, %v4703_v27  ;;  %v8208_v1 = vpop.f32.mrf.mxu0  ;;  %8351 = vmatmul.mubr.f32.gmra.mxu0 %v14156_v24 }
 0x305   :  { %v8426_v53 = vpop.f32.mrf.mxu1  ;;  %8569 = vmatmul.mubr.f32.gmra.mxu1 %v14152_v25  ;;  %8353 = vmatprep.mubr.f32.mxu0 %v14157_v42  ;;  %v4745_v20 = vadd.f32 %v8208_v1, %v11301_v23  ;;  %v14163_v1 = vld [vmem:[#allocation260_spill] sm:$0xff] }
 0x306   :  { %6268 = vst.msk [vmem:[%s12567_s2 + $0x50] sm:$0xff] %vm6257_vm0, %v5552_v5  ;;  %v5570_v29 = vadd.f32 %v8426_v53, %v4721_v51  ;;  %v4738_v49 = vpop.f32.mrf.mxu0  ;;  %8571 = vmatprep.mubr.f32.mxu1 %v14153_v52 }
 0x307   :  { %v5563_v10 = vpop.f32.mrf.mxu1  ;;  %v4739_v27 = vadd.f32 %v4738_v49, %v11306_v16  ;;  %v14162_v16 = vld [vmem:[#allocation257_spill] sm:$0xff] }
 0x308   :  { %6271 = vst.msk [vmem:[%s12567_s2 + $0x68] sm:$0xff] %vm6257_vm0, %v5570_v29  ;;  %v5564_v25 = vadd.f32 %v5563_v10, %v4715_v41  ;;  %v8211_v63 = vpop.f32.mrf.mxu0  ;;  %8354 = vmatmul.mubr.f32.gmra.mxu0 %v14158_v34 }
 0x309   :  { %v8429_v38 = vpop.f32.mrf.mxu1  ;;  %8572 = vmatmul.mubr.f32.gmra.mxu1 %v14154_v0  ;;  %8356 = vmatprep.mubr.f32.mxu0 %v14159_v32  ;;  %v4757_v39 = vadd.f32 %v8211_v63, %v11313_v37 }
 0x30a   :  { %6270 = vst.msk [vmem:[%s12567_s2 + $0x60] sm:$0xff] %vm6257_vm0, %v5564_v25  ;;  %v5582_v61 = vadd.f32 %v8429_v38, %v4733_v7  ;;  %v4750_v52 = vpop.f32.mrf.mxu0  ;;  %8574 = vmatprep.mubr.f32.mxu1 %v14155_v13  ;;  %v14165_v7 = vld [vmem:[#allocation266_spill] sm:$0xff] }
 0x30b   :  { %v5575_v31 = vpop.f32.mrf.mxu1 }
 0x30c   :  { %6273 = vst.msk [vmem:[%s12567_s2 + $0x78] sm:$0xff] %vm6257_vm0, %v5582_v61  ;;  %v5576_v40 = vadd.f32 %v5575_v31, %v4727_v21  ;;  %v8214_v55 = vpop.f32.mrf.mxu0  ;;  %8357 = vmatmul.mubr.f32.gmra.mxu0 %v14160_v26 }
 0x30d   :  { %v8432_v0 = vpop.f32.mrf.mxu1  ;;  %8575 = vmatmul.mubr.f32.gmra.mxu1 %v14156_v24  ;;  %8359 = vmatprep.mubr.f32.mxu0 %v14161_v43  ;;  %v4751_v24 = vadd.f32 %v4750_v52, %v11318_v54  ;;  %v4769_v41 = vadd.f32 %v8214_v55, %v11325_v60  ;;  %v14164_v54 = vld [vmem:[#allocation264_spill] sm:$0xff]  ;;  %v14167_v52 = vld [vmem:[#allocation271_spill] sm:$0xff] }
 0x30e   :  { %6272 = vst.msk [vmem:[%s12567_s2 + $0x70] sm:$0xff] %vm6257_vm0, %v5576_v40  ;;  %v5594_v23 = vadd.f32 %v8432_v0, %v4745_v20  ;;  %v4762_v13 = vpop.f32.mrf.mxu0  ;;  %8577 = vmatprep.mubr.f32.mxu1 %v14157_v42 }
 0x30f   :  { %v5587_v6 = vpop.f32.mrf.mxu1  ;;  %v4763_v25 = vadd.f32 %v4762_v13, %v11330_v56  ;;  %v14166_v56 = vld [vmem:[#allocation268_spill] sm:$0xff] }
 0x310   :  { %6275 = vst.msk [vmem:[%s12567_s2 + $0x88] sm:$0xff] %vm6257_vm0, %v5594_v23  ;;  %v5588_v19 = vadd.f32 %v5587_v6, %v4739_v27  ;;  %v8217_v51 = vpop.f32.mrf.mxu0  ;;  %8360 = vmatmul.mubr.f32.gmra.mxu0 %v14162_v16  ;;  %v14169_v27 = vld [vmem:[#allocation275_spill] sm:$0xff] }
 0x311   :  { %v8435_v5 = vpop.f32.mrf.mxu1  ;;  %8578 = vmatmul.mubr.f32.gmra.mxu1 %v14158_v34  ;;  %8362 = vmatprep.mubr.f32.mxu0 %v14163_v1  ;;  %v4781_v38 = vadd.f32 %v8217_v51, %v11337_v28 }
 0x312   :  { %6274 = vst.msk [vmem:[%s12567_s2 + $0x80] sm:$0xff] %vm6257_vm0, %v5588_v19  ;;  %v5606_v37 = vadd.f32 %v8435_v5, %v4757_v39  ;;  %v4774_v53 = vpop.f32.mrf.mxu0  ;;  %8580 = vmatprep.mubr.f32.mxu1 %v14159_v32 }
 0x313   :  { %v5599_v42 = vpop.f32.mrf.mxu1  ;;  %v4775_v31 = vadd.f32 %v4774_v53, %v11342_v11  ;;  %v14168_v11 = vld [vmem:[#allocation274_spill] sm:$0xff] }
 0x314   :  { %6277 = vst.msk [vmem:[%s12567_s2 + $0x98] sm:$0xff] %vm6257_vm0, %v5606_v37  ;;  %v5600_v29 = vadd.f32 %v5599_v42, %v4751_v24  ;;  %v8220_v49 = vpop.f32.mrf.mxu0  ;;  %8363 = vmatmul.mubr.f32.gmra.mxu0 %v14164_v54 }
 0x315   :  { %v8438_v10 = vpop.f32.mrf.mxu1  ;;  %8581 = vmatmul.mubr.f32.gmra.mxu1 %v14160_v26  ;;  %8365 = vmatprep.mubr.f32.mxu0 %v14165_v7  ;;  %v4793_v55 = vadd.f32 %v8220_v49, %v11349_v59 }
 0x316   :  { %6276 = vst.msk [vmem:[%s12567_s2 + $0x90] sm:$0xff] %vm6257_vm0, %v5600_v29  ;;  %v5618_v60 = vadd.f32 %v8438_v10, %v4769_v41  ;;  %v4786_v63 = vpop.f32.mrf.mxu0  ;;  %8583 = vmatprep.mubr.f32.mxu1 %v14161_v43 }
 0x317   :  { %v5611_v34 = vpop.f32.mrf.mxu1  ;;  %v4787_v23 = vadd.f32 %v4786_v63, %v11354_v50  ;;  %v14170_v50 = vld [vmem:[#allocation276_spill] sm:$0xff] }
 0x318   :  { %6279 = vst.msk [vmem:[%s12567_s2 + $0xa8] sm:$0xff] %vm6257_vm0, %v5618_v60  ;;  %v5612_v32 = vadd.f32 %v5611_v34, %v4763_v25  ;;  %v8223_v21 = vpop.f32.mrf.mxu0  ;;  %8366 = vmatmul.mubr.f32.gmra.mxu0 %v14166_v56 }
 0x319   :  { %v8441_v61 = vpop.f32.mrf.mxu1  ;;  %8584 = vmatmul.mubr.f32.gmra.mxu1 %v14162_v16  ;;  %8368 = vmatprep.mubr.f32.mxu0 %v14167_v52  ;;  %v4805_v39 = vadd.f32 %v8223_v21, %v11361_v45 }
 0x31a   :  { %6278 = vst.msk [vmem:[%s12567_s2 + $0xa0] sm:$0xff] %vm6257_vm0, %v5612_v32  ;;  %v5630_v28 = vadd.f32 %v8441_v61, %v4781_v38  ;;  %v4798_v20 = vpop.f32.mrf.mxu0  ;;  %8586 = vmatprep.mubr.f32.mxu1 %v14163_v1 }
 0x31b   :  { %v5623_v40 = vpop.f32.mrf.mxu1  ;;  %v4799_v5 = vadd.f32 %v4798_v20, %v11366_v2 }
 0x31c   :  { %6281 = vst.msk [vmem:[%s12567_s2 + $0xb8] sm:$0xff] %vm6257_vm0, %v5630_v28  ;;  %v5624_v26 = vadd.f32 %v5623_v40, %v4775_v31  ;;  %v8226_v0 = vpop.f32.mrf.mxu0  ;;  %8369 = vmatmul.mubr.f32.gmra.mxu0 %v14168_v11 }
 0x31d   :  { %v8444_v43 = vpop.f32.mrf.mxu1  ;;  %8587 = vmatmul.mubr.f32.gmra.mxu1 %v14164_v54  ;;  %8371 = vmatprep.mubr.f32.mxu0 %v14169_v27  ;;  %v4817_v37 = vadd.f32 %v8226_v0, %v11373_v18 }
 0x31e   :  { %6280 = vst.msk [vmem:[%s12567_s2 + $0xb0] sm:$0xff] %vm6257_vm0, %v5624_v26  ;;  %v5642_v59 = vadd.f32 %v8444_v43, %v4793_v55  ;;  %v4810_v13 = vpop.f32.mrf.mxu0  ;;  %8589 = vmatprep.mubr.f32.mxu1 %v14165_v7 }
 0x31f   :  { %v5635_v6 = vpop.f32.mrf.mxu1  ;;  %v4811_v41 = vadd.f32 %v4810_v13, %v11378_v15 }
 0x320   :  { %6283 = vst.msk [vmem:[%s12567_s2 + $0xc8] sm:$0xff] %vm6257_vm0, %v5642_v59  ;;  %v5636_v19 = vadd.f32 %v5635_v6, %v4787_v23  ;;  %v8229_v51 = vpop.f32.mrf.mxu0  ;;  %8372 = vmatmul.mubr.f32.gmra.mxu0 %v14170_v50 }
 0x321   :  { %v8447_v16 = vpop.f32.mrf.mxu1  ;;  %8590 = vmatmul.mubr.f32.gmra.mxu1 %v14166_v56  ;;  %v4829_v54 = vadd.f32 %v8229_v51, %v11385_v9 }
 0x322   :  { %6282 = vst.msk [vmem:[%s12567_s2 + $0xc0] sm:$0xff] %vm6257_vm0, %v5636_v19  ;;  %v5654_v45 = vadd.f32 %v8447_v16, %v4805_v39  ;;  %v4822_v1 = vpop.f32.mrf.mxu0  ;;  %8592 = vmatprep.mubr.f32.mxu1 %v14167_v52 }
 0x323   :  { %v5647_v24 = vpop.f32.mrf.mxu1  ;;  %v4823_v25 = vadd.f32 %v4822_v1, %v11389_v33 }
 0x324   :  { %6285 = vst.msk [vmem:[%s12567_s2 + $0xd8] sm:$0xff] %vm6257_vm0, %v5654_v45  ;;  %v5648_v53 = vadd.f32 %v5647_v24, %v4799_v5  ;;  %v8232_v42 = vpop.f32.mrf.mxu0 }
 0x325   :  { %v8450_v2 = vpop.f32.mrf.mxu1  ;;  %8593 = vmatmul.mubr.f32.gmra.mxu1 %v14168_v11  ;;  %v4841_v34 = vadd.f32 %v8232_v42, %v11395_v46 }
 0x326   :  { %6284 = vst.msk [vmem:[%s12567_s2 + $0xd0] sm:$0xff] %vm6257_vm0, %v5648_v53  ;;  %v5666_v29 = vadd.f32 %v8450_v2, %v4817_v37  ;;  %v4834_v49 = vpop.f32.mrf.mxu0  ;;  %8595 = vmatprep.mubr.f32.mxu1 %v14169_v27 }
 0x327   :  { %v5659_v18 = vpop.f32.mrf.mxu1  ;;  %v4835_v33 = vadd.f32 %v4834_v49, %v11399_v12 }
 0x328   :  { %6287 = vst.msk [vmem:[%s12567_s2 + $0xe8] sm:$0xff] %vm6257_vm0, %v5666_v29  ;;  %v5660_v10 = vadd.f32 %v5659_v18, %v4811_v41  ;;  %v8235_v7 = vpop.f32.mrf.mxu0 }
 0x329   :  { %v8453_v15 = vpop.f32.mrf.mxu1  ;;  %8596 = vmatmul.mubr.f32.gmra.mxu1 %v14170_v50  ;;  %v4853_v46 = vadd.f32 %v8235_v7, %v11405_v44 }
 0x32a   :  { %6286 = vst.msk [vmem:[%s12567_s2 + $0xe0] sm:$0xff] %vm6257_vm0, %v5660_v10  ;;  %v5678_v60 = vadd.f32 %v8453_v15, %v4829_v54  ;;  %v4846_v63 = vpop.f32.mrf.mxu0 }
 0x32b   :  { %v5671_v9 = vpop.f32.mrf.mxu1  ;;  %v4847_v12 = vadd.f32 %v4846_v63, %v11409_v8 }
 0x32c   :  { %6289 = vst.msk [vmem:[%s12567_s2 + $0xf8] sm:$0xff] %vm6257_vm0, %v5678_v60  ;;  %v5672_v38 = vadd.f32 %v5671_v9, %v4823_v25  ;;  %v8238_v32 = vpop.f32.mrf.mxu0 }
 0x32d   :  { %v8456_v21 = vpop.f32.mrf.mxu1  ;;  %v4865_v44 = vadd.f32 %v8238_v32, %v11415_v48 }
 0x32e   :  { %6288 = vst.msk [vmem:[%s12567_s2 + $0xf0] sm:$0xff] %vm6257_vm0, %v5672_v38  ;;  %v5690_v56 = vadd.f32 %v8456_v21, %v4841_v34  ;;  %v4858_v61 = vpop.f32.mrf.mxu0  ;;  %v14171_v21 = vld [vmem:[#allocation167_spill] sm:$0xff] }
 0x32f   :  { %v5683_v52 = vpop.f32.mrf.mxu1  ;;  %v4859_v8 = vadd.f32 %v4858_v61, %v11419_v30 }
 0x330   :  { %6291 = vst.msk [vmem:[%s12567_s2 + $0x108] sm:$0xff] %vm6257_vm0, %v5690_v56  ;;  %v5684_v31 = vadd.f32 %v5683_v52, %v4835_v33  ;;  %v8241_v28 = vpop.f32.mrf.mxu0  ;;  %v14172_v52 = vld [vmem:[#allocation169_spill] sm:$0xff] }
 0x331   :  { %v8459_v20 = vpop.f32.mrf.mxu1  ;;  %v4877_v48 = vadd.f32 %v8241_v28, %v11425_v3 }
 0x332   :  { %6290 = vst.msk [vmem:[%s12567_s2 + $0x100] sm:$0xff] %vm6257_vm0, %v5684_v31  ;;  %v5702_v40 = vadd.f32 %v8459_v20, %v4853_v46  ;;  %v4870_v55 = vpop.f32.mrf.mxu0  ;;  %v14173_v20 = vld [vmem:[#allocation171_spill] sm:$0xff] }
 0x333   :  { %v5695_v26 = vpop.f32.mrf.mxu1  ;;  %v4871_v30 = vadd.f32 %v4870_v55, %v11429_v4 }
 0x334   :  { %6293 = vst.msk [vmem:[%s12567_s2 + $0x118] sm:$0xff] %vm6257_vm0, %v5702_v40  ;;  %v5696_v0 = vadd.f32 %v5695_v26, %v4847_v12  ;;  %v8244_v11 = vpop.f32.mrf.mxu0 }
 0x335   :  { %v8462_v43 = vpop.f32.mrf.mxu1  ;;  %v4889_v3 = vadd.f32 %v8244_v11, %v11435_v36 }
 0x336   :  { %6292 = vst.msk [vmem:[%s12567_s2 + $0x110] sm:$0xff] %vm6257_vm0, %v5696_v0  ;;  %v5714_v27 = vadd.f32 %v8462_v43, %v4865_v44  ;;  %v4882_v23 = vpop.f32.mrf.mxu0  ;;  %v14174_v44 = vld [vmem:[#allocation173_spill] sm:$0xff] }
 0x337   :  { %v5707_v59 = vpop.f32.mrf.mxu1  ;;  %v4883_v4 = vadd.f32 %v4882_v23, %v11439_v58 }
 0x338   :  { %6295 = vst.msk [vmem:[%s12567_s2 + $0x128] sm:$0xff] %vm6257_vm0, %v5714_v27  ;;  %v5708_v13 = vadd.f32 %v5707_v59, %v4859_v8  ;;  %v8247_v6 = vpop.f32.mrf.mxu0  ;;  %v14175_v27 = vld [vmem:[#allocation176_spill] sm:$0xff] }
 0x339   :  { %v8465_v39 = vpop.f32.mrf.mxu1  ;;  %v4901_v36 = vadd.f32 %v8247_v6, %v11445_v35  ;;  %v14176_v6 = vld [vmem:[#allocation178_spill] sm:$0xff] }
 0x33a   :  { %6294 = vst.msk [vmem:[%s12567_s2 + $0x120] sm:$0xff] %vm6257_vm0, %v5708_v13  ;;  %v5726_v19 = vadd.f32 %v8465_v39, %v4877_v48  ;;  %v4894_v51 = vpop.f32.mrf.mxu0 }
 0x33b   :  { %v5719_v50 = vpop.f32.mrf.mxu1  ;;  %v4895_v58 = vadd.f32 %v4894_v51, %v11449_v57 }
 0x33c   :  { %6297 = vst.msk [vmem:[%s12567_s2 + $0x138] sm:$0xff] %vm6257_vm0, %v5726_v19  ;;  %v5720_v16 = vadd.f32 %v5719_v50, %v4871_v30  ;;  %v8250_v5 = vpop.f32.mrf.mxu0  ;;  %v14177_v50 = vld [vmem:[#allocation179_spill] sm:$0xff] }
 0x33d   :  { %v8468_v45 = vpop.f32.mrf.mxu1  ;;  %v4913_v35 = vadd.f32 %v8250_v5, %v11455_v14 }
 0x33e   :  { %6296 = vst.msk [vmem:[%s12567_s2 + $0x130] sm:$0xff] %vm6257_vm0, %v5720_v16  ;;  %v5738_v1 = vadd.f32 %v8468_v45, %v4889_v3  ;;  %v4906_v24 = vpop.f32.mrf.mxu0 }
 0x33f   :  { %v5731_v37 = vpop.f32.mrf.mxu1  ;;  %v4907_v57 = vadd.f32 %v4906_v24, %v11459_v62 }
 0x340   :  { %6299 = vst.msk [vmem:[%s12567_s2 + $0x148] sm:$0xff] %vm6257_vm0, %v5738_v1  ;;  %v5732_v53 = vadd.f32 %v5731_v37, %v4883_v4  ;;  %v8253_v42 = vpop.f32.mrf.mxu0  ;;  %v14178_v4 = vld [vmem:[#allocation181_spill] sm:$0xff] }
 0x341   :  { %v8471_v2 = vpop.f32.mrf.mxu1  ;;  %v4925_v14 = vadd.f32 %v8253_v42, %v11465_v22 }
 0x342   :  { %6298 = vst.msk [vmem:[%s12567_s2 + $0x140] sm:$0xff] %vm6257_vm0, %v5732_v53  ;;  %v5750_v41 = vadd.f32 %v8471_v2, %v4901_v36  ;;  %v4918_v29 = vpop.f32.mrf.mxu0  ;;  %v14179_v53 = vld [vmem:[#allocation183_spill] sm:$0xff] }
 0x343   :  { %v5743_v49 = vpop.f32.mrf.mxu1  ;;  %v4919_v62 = vadd.f32 %v4918_v29, %v11469_v47  ;;  %v14180_v29 = vld [vmem:[#allocation185_spill] sm:$0xff] }
 0x344   :  { %6301 = vst.msk [vmem:[%s12567_s2 + $0x158] sm:$0xff] %vm6257_vm0, %v5750_v41  ;;  %v5744_v18 = vadd.f32 %v5743_v49, %v4895_v58  ;;  %v8256_v54 = vpop.f32.mrf.mxu0 }
 0x345   :  { %v8474_v10 = vpop.f32.mrf.mxu1  ;;  %v4937_v22 = vadd.f32 %v8256_v54, %v14171_v21 }
 0x346   :  { %6300 = vst.msk [vmem:[%s12567_s2 + $0x150] sm:$0xff] %vm6257_vm0, %v5744_v18  ;;  %v5762_v7 = vadd.f32 %v8474_v10, %v4913_v35  ;;  %v4930_v15 = vpop.f32.mrf.mxu0  ;;  %v14181_v10 = vld [vmem:[#allocation187_spill] sm:$0xff] }
 0x347   :  { %v5755_v25 = vpop.f32.mrf.mxu1  ;;  %v4931_v47 = vadd.f32 %v4930_v15, %v14172_v52 }
 0x348   :  { %6303 = vst.msk [vmem:[%s12567_s2 + $0x168] sm:$0xff] %vm6257_vm0, %v5762_v7  ;;  %v5756_v60 = vadd.f32 %v5755_v25, %v4907_v57  ;;  %v8259_v63 = vpop.f32.mrf.mxu0 }
 0x349   :  { %v8477_v9 = vpop.f32.mrf.mxu1  ;;  %v4949_v12 = vadd.f32 %v8259_v63, %v14173_v20 }
 0x34a   :  { %6302 = vst.msk [vmem:[%s12567_s2 + $0x160] sm:$0xff] %vm6257_vm0, %v5756_v60  ;;  %v5774_v34 = vadd.f32 %v8477_v9, %v4925_v14  ;;  %v4942_v38 = vpop.f32.mrf.mxu0  ;;  %v14182_v14 = vld [vmem:[#allocation189_spill] sm:$0xff] }
 0x34b   :  { %v5767_v32 = vpop.f32.mrf.mxu1  ;;  %v4943_v0 = vadd.f32 %v4942_v38, %v14174_v44 }
 0x34c   :  { %6305 = vst.msk [vmem:[%s12567_s2 + $0x178] sm:$0xff] %vm6257_vm0, %v5774_v34  ;;  %v5768_v33 = vadd.f32 %v5767_v32, %v4919_v62  ;;  %v8262_v56 = vpop.f32.mrf.mxu0  ;;  %v14183_v34 = vld [vmem:[#allocation192_spill] sm:$0xff] }
 0x34d   :  { %v8480_v61 = vpop.f32.mrf.mxu1  ;;  %v4961_v23 = vadd.f32 %v8262_v56, %v14175_v27 }
 0x34e   :  { %6304 = vst.msk [vmem:[%s12567_s2 + $0x170] sm:$0xff] %vm6257_vm0, %v5768_v33  ;;  %v5786_v46 = vadd.f32 %v8480_v61, %v4937_v22  ;;  %v4954_v31 = vpop.f32.mrf.mxu0  ;;  %v14184_v33 = vld [vmem:[#allocation194_spill] sm:$0xff] }
 0x34f   :  { %v5779_v28 = vpop.f32.mrf.mxu1  ;;  %v4955_v39 = vadd.f32 %v4954_v31, %v14176_v6 }
 0x350   :  { %6307 = vst.msk [vmem:[%s12567_s2 + $0x188] sm:$0xff] %vm6257_vm0, %v5786_v46  ;;  %v5780_v40 = vadd.f32 %v5779_v28, %v4931_v47  ;;  %v8265_v55 = vpop.f32.mrf.mxu0  ;;  %v14185_v46 = vld [vmem:[#allocation195_spill] sm:$0xff] }
 0x351   :  { %v8483_v26 = vpop.f32.mrf.mxu1  ;;  %v4973_v3 = vadd.f32 %v8265_v55, %v14177_v50 }
 0x352   :  { %6306 = vst.msk [vmem:[%s12567_s2 + $0x180] sm:$0xff] %vm6257_vm0, %v5780_v40  ;;  %v5798_v11 = vadd.f32 %v8483_v26, %v4949_v12  ;;  %v4966_v43 = vpop.f32.mrf.mxu0  ;;  %v14186_v40 = vld [vmem:[#allocation197_spill] sm:$0xff] }
 0x353   :  { %v5791_v8 = vpop.f32.mrf.mxu1  ;;  %v4967_v1 = vadd.f32 %v4966_v43, %v14178_v4 }
 0x354   :  { %6309 = vst.msk [vmem:[%s12567_s2 + $0x198] sm:$0xff] %vm6257_vm0, %v5798_v11  ;;  %v5792_v59 = vadd.f32 %v5791_v8, %v4943_v0  ;;  %v8268_v48 = vpop.f32.mrf.mxu0  ;;  %v14187_v11 = vld [vmem:[#allocation199_spill] sm:$0xff] }
 0x355   :  { %v8486_v13 = vpop.f32.mrf.mxu1  ;;  %v4985_v42 = vadd.f32 %v8268_v48, %v14179_v53 }
 0x356   :  { %6308 = vst.msk [vmem:[%s12567_s2 + $0x190] sm:$0xff] %vm6257_vm0, %v5792_v59  ;;  %v5810_v30 = vadd.f32 %v8486_v13, %v4961_v23  ;;  %v4978_v19 = vpop.f32.mrf.mxu0  ;;  %v14188_v59 = vld [vmem:[#allocation202_spill] sm:$0xff] }
 0x357   :  { %v5803_v51 = vpop.f32.mrf.mxu1  ;;  %v4979_v49 = vadd.f32 %v4978_v19, %v14180_v29 }
 0x358   :  { %6311 = vst.msk [vmem:[%s12567_s2 + $0x1a8] sm:$0xff] %vm6257_vm0, %v5810_v30  ;;  %v5804_v16 = vadd.f32 %v5803_v51, %v4955_v39  ;;  %v8271_v5 = vpop.f32.mrf.mxu0  ;;  %v14189_v30 = vld [vmem:[#allocation203_spill] sm:$0xff] }
 0x359   :  { %v8489_v45 = vpop.f32.mrf.mxu1  ;;  %v4997_v57 = vadd.f32 %v8271_v5, %v14181_v10 }
 0x35a   :  { %6310 = vst.msk [vmem:[%s12567_s2 + $0x1a0] sm:$0xff] %vm6257_vm0, %v5804_v16  ;;  %v5822_v24 = vadd.f32 %v8489_v45, %v4973_v3  ;;  %v4990_v37 = vpop.f32.mrf.mxu0  ;;  %v14190_v16 = vld [vmem:[#allocation205_spill] sm:$0xff] }
 0x35b   :  { %v5815_v36 = vpop.f32.mrf.mxu1  ;;  %v4991_v60 = vadd.f32 %v4990_v37, %v14182_v14 }
 0x35c   :  { %6313 = vst.msk [vmem:[%s12567_s2 + $0x1b8] sm:$0xff] %vm6257_vm0, %v5822_v24  ;;  %v5816_v2 = vadd.f32 %v5815_v36, %v4967_v1  ;;  %v8274_v58 = vpop.f32.mrf.mxu0  ;;  %v14191_v24 = vld [vmem:[#allocation208_spill] sm:$0xff] }
 0x35d   :  { %v8492_v41 = vpop.f32.mrf.mxu1  ;;  %v5009_v38 = vadd.f32 %v8274_v58, %v14183_v34 }
 0x35e   :  { %6312 = vst.msk [vmem:[%s12567_s2 + $0x1b0] sm:$0xff] %vm6257_vm0, %v5816_v2  ;;  %v5834_v35 = vadd.f32 %v8492_v41, %v4985_v42  ;;  %v5002_v18 = vpop.f32.mrf.mxu0  ;;  %v14192_v2 = vld [vmem:[#allocation210_spill] sm:$0xff] }
 0x35f   :  { %v5827_v54 = vpop.f32.mrf.mxu1  ;;  %v5003_v56 = vadd.f32 %v5002_v18, %v14184_v33 }
 0x360   :  { %6315 = vst.msk [vmem:[%s12567_s2 + $0x1c8] sm:$0xff] %vm6257_vm0, %v5834_v35  ;;  %v5828_v7 = vadd.f32 %v5827_v54, %v4979_v49  ;;  %v8277_v15 = vpop.f32.mrf.mxu0  ;;  %v14193_v35 = vld [vmem:[#allocation237_spill] sm:$0xff] }
 0x361   :  { %v8495_v25 = vpop.f32.mrf.mxu1  ;;  %v5021_v31 = vadd.f32 %v8277_v15, %v14185_v46 }
 0x362   :  { %6314 = vst.msk [vmem:[%s12567_s2 + $0x1c0] sm:$0xff] %vm6257_vm0, %v5828_v7  ;;  %v5846_v63 = vadd.f32 %v8495_v25, %v4997_v57  ;;  %v5014_v9 = vpop.f32.mrf.mxu0  ;;  %v14194_v7 = vld [vmem:[#allocation211_spill] sm:$0xff] }
 0x363   :  { %v5839_v62 = vpop.f32.mrf.mxu1  ;;  %v5015_v55 = vadd.f32 %v5014_v9, %v14186_v40 }
 0x364   :  { %6317 = vst.msk [vmem:[%s12567_s2 + $0x1d8] sm:$0xff] %vm6257_vm0, %v5846_v63  ;;  %v5840_v32 = vadd.f32 %v5839_v62, %v4991_v60  ;;  %v8280_v21 = vpop.f32.mrf.mxu0  ;;  %v14195_v63 = vld [vmem:[#allocation238_spill] sm:$0xff] }
 0x365   :  { %v8498_v22 = vpop.f32.mrf.mxu1  ;;  %v5033_v43 = vadd.f32 %v8280_v21, %v14187_v11 }
 0x366   :  { %6316 = vst.msk [vmem:[%s12567_s2 + $0x1d0] sm:$0xff] %vm6257_vm0, %v5840_v32  ;;  %v5858_v61 = vadd.f32 %v8498_v22, %v5009_v38  ;;  %v5026_v52 = vpop.f32.mrf.mxu0  ;;  %v14196_v32 = vld [vmem:[#allocation213_spill] sm:$0xff] }
 0x367   :  { %v5851_v47 = vpop.f32.mrf.mxu1  ;;  %v5027_v48 = vadd.f32 %v5026_v52, %v14188_v59 }
 0x368   :  { %6319 = vst.msk [vmem:[%s12567_s2 + $0x1e8] sm:$0xff] %vm6257_vm0, %v5858_v61  ;;  %v5852_v28 = vadd.f32 %v5851_v47, %v5003_v56  ;;  %v8283_v20 = vpop.f32.mrf.mxu0  ;;  %v14197_v61 = vld [vmem:[#allocation243_spill] sm:$0xff] }
 0x369   :  { %v8501_v12 = vpop.f32.mrf.mxu1  ;;  %v5045_v19 = vadd.f32 %v8283_v20, %v14189_v30 }
 0x36a   :  { %6318 = vst.msk [vmem:[%s12567_s2 + $0x1e0] sm:$0xff] %vm6257_vm0, %v5852_v28  ;;  %v5870_v26 = vadd.f32 %v8501_v12, %v5021_v31  ;;  %v5038_v44 = vpop.f32.mrf.mxu0  ;;  %v14198_v28 = vld [vmem:[#allocation215_spill] sm:$0xff] }
 0x36b   :  { %v5863_v0 = vpop.f32.mrf.mxu1  ;;  %v5039_v5 = vadd.f32 %v5038_v44, %v14190_v16 }
 0x36c   :  { %6321 = vst.msk [vmem:[%s12567_s2 + $0x1f8] sm:$0xff] %vm6257_vm0, %v5870_v26  ;;  %v5864_v8 = vadd.f32 %v5863_v0, %v5015_v55  ;;  %v8286_v27 = vpop.f32.mrf.mxu0  ;;  %v14199_v26 = vld [vmem:[#allocation245_spill] sm:$0xff] }
 0x36d   :  { %v8504_v23 = vpop.f32.mrf.mxu1  ;;  %v5057_v37 = vadd.f32 %v8286_v27, %v14191_v24 }
 0x36e   :  { %6320 = vst.msk [vmem:[%s12567_s2 + $0x1f0] sm:$0xff] %vm6257_vm0, %v5864_v8  ;;  %v5882_v13 = vadd.f32 %v8504_v23, %v5033_v43  ;;  %v5050_v6 = vpop.f32.mrf.mxu0  ;;  %v14200_v8 = vld [vmem:[#allocation217_spill] sm:$0xff] }
 0x36f   :  { %v5875_v39 = vpop.f32.mrf.mxu1  ;;  %v5051_v58 = vadd.f32 %v5050_v6, %v14192_v2 }
 0x370   :  { %6323 = vst.msk [vmem:[%s12567_s2 + $0x208] sm:$0xff] %vm6257_vm0, %v5882_v13  ;;  %v5876_v51 = vadd.f32 %v5875_v39, %v5027_v48  ;;  %v8289_v50 = vpop.f32.mrf.mxu0  ;;  %v14201_v13 = vld [vmem:[#allocation249_spill] sm:$0xff] }
 0x371   :  { %v8507_v3 = vpop.f32.mrf.mxu1  ;;  %v5069_v18 = vadd.f32 %v8289_v50, %v14193_v35 }
 0x372   :  { %6322 = vst.msk [vmem:[%s12567_s2 + $0x200] sm:$0xff] %vm6257_vm0, %v5876_v51  ;;  %v5894_v45 = vadd.f32 %v8507_v3, %v5045_v19  ;;  %v5062_v4 = vpop.f32.mrf.mxu0  ;;  %v14202_v51 = vld [vmem:[#allocation219_spill] sm:$0xff] }
 0x373   :  { %v5887_v1 = vpop.f32.mrf.mxu1  ;;  %v5063_v15 = vadd.f32 %v5062_v4, %v14194_v7 }
 0x374   :  { %6325 = vst.msk [vmem:[%s12567_s2 + $0x218] sm:$0xff] %vm6257_vm0, %v5894_v45  ;;  %v5888_v36 = vadd.f32 %v5887_v1, %v5039_v5  ;;  %v8292_v53 = vpop.f32.mrf.mxu0  ;;  %v14203_v45 = vld [vmem:[#allocation252_spill] sm:$0xff] }
 0x375   :  { %v8510_v42 = vpop.f32.mrf.mxu1  ;;  %v5081_v9 = vadd.f32 %v8292_v53, %v14195_v63 }
 0x376   :  { %6324 = vst.msk [vmem:[%s12567_s2 + $0x210] sm:$0xff] %vm6257_vm0, %v5888_v36  ;;  %v5906_v41 = vadd.f32 %v8510_v42, %v5057_v37  ;;  %v5074_v29 = vpop.f32.mrf.mxu0  ;;  %v14204_v36 = vld [vmem:[#allocation222_spill] sm:$0xff] }
 0x377   :  { %v5899_v49 = vpop.f32.mrf.mxu1  ;;  %v5075_v21 = vadd.f32 %v5074_v29, %v14196_v32 }
 0x378   :  { %6327 = vst.msk [vmem:[%s12567_s2 + $0x228] sm:$0xff] %vm6257_vm0, %v5906_v41  ;;  %v5900_v54 = vadd.f32 %v5899_v49, %v5051_v58  ;;  %v8295_v10 = vpop.f32.mrf.mxu0  ;;  %v14205_v41 = vld [vmem:[#allocation255_spill] sm:$0xff] }
 0x379   :  { %v8513_v57 = vpop.f32.mrf.mxu1  ;;  %v5093_v52 = vadd.f32 %v8295_v10, %v14197_v61 }
 0x37a   :  { %6326 = vst.msk [vmem:[%s12567_s2 + $0x220] sm:$0xff] %vm6257_vm0, %v5900_v54  ;;  %v5918_v25 = vadd.f32 %v8513_v57, %v5069_v18  ;;  %v5086_v14 = vpop.f32.mrf.mxu0  ;;  %v14206_v54 = vld [vmem:[#allocation223_spill] sm:$0xff] }
 0x37b   :  { %v5911_v60 = vpop.f32.mrf.mxu1  ;;  %v5087_v20 = vadd.f32 %v5086_v14, %v14198_v28 }
 0x37c   :  { %6329 = vst.msk [vmem:[%s12567_s2 + $0x238] sm:$0xff] %vm6257_vm0, %v5918_v25  ;;  %v5912_v62 = vadd.f32 %v5911_v60, %v5063_v15  ;;  %v8298_v34 = vpop.f32.mrf.mxu0  ;;  %v14207_v25 = vld [vmem:[#allocation258_spill] sm:$0xff] }
 0x37d   :  { %v8516_v38 = vpop.f32.mrf.mxu1  ;;  %v5105_v44 = vadd.f32 %v8298_v34, %v14199_v26 }
 0x37e   :  { %6328 = vst.msk [vmem:[%s12567_s2 + $0x230] sm:$0xff] %vm6257_vm0, %v5912_v62  ;;  %v5930_v22 = vadd.f32 %v8516_v38, %v5081_v9  ;;  %v5098_v33 = vpop.f32.mrf.mxu0  ;;  %v14208_v62 = vld [vmem:[#allocation225_spill] sm:$0xff] }
 0x37f   :  { %v5923_v56 = vpop.f32.mrf.mxu1  ;;  %v5099_v27 = vadd.f32 %v5098_v33, %v14200_v8 }
 0x380   :  { %6331 = vst.msk [vmem:[%s12567_s2 + $0x248] sm:$0xff] %vm6257_vm0, %v5930_v22  ;;  %v5924_v47 = vadd.f32 %v5923_v56, %v5075_v21  ;;  %v8301_v46 = vpop.f32.mrf.mxu0  ;;  %v14209_v22 = vld [vmem:[#allocation261_spill] sm:$0xff] }
 0x381   :  { %v8519_v31 = vpop.f32.mrf.mxu1  ;;  %v5117_v6 = vadd.f32 %v8301_v46, %v14201_v13 }
 0x382   :  { %6330 = vst.msk [vmem:[%s12567_s2 + $0x240] sm:$0xff] %vm6257_vm0, %v5924_v47  ;;  %v5942_v12 = vadd.f32 %v8519_v31, %v5093_v52  ;;  %v5110_v40 = vpop.f32.mrf.mxu0  ;;  %v14210_v47 = vld [vmem:[#allocation228_spill] sm:$0xff] }
 0x383   :  { %v5935_v55 = vpop.f32.mrf.mxu1  ;;  %v5111_v50 = vadd.f32 %v5110_v40, %v14202_v51 }
 0x384   :  { %6333 = vst.msk [vmem:[%s12567_s2 + $0x258] sm:$0xff] %vm6257_vm0, %v5942_v12  ;;  %v5936_v0 = vadd.f32 %v5935_v55, %v5087_v20  ;;  %v8304_v11 = vpop.f32.mrf.mxu0  ;;  %v14211_v12 = vld [vmem:[#allocation263_spill] sm:$0xff] }
 0x385   :  { %v8522_v43 = vpop.f32.mrf.mxu1  ;;  %v5129_v4 = vadd.f32 %v8304_v11, %v14203_v45 }
 0x386   :  { %6332 = vst.msk [vmem:[%s12567_s2 + $0x250] sm:$0xff] %vm6257_vm0, %v5936_v0  ;;  %v5954_v23 = vadd.f32 %v8522_v43, %v5105_v44  ;;  %v5122_v59 = vpop.f32.mrf.mxu0  ;;  %v14212_v0 = vld [vmem:[#allocation229_spill] sm:$0xff] }
 0x387   :  { %v5947_v48 = vpop.f32.mrf.mxu1  ;;  %v5123_v53 = vadd.f32 %v5122_v59, %v14204_v36 }
 0x388   :  { %6335 = vst.msk [vmem:[%s12567_s2 + $0x268] sm:$0xff] %vm6257_vm0, %v5954_v23  ;;  %v5948_v39 = vadd.f32 %v5947_v48, %v5099_v27  ;;  %v8307_v30 = vpop.f32.mrf.mxu0  ;;  %v14213_v23 = vld [vmem:[#allocation267_spill] sm:$0xff] }
 0x389   :  { %v8525_v19 = vpop.f32.mrf.mxu1  ;;  %v5141_v29 = vadd.f32 %v8307_v30, %v14205_v41 }
 0x38a   :  { %6334 = vst.msk [vmem:[%s12567_s2 + $0x260] sm:$0xff] %vm6257_vm0, %v5948_v39  ;;  %v5966_v3 = vadd.f32 %v8525_v19, %v5117_v6  ;;  %v5134_v16 = vpop.f32.mrf.mxu0  ;;  %v14214_v39 = vld [vmem:[#allocation231_spill] sm:$0xff] }
 0x38b   :  { %v5959_v5 = vpop.f32.mrf.mxu1  ;;  %v5135_v10 = vadd.f32 %v5134_v16, %v14206_v54 }
 0x38c   :  { %6337 = vst.msk [vmem:[%s12567_s2 + $0x278] sm:$0xff] %vm6257_vm0, %v5966_v3  ;;  %v5960_v1 = vadd.f32 %v5959_v5, %v5111_v50  ;;  %v8310_v24 = vpop.f32.mrf.mxu0  ;;  %v14215_v3 = vld [vmem:[#allocation233_spill] sm:$0xff] }
 0x38d   :  { %v8528_v37 = vpop.f32.mrf.mxu1  ;;  %v5153_v14 = vadd.f32 %v8310_v24, %v14207_v25 }
 0x38e   :  { %6336 = vst.msk [vmem:[%s12567_s2 + $0x270] sm:$0xff] %vm6257_vm0, %v5960_v1  ;;  %v5978_v42 = vadd.f32 %v8528_v37, %v5129_v4  ;;  %v5146_v2 = vpop.f32.mrf.mxu0  ;;  %v14216_v1 = vld [vmem:[#allocation272_spill] sm:$0xff] }
 0x38f   :  { %v5971_v58 = vpop.f32.mrf.mxu1  ;;  %v5147_v34 = vadd.f32 %v5146_v2, %v14208_v62 }
 0x390   :  { %6339 = vst.msk [vmem:[%s12567_s2 + $0x288] sm:$0xff] %vm6257_vm0, %v5978_v42  ;;  %v5972_v49 = vadd.f32 %v5971_v58, %v5123_v53  ;;  %v8313_v35 = vpop.f32.mrf.mxu0  ;;  %v14217_v42 = vld [vmem:[#allocation235_spill] sm:$0xff] }
 0x391   :  { %v8531_v18 = vpop.f32.mrf.mxu1  ;;  %v5165_v33 = vadd.f32 %v8313_v35, %v14209_v22 }
 0x392   :  { %6338 = vst.msk [vmem:[%s12567_s2 + $0x280] sm:$0xff] %vm6257_vm0, %v5972_v49  ;;  %v5990_v57 = vadd.f32 %v8531_v18, %v5141_v29  ;;  %v5158_v7 = vpop.f32.mrf.mxu0  ;;  %v14218_v49 = vld [vmem:[#allocation273_spill] sm:$0xff] }
 0x393   :  { %v5983_v15 = vpop.f32.mrf.mxu1  ;;  %v5159_v46 = vadd.f32 %v5158_v7, %v14210_v47 }
 0x394   :  { %6341 = vst.msk [vmem:[%s12567_s2 + $0x298] sm:$0xff] %vm6257_vm0, %v5990_v57  ;;  %v5984_v60 = vadd.f32 %v5983_v15, %v5135_v10  ;;  %v8316_v63 = vpop.f32.mrf.mxu0  ;;  %v14219_v57 = vld [vmem:[#allocation239_spill] sm:$0xff] }
 0x395   :  { %v8534_v9 = vpop.f32.mrf.mxu1  ;;  %v5177_v40 = vadd.f32 %v8316_v63, %v14211_v12 }
 0x396   :  { %6340 = vst.msk [vmem:[%s12567_s2 + $0x290] sm:$0xff] %vm6257_vm0, %v5984_v60  ;;  %v6002_v38 = vadd.f32 %v8534_v9, %v5153_v14  ;;  %v5170_v32 = vpop.f32.mrf.mxu0  ;;  %v14220_v60 = vld [vmem:[#allocation241_spill] sm:$0xff] }
 0x397   :  { %v5995_v21 = vpop.f32.mrf.mxu1  ;;  %v5171_v11 = vadd.f32 %v5170_v32, %v14212_v0 }
 0x398   :  { %6343 = vst.msk [vmem:[%s12567_s2 + $0x2a8] sm:$0xff] %vm6257_vm0, %v6002_v38  ;;  %v5996_v56 = vadd.f32 %v5995_v21, %v5147_v34  ;;  %v8319_v61 = vpop.f32.mrf.mxu0  ;;  %v14221_v38 = vld [vmem:[#allocation246_spill] sm:$0xff] }
 0x399   :  { %v8537_v52 = vpop.f32.mrf.mxu1  ;;  %v5189_v59 = vadd.f32 %v8319_v61, %v14213_v23 }
 0x39a   :  { %6342 = vst.msk [vmem:[%s12567_s2 + $0x2a0] sm:$0xff] %vm6257_vm0, %v5996_v56  ;;  %v6014_v31 = vadd.f32 %v8537_v52, %v5165_v33  ;;  %v5182_v28 = vpop.f32.mrf.mxu0  ;;  %v14222_v56 = vld [vmem:[#allocation247_spill] sm:$0xff] }
 0x39b   :  { %v6007_v20 = vpop.f32.mrf.mxu1  ;;  %v5183_v30 = vadd.f32 %v5182_v28, %v14214_v39 }
 0x39c   :  { %6345 = vst.msk [vmem:[%s12567_s2 + $0x2b8] sm:$0xff] %vm6257_vm0, %v6014_v31  ;;  %v6008_v55 = vadd.f32 %v6007_v20, %v5159_v46  ;;  %v8322_v26 = vpop.f32.mrf.mxu0  ;;  %v14223_v31 = vld [vmem:[#allocation250_spill] sm:$0xff] }
 0x39d   :  { %v8540_v44 = vpop.f32.mrf.mxu1  ;;  %v5201_v16 = vadd.f32 %v8322_v26, %v14215_v3 }
 0x39e   :  { %6344 = vst.msk [vmem:[%s12567_s2 + $0x2b0] sm:$0xff] %vm6257_vm0, %v6008_v55  ;;  %v6026_v43 = vadd.f32 %v8540_v44, %v5177_v40  ;;  %v5194_v8 = vpop.f32.mrf.mxu0  ;;  %v14224_v55 = vld [vmem:[#allocation254_spill] sm:$0xff] }
 0x39f   :  { %v6019_v27 = vpop.f32.mrf.mxu1  ;;  %v5195_v24 = vadd.f32 %v5194_v8, %v14216_v1 }
 0x3a0   :  { %6347 = vst.msk [vmem:[%s12567_s2 + $0x2c8] sm:$0xff] %vm6257_vm0, %v6026_v43  ;;  %v6020_v48 = vadd.f32 %v6019_v27, %v5171_v11  ;;  %v8325_v13 = vpop.f32.mrf.mxu0  ;;  %v14225_v43 = vld [vmem:[#allocation256_spill] sm:$0xff] }
 0x3a1   :  { %v8543_v6 = vpop.f32.mrf.mxu1  ;;  %v5213_v2 = vadd.f32 %v8325_v13, %v14217_v42 }
 0x3a2   :  { %6346 = vst.msk [vmem:[%s12567_s2 + $0x2c0] sm:$0xff] %vm6257_vm0, %v6020_v48  ;;  %v6038_v19 = vadd.f32 %v8543_v6, %v5189_v59  ;;  %v5206_v51 = vpop.f32.mrf.mxu0  ;;  %v14226_v48 = vld [vmem:[#allocation259_spill] sm:$0xff] }
 0x3a3   :  { %v6031_v50 = vpop.f32.mrf.mxu1  ;;  %v5207_v35 = vadd.f32 %v5206_v51, %v14218_v49 }
 0x3a4   :  { %6349 = vst.msk [vmem:[%s12567_s2 + $0x2d8] sm:$0xff] %vm6257_vm0, %v6038_v19  ;;  %v6032_v5 = vadd.f32 %v6031_v50, %v5183_v30  ;;  %v8328_v45 = vpop.f32.mrf.mxu0  ;;  %v14227_v19 = vld [vmem:[#allocation262_spill] sm:$0xff] }
 0x3a5   :  { %v8546_v4 = vpop.f32.mrf.mxu1  ;;  %v5225_v7 = vadd.f32 %v8328_v45, %v14219_v57 }
 0x3a6   :  { %6348 = vst.msk [vmem:[%s12567_s2 + $0x2d0] sm:$0xff] %vm6257_vm0, %v6032_v5  ;;  %v6050_v37 = vadd.f32 %v8546_v4, %v5201_v16  ;;  %v5218_v36 = vpop.f32.mrf.mxu0  ;;  %v14228_v5 = vld [vmem:[#allocation265_spill] sm:$0xff] }
 0x3a7   :  { %v6043_v53 = vpop.f32.mrf.mxu1  ;;  %v5219_v63 = vadd.f32 %v5218_v36, %v14220_v60 }
 0x3a8   :  { %6351 = vst.msk [vmem:[%s12567_s2 + $0x2e8] sm:$0xff] %vm6257_vm0, %v6050_v37  ;;  %v6044_v58 = vadd.f32 %v6043_v53, %v5195_v24  ;;  %v8331_v41 = vpop.f32.mrf.mxu0  ;;  %v14229_v37 = vld [vmem:[#allocation269_spill] sm:$0xff] }
 0x3a9   :  { %v8549_v29 = vpop.f32.mrf.mxu1  ;;  %v5237_v32 = vadd.f32 %v8331_v41, %v14221_v38 }
 0x3aa   :  { %6350 = vst.msk [vmem:[%s12567_s2 + $0x2e0] sm:$0xff] %vm6257_vm0, %v6044_v58  ;;  %v6062_v18 = vadd.f32 %v8549_v29, %v5213_v2  ;;  %v5230_v54 = vpop.f32.mrf.mxu0  ;;  %v14230_v58 = vld [vmem:[#allocation270_spill] sm:$0xff] }
 0x3ab   :  { %v6055_v10 = vpop.f32.mrf.mxu1  ;;  %v5231_v61 = vadd.f32 %v5230_v54, %v14222_v56 }
 0x3ac   :  { %6353 = vst.msk [vmem:[%s12567_s2 + $0x2f8] sm:$0xff] %vm6257_vm0, %v6062_v18  ;;  %v6056_v15 = vadd.f32 %v6055_v10, %v5207_v35  ;;  %v8334_v25 = vpop.f32.mrf.mxu0  ;;  %v14231_v18 = vld [vmem:[#allocation14_spill] sm:$0xff] }
 0x3ad   :  { %v8552_v14 = vpop.f32.mrf.mxu1  ;;  %v5249_v28 = vadd.f32 %v8334_v25, %v14223_v31 }
 0x3ae   :  { %6352 = vst.msk [vmem:[%s12567_s2 + $0x2f0] sm:$0xff] %vm6257_vm0, %v6056_v15  ;;  %v6074_v9 = vadd.f32 %v8552_v14, %v5225_v7  ;;  %v5242_v62 = vpop.f32.mrf.mxu0  ;;  %v14232_v15 = vld [vmem:[#allocation16_spill] sm:$0xff] }
 0x3af   :  { %v6067_v34 = vpop.f32.mrf.mxu1  ;;  %v5243_v26 = vadd.f32 %v5242_v62, %v14224_v55 }
 0x3b0   :  { %6355 = vst.msk [vmem:[%s12567_s2 + $0x308] sm:$0xff] %vm6257_vm0, %v6074_v9  ;;  %v6068_v21 = vadd.f32 %v6067_v34, %v5219_v63  ;;  %v8337_v22 = vpop.f32.mrf.mxu0  ;;  %v14233_v9 = vld [vmem:[#allocation21_spill] sm:$0xff] }
 0x3b1   :  { %v8555_v33 = vpop.f32.mrf.mxu1  ;;  %v5261_v8 = vadd.f32 %v8337_v22, %v14225_v43 }
 0x3b2   :  { %6354 = vst.msk [vmem:[%s12567_s2 + $0x300] sm:$0xff] %vm6257_vm0, %v6068_v21  ;;  %v6086_v52 = vadd.f32 %v8555_v33, %v5237_v32  ;;  %v5254_v47 = vpop.f32.mrf.mxu0  ;;  %v14234_v21 = vld [vmem:[#allocation24_spill] sm:$0xff] }
 0x3b3   :  { %v6079_v46 = vpop.f32.mrf.mxu1  ;;  %v5255_v13 = vadd.f32 %v5254_v47, %v14226_v48 }
 0x3b4   :  { %6357 = vst.msk [vmem:[%s12567_s2 + $0x318] sm:$0xff] %vm6257_vm0, %v6086_v52  ;;  %v6080_v20 = vadd.f32 %v6079_v46, %v5231_v61  ;;  %v8340_v12 = vpop.f32.mrf.mxu0  ;;  %v14235_v52 = vld [vmem:[#allocation30_spill] sm:$0xff] }
 0x3b5   :  { %v8558_v40 = vpop.f32.mrf.mxu1  ;;  %v5273_v51 = vadd.f32 %v8340_v12, %v14227_v19 }
 0x3b6   :  { %6356 = vst.msk [vmem:[%s12567_s2 + $0x310] sm:$0xff] %vm6257_vm0, %v6080_v20  ;;  %v6098_v44 = vadd.f32 %v8558_v40, %v5249_v28  ;;  %v5266_v0 = vpop.f32.mrf.mxu0  ;;  %v14236_v20 = vld [vmem:[#allocation32_spill] sm:$0xff] }
 0x3b7   :  { %v6091_v11 = vpop.f32.mrf.mxu1  ;;  %v5267_v45 = vadd.f32 %v5266_v0, %v14228_v5 }
 0x3b8   :  { %6359 = vst.msk [vmem:[%s12567_s2 + $0x328] sm:$0xff] %vm6257_vm0, %v6098_v44  ;;  %v6092_v27 = vadd.f32 %v6091_v11, %v5243_v26  ;;  %v8343_v23 = vpop.f32.mrf.mxu0  ;;  %v14237_v44 = vld [vmem:[#allocation34_spill] sm:$0xff] }
 0x3b9   :  { %v8561_v59 = vpop.f32.mrf.mxu1  ;;  %v5285_v36 = vadd.f32 %v8343_v23, %v14229_v37 }
 0x3ba   :  { %6358 = vst.msk [vmem:[%s12567_s2 + $0x320] sm:$0xff] %vm6257_vm0, %v6092_v27  ;;  %v6110_v6 = vadd.f32 %v8561_v59, %v5261_v8  ;;  %v5278_v39 = vpop.f32.mrf.mxu0  ;;  %v14238_v27 = vld [vmem:[#allocation36_spill] sm:$0xff] }
 0x3bb   :  { %v6103_v30 = vpop.f32.mrf.mxu1  ;;  %v5279_v41 = vadd.f32 %v5278_v39, %v14230_v58 }
 0x3bc   :  { %6361 = vst.msk [vmem:[%s12567_s2 + $0x338] sm:$0xff] %vm6257_vm0, %v6110_v6  ;;  %v6104_v50 = vadd.f32 %v6103_v30, %v5255_v13  ;;  %v8346_v3 = vpop.f32.mrf.mxu0  ;;  %v14239_v6 = vld [vmem:[#allocation38_spill] sm:$0xff] }
 0x3bd   :  { %v8564_v16 = vpop.f32.mrf.mxu1  ;;  %v5297_v54 = vadd.f32 %v8346_v3, %v14231_v18 }
 0x3be   :  { %6360 = vst.msk [vmem:[%s12567_s2 + $0x330] sm:$0xff] %vm6257_vm0, %v6104_v50  ;;  %v6122_v4 = vadd.f32 %v8564_v16, %v5273_v51  ;;  %v5290_v1 = vpop.f32.mrf.mxu0  ;;  %v14240_v50 = vld [vmem:[#allocation40_spill] sm:$0xff] }
 0x3bf   :  { %v6115_v24 = vpop.f32.mrf.mxu1  ;;  %v5291_v25 = vadd.f32 %v5290_v1, %v14232_v15 }
 0x3c0   :  { %6363 = vst.msk [vmem:[%s12567_s2 + $0x348] sm:$0xff] %vm6257_vm0, %v6122_v4  ;;  %v6116_v53 = vadd.f32 %v6115_v24, %v5267_v45  ;;  %v8349_v42 = vpop.f32.mrf.mxu0  ;;  %v14241_v4 = vld [vmem:[#allocation41_spill] sm:$0xff] }
 0x3c1   :  { %v8567_v2 = vpop.f32.mrf.mxu1  ;;  %v5309_v62 = vadd.f32 %v8349_v42, %v14233_v9 }
 0x3c2   :  { %6362 = vst.msk [vmem:[%s12567_s2 + $0x340] sm:$0xff] %vm6257_vm0, %v6116_v53  ;;  %v6134_v29 = vadd.f32 %v8567_v2, %v5285_v36  ;;  %v5302_v49 = vpop.f32.mrf.mxu0  ;;  %v14242_v53 = vld [vmem:[#allocation42_spill] sm:$0xff] }
 0x3c3   :  { %v6127_v35 = vpop.f32.mrf.mxu1  ;;  %v5303_v22 = vadd.f32 %v5302_v49, %v14234_v21 }
 0x3c4   :  { %6365 = vst.msk [vmem:[%s12567_s2 + $0x358] sm:$0xff] %vm6257_vm0, %v6134_v29  ;;  %v6128_v10 = vadd.f32 %v6127_v35, %v5279_v41  ;;  %v8352_v57 = vpop.f32.mrf.mxu0  ;;  %v14243_v29 = vld [vmem:[#allocation44_spill] sm:$0xff] }
 0x3c5   :  { %v8570_v7 = vpop.f32.mrf.mxu1  ;;  %v5321_v47 = vadd.f32 %v8352_v57, %v14235_v52  ;;  %v14248_v52 = vld [vmem:[#allocation52_spill] sm:$0xff] }
 0x3c6   :  { %6364 = vst.msk [vmem:[%s12567_s2 + $0x350] sm:$0xff] %vm6257_vm0, %v6128_v10  ;;  %v6146_v14 = vadd.f32 %v8570_v7, %v5297_v54  ;;  %v5314_v60 = vpop.f32.mrf.mxu0  ;;  %v14244_v10 = vld [vmem:[#allocation45_spill] sm:$0xff] }
 0x3c7   :  { %v6139_v63 = vpop.f32.mrf.mxu1  ;;  %v5315_v12 = vadd.f32 %v5314_v60, %v14236_v20  ;;  %v14249_v20 = vld [vmem:[#allocation17_spill] sm:$0xff] }
 0x3c8   :  { %6367 = vst.msk [vmem:[%s12567_s2 + $0x368] sm:$0xff] %vm6257_vm0, %v6146_v14  ;;  %v6140_v34 = vadd.f32 %v6139_v63, %v5291_v25  ;;  %v8355_v38 = vpop.f32.mrf.mxu0  ;;  %v14245_v14 = vld [vmem:[#allocation47_spill] sm:$0xff] }
 0x3c9   :  { %v8573_v32 = vpop.f32.mrf.mxu1  ;;  %v5333_v0 = vadd.f32 %v8355_v38, %v14237_v44 }
 0x3ca   :  { %6366 = vst.msk [vmem:[%s12567_s2 + $0x360] sm:$0xff] %vm6257_vm0, %v6140_v34  ;;  %v6158_v33 = vadd.f32 %v8573_v32, %v5309_v62  ;;  %v5326_v56 = vpop.f32.mrf.mxu0  ;;  %v14246_v62 = vld [vmem:[#allocation49_spill] sm:$0xff] }
 0x3cb   :  { %v6151_v61 = vpop.f32.mrf.mxu1  ;;  %v5327_v23 = vadd.f32 %v5326_v56, %v14238_v27 }
 0x3cc   :  { %6369 = vst.msk [vmem:[%s12567_s2 + $0x378] sm:$0xff] %vm6257_vm0, %v6158_v33  ;;  %v6152_v46 = vadd.f32 %v6151_v61, %v5303_v22  ;;  %v8358_v31 = vpop.f32.mrf.mxu0  ;;  %v14247_v22 = vld [vmem:[#allocation51_spill] sm:$0xff] }
 0x3cd   :  { %v8576_v28 = vpop.f32.mrf.mxu1  ;;  %v5345_v39 = vadd.f32 %v8358_v31, %v14239_v6 }
 0x3ce   :  { %6368 = vst.msk [vmem:[%s12567_s2 + $0x370] sm:$0xff] %vm6257_vm0, %v6152_v46  ;;  %v6170_v40 = vadd.f32 %v8576_v28, %v5321_v47  ;;  %v5338_v55 = vpop.f32.mrf.mxu0 }
 0x3cf   :  { %v6163_v26 = vpop.f32.mrf.mxu1  ;;  %v5339_v3 = vadd.f32 %v5338_v55, %v14240_v50 }
 0x3d0   :  { %6371 = vst.msk [vmem:[%s12567_s2 + $0x388] sm:$0xff] %vm6257_vm0, %v6170_v40  ;;  %v6164_v11 = vadd.f32 %v6163_v26, %v5315_v12  ;;  %v8361_v43 = vpop.f32.mrf.mxu0 }
 0x3d1   :  { %v8579_v8 = vpop.f32.mrf.mxu1  ;;  %v5357_v1 = vadd.f32 %v8361_v43, %v14241_v4 }
 0x3d2   :  { %6370 = vst.msk [vmem:[%s12567_s2 + $0x380] sm:$0xff] %vm6257_vm0, %v6164_v11  ;;  %v6182_v59 = vadd.f32 %v8579_v8, %v5333_v0  ;;  %v5350_v48 = vpop.f32.mrf.mxu0 }
 0x3d3   :  { %v6175_v13 = vpop.f32.mrf.mxu1  ;;  %v5351_v42 = vadd.f32 %v5350_v48, %v14242_v53 }
 0x3d4   :  { %6373 = vst.msk [vmem:[%s12567_s2 + $0x398] sm:$0xff] %vm6257_vm0, %v6182_v59  ;;  %v6176_v30 = vadd.f32 %v6175_v13, %v5327_v23  ;;  %v8364_v19 = vpop.f32.mrf.mxu0 }
 0x3d5   :  { %v8582_v51 = vpop.f32.mrf.mxu1  ;;  %v5369_v49 = vadd.f32 %v8364_v19, %v14243_v29 }
 0x3d6   :  { %6372 = vst.msk [vmem:[%s12567_s2 + $0x390] sm:$0xff] %vm6257_vm0, %v6176_v30  ;;  %v6194_v16 = vadd.f32 %v8582_v51, %v5345_v39  ;;  %v5362_v5 = vpop.f32.mrf.mxu0 }
 0x3d7   :  { %v6187_v45 = vpop.f32.mrf.mxu1  ;;  %v5363_v57 = vadd.f32 %v5362_v5, %v14244_v10 }
 0x3d8   :  { %6375 = vst.msk [vmem:[%s12567_s2 + $0x3a8] sm:$0xff] %vm6257_vm0, %v6194_v16  ;;  %v6188_v24 = vadd.f32 %v6187_v45, %v5339_v3  ;;  %v8367_v37 = vpop.f32.mrf.mxu0 }
 0x3d9   :  { %v8585_v36 = vpop.f32.mrf.mxu1  ;;  %v5381_v60 = vadd.f32 %v8367_v37, %v14245_v14 }
 0x3da   :  { %6374 = vst.msk [vmem:[%s12567_s2 + $0x3a0] sm:$0xff] %vm6257_vm0, %v6188_v24  ;;  %v6206_v2 = vadd.f32 %v8585_v36, %v5357_v1  ;;  %v5374_v58 = vpop.f32.mrf.mxu0 }
 0x3db   :  { %v6199_v41 = vpop.f32.mrf.mxu1  ;;  %v5375_v34 = vadd.f32 %v5374_v58, %v14246_v62 }
 0x3dc   :  { %6377 = vst.msk [vmem:[%s12567_s2 + $0x3b8] sm:$0xff] %vm6257_vm0, %v6206_v2  ;;  %v6200_v35 = vadd.f32 %v6199_v41, %v5351_v42  ;;  %v8370_v18 = vpop.f32.mrf.mxu0 }
 0x3dd   :  { %v8588_v54 = vpop.f32.mrf.mxu1  ;;  %v5393_v33 = vadd.f32 %v8370_v18, %v14247_v22 }
 0x3de   :  { %6376 = vst.msk [vmem:[%s12567_s2 + $0x3b0] sm:$0xff] %vm6257_vm0, %v6200_v35  ;;  %v6218_v7 = vadd.f32 %v8588_v54, %v5369_v49  ;;  %v5386_v15 = vpop.f32.mrf.mxu0 }
 0x3df   :  { %v6211_v25 = vpop.f32.mrf.mxu1  ;;  %v5387_v47 = vadd.f32 %v5386_v15, %v14248_v52 }
 0x3e0   :  { %6379 = vst.msk [vmem:[%s12567_s2 + $0x3c8] sm:$0xff] %vm6257_vm0, %v6218_v7  ;;  %v6212_v63 = vadd.f32 %v6211_v25, %v5363_v57  ;;  %v8373_v32 = vpop.f32.mrf.mxu0 }
 0x3e1   :  { %v8591_v9 = vpop.f32.mrf.mxu1  ;;  %v5405_v12 = vadd.f32 %v8373_v32, %v14249_v20 }
 0x3e2   :  { %6378 = vst.msk [vmem:[%s12567_s2 + $0x3c0] sm:$0xff] %vm6257_vm0, %v6212_v63  ;;  %v6230_v38 = vadd.f32 %v8591_v9, %v5381_v60  ;;  %v5398_v31 = vpop.f32.mrf.mxu0 }
 0x3e3   :  { %v6223_v21 = vpop.f32.mrf.mxu1  ;;  %v5399_v26 = vadd.f32 %v5398_v31, %v11866_v17 }
 0x3e4   :  { %6381 = vst.msk [vmem:[%s12567_s2 + $0x3d8] sm:$0xff] %vm6257_vm0, %v6230_v38  ;;  %v6224_v56 = vadd.f32 %v6223_v21, %v5375_v34 }
 0x3e5   :  { %v8594_v61 = vpop.f32.mrf.mxu1 }
 0x3e6   :  { %6380 = vst.msk [vmem:[%s12567_s2 + $0x3d0] sm:$0xff] %vm6257_vm0, %v6224_v56  ;;  %v6242_v46 = vadd.f32 %v8594_v61, %v5393_v33 }
 0x3e7   :  { %v6235_v28 = vpop.f32.mrf.mxu1 }
 0x3e8   :  { %6383 = vst.msk [vmem:[%s12567_s2 + $0x3e8] sm:$0xff] %vm6257_vm0, %v6242_v46  ;;  %v6236_v40 = vadd.f32 %v6235_v28, %v5387_v47 }
 0x3e9   :  { %v8597_v55 = vpop.f32.mrf.mxu1 }
 0x3ea   :  { %6382 = vst.msk [vmem:[%s12567_s2 + $0x3e0] sm:$0xff] %vm6257_vm0, %v6236_v40  ;;  %v6254_v44 = vadd.f32 %v8597_v55, %v5405_v12 }
 0x3eb   :  { %v6247_v0 = vpop.f32.mrf.mxu1 }
 0x3ec   :  { %6385 = vst.msk [vmem:[%s12567_s2 + $0x3f8] sm:$0xff] %vm6257_vm0, %v6254_v44  ;;  %v6248_v11 = vadd.f32 %v6247_v0, %v5399_v26 }
 0x3ee   :  { %6384 = vst.msk [vmem:[%s12567_s2 + $0x3f0] sm:$0xff] %vm6257_vm0, %v6248_v11 }

</bundles_post_ra>
